<compile_context>
chip_gen: v7x
topology: tpu7x:2x2x1
jax: 0.10.0
libtpu: 0.0.40
codegen_flags: <defaults>
</compile_context>

<pallas_src>
import jax
import jax.numpy as jnp
from jax import lax
from jax.experimental import pallas as pl
from jax.experimental.pallas import tpu as pltpu

LANE = 128  # TPU lane width; all channel dims are padded to this.


def _round_up(n, m):
    return (n + m - 1) // m * m


# --------------------------------------------------------------------------
# Kernels
# --------------------------------------------------------------------------
def _layer0_kernel(p_ref, w1_ref, s1_ref, b1_ref,
                   w2_ref, s2_ref, b2_ref,
                   w3_ref, s3_ref, b3_ref,
                   o_ref, pad_ref):
    """Fused conv1+BN+ReLU -> conv2+BN+ReLU -> conv3+BN+ReLU -> dense 3x3 max."""
    H1, W1, KP = p_ref.shape          # conv1 output spatial extent, patch K
    C = w1_ref.shape[1]               # lane-dense channel count (128)
    HW = H1 * W1
    Hd, Wd, _ = o_ref.shape           # dense (stride-1) max-pool extent

    # Zero the scratch: rows/cols outside the interior act as the conv "pad=1"
    # zeros and (because activations are post-ReLU >= 0) as the ceil_mode
    # overhang of the max-pool.  Cheap (few hundred KiB of vst), and safe under
    # "parallel" batch sharding (no cross-step state assumed).
    pad_ref[...] = jnp.zeros(pad_ref.shape, pad_ref.dtype)

    # ---- conv1: stride-2 3x3 conv folded into one GEMM over patches ----
    h = jnp.dot(p_ref[...].reshape(HW, KP), w1_ref[...],
                preferred_element_type=jnp.float32)
    h = jnp.maximum(h * s1_ref[...] + b1_ref[...], 0.0)

    def conv3x3(w_ref, s_ref, b_ref):
        # pad_ref interior (rows 1..H1, cols 8..8+W1) holds the layer input;
        # the zero border supplies the conv padding.
        acc = jnp.zeros((HW, C), jnp.float32)
        for t in range(9):
            dy, dx = divmod(t, 3)
            tap = pad_ref[pl.ds(dy, H1), pl.ds(7 + dx, W1), :].reshape(HW, C)
            acc += jnp.dot(tap.astype(jnp.bfloat16), w_ref[t],
                           preferred_element_type=jnp.float32)
        return jnp.maximum(acc * s_ref[...] + b_ref[...], 0.0)

    # ---- conv2 ----
    pad_ref[pl.ds(1, H1), pl.ds(8, W1), :] = h.reshape(H1, W1, C)  # aligned store
    h = conv3x3(w2_ref, s2_ref, b2_ref)

    # ---- conv3 ----
    pad_ref[pl.ds(1, H1), pl.ds(8, W1), :] = h.reshape(H1, W1, C)
    h = conv3x3(w3_ref, s3_ref, b3_ref)

    # ---- MaxPool2d(3, stride=2, ceil_mode=True), computed densely ----
    # (the wrapper keeps every other row/col; ReLU output >= 0 makes the zero
    #  border a valid stand-in for -inf on the overhanging last window)
    pad_ref[pl.ds(1, H1), pl.ds(8, W1), :] = h.reshape(H1, W1, C)
    m = pad_ref[pl.ds(1, Hd), pl.ds(8, Wd), :]
    for t in range(1, 9):
        dy, dx = divmod(t, 3)
        m = jnp.maximum(m, pad_ref[pl.ds(1 + dy, Hd), pl.ds(8 + dx, Wd), :])
    o_ref[...] = m


def _avgpool_kernel(x_ref, o_ref):
    """AvgPool2d(7, stride=1) on a lane-dense NHWC tile."""
    Ho, Wo, _ = o_ref.shape
    acc = jnp.zeros(o_ref.shape, jnp.float32)
    for dy in range(7):
        for dx in range(7):
            acc = acc + x_ref[pl.ds(dy, Ho), pl.ds(dx, Wo), :]
    o_ref[...] = acc * (1.0 / 49.0)


# --------------------------------------------------------------------------
# Wrapper-side (zero-FLOP) layout plumbing
# --------------------------------------------------------------------------
def _extract_conv1_patches(x_nhwc):
    """3x3 / stride-2 / pad-1 patches, channel-major (dy, dx, ci), padded to 128."""
    B, H, W, Cin = x_nhwc.shape
    H1 = (H + 2 - 3) // 2 + 1
    W1 = (W + 2 - 3) // 2 + 1
    xp = jnp.pad(x_nhwc, ((0, 0), (1, 1), (1, 1), (0, 0)))
    taps = []
    for dy in range(3):
        for dx in range(3):
            taps.append(xp[:, dy:dy + 2 * H1 - 1:2, dx:dx + 2 * W1 - 1:2, :])
    p = jnp.concatenate(taps, axis=-1)                       # (B, H1, W1, 27)
    KP = _round_up(p.shape[-1], LANE)
    p = jnp.pad(p, ((0, 0), (0, 0), (0, 0), (0, KP - p.shape[-1])))
    return p.astype(jnp.bfloat16), H1, W1, KP


def _conv1_as_gemm(w):
    """(Cout, Cin, 3, 3) torch-layout weight -> (128, 128) bf16 GEMM weight."""
    cout, cin, kh, kw = w.shape
    wm = jnp.transpose(w, (2, 3, 1, 0)).reshape(kh * kw * cin, cout)
    out = jnp.zeros((_round_up(kh * kw * cin, LANE), LANE), jnp.float32)
    out = out.at[:kh * kw * cin, :cout].set(wm)
    return out.astype(jnp.bfloat16)


def _conv_taps(w):
    """(Cout, Cin, 3, 3) -> (9, 128, 128) bf16, [in, out]-major per 3x3 tap."""
    cout, cin, _, _ = w.shape
    taps = jnp.zeros((9, LANE, LANE), jnp.float32)
    for t in range(9):
        dy, dx = divmod(t, 3)
        taps = taps.at[t, :cin, :cout].set(w[:, :, dy, dx].T)
    return taps.astype(jnp.bfloat16)


def _fold_bn(bn, cout, eps=1e-5):
    """Eval-mode BatchNorm folded to per-channel scale / bias, zero-padded."""
    gamma, beta, mean, var = bn
    scale = gamma / jnp.sqrt(var + eps)
    bias = beta - mean * scale
    s = jnp.zeros((1, LANE), jnp.float32).at[0, :cout].set(scale)
    b = jnp.zeros((1, LANE), jnp.float32).at[0, :cout].set(bias)
    return s, b


# --------------------------------------------------------------------------
# Forward pass
# --------------------------------------------------------------------------
def dccanet_forward(x_nchw, params):
    B = x_nchw.shape[0]
    x = jnp.transpose(x_nchw, (0, 2, 3, 1)).astype(jnp.float32)   # NHWC
    patches, H1, W1, KP = _extract_conv1_patches(x)
    C = LANE

    w1_g = _conv1_as_gemm(params["conv1"])
    s1, b1 = _fold_bn(params["bn1"], params["conv1"].shape[0])
    w2_t = _conv_taps(params["conv2"])
    s2, b2 = _fold_bn(params["bn2"], params["conv2"].shape[0])
    w3_t = _conv_taps(params["conv3"])
    s3, b3 = _fold_bn(params["bn3"], params["conv3"].shape[0])

    # MaxPool2d(3, stride=2, ceil_mode=True) geometry (dense extent for kernel).
    n_mp_h = -(-(H1 - 3) // 2) + 1
    n_mp_w = -(-(W1 - 3) // 2) + 1
    Hd = 2 * (n_mp_h - 1) + 1
    Wd = 2 * (n_mp_w - 1) + 1

    def resident(shape):
        return pl.BlockSpec(shape, lambda b, _n=len(shape): (0,) * _n)

    hw = H1 * W1
    flops = 2 * B * hw * C * C * (1 + 18)
    bytes_accessed = (patches.size * 2 + (w1_g.size + w2_t.size + w3_t.size) * 2
                      + 6 * C * 4 + B * Hd * Wd * C * 4)

    dense = pl.pallas_call(
        _layer0_kernel,
        out_shape=jax.ShapeDtypeStruct((B, Hd, Wd, C), jnp.float32),
        grid_spec=pltpu.PrefetchScalarGridSpec(
            num_scalar_prefetch=0,
            grid=(B,),
            in_specs=[
                pl.BlockSpec((None, H1, W1, KP), lambda b: (b, 0, 0, 0)),
                resident((KP, C)), resident((1, C)), resident((1, C)),
                resident((9, C, C)), resident((1, C)), resident((1, C)),
                resident((9, C, C)), resident((1, C)), resident((1, C)),
            ],
            out_specs=pl.BlockSpec((None, Hd, Wd, C), lambda b: (b, 0, 0, 0)),
            # interior lives at (row 1, sublane 8) so every store is tile-aligned
            scratch_shapes=[pltpu.VMEM((H1 + 2, W1 + 16, C), jnp.float32)],
        ),
        compiler_params=pltpu.CompilerParams(
            dimension_semantics=("parallel",),
        ),
        cost_estimate=pl.CostEstimate(flops=flops, transcendentals=0,
                                      bytes_accessed=bytes_accessed),
    )(patches, w1_g, s1, b1, w2_t, s2, b2, w3_t, s3, b3)

    # stride-2 subsample of the dense max-pool (pure indexing)
    mp = dense[:, ::2, ::2, :]                      # (B, ceil pool out, ..., 128)
    Hp, Wp = mp.shape[1], mp.shape[2]
    assert Hp >= 7 and Wp >= 7, "input too small for AvgPool2d(7)"
    Ho, Wo = Hp - 6, Wp - 6

    pooled = pl.pallas_call(
        _avgpool_kernel,
        out_shape=jax.ShapeDtypeStruct((B, Ho, Wo, C), jnp.float32),
        grid_spec=pltpu.PrefetchScalarGridSpec(
            num_scalar_prefetch=0,
            grid=(B,),
            in_specs=[pl.BlockSpec((None, Hp, Wp, C), lambda b: (b, 0, 0, 0))],
            out_specs=pl.BlockSpec((None, Ho, Wo, C), lambda b: (b, 0, 0, 0)),
        ),
        compiler_params=pltpu.CompilerParams(dimension_semantics=("parallel",)),
    )(mp)

    # Dropout: eval-mode identity.  TODO(synk): training-mode dropout.
    c_out = params["conv3"].shape[0]                 # = inplanes = 128
    pooled = pooled[..., :c_out]
    # flatten in PyTorch NCHW order: x.view(B, -1) on (B, C, Ho, Wo)
    return jnp.transpose(pooled, (0, 3, 1, 2)).reshape(B, -1)


# --------------------------------------------------------------------------
# Parameters + pure-XLA f32 reference (for validation only)
# --------------------------------------------------------------------------
def init_params(key):
    ks = jax.random.split(key, 6)

    def conv_w(k, cout, cin):
        std = (2.0 / (cin * 9)) ** 0.5
        return std * jax.random.normal(k, (cout, cin, 3, 3), jnp.float32)

    def bn(k, c):
        k1, k2, k3, k4 = jax.random.split(k, 4)
        gamma = 1.0 + 0.1 * jax.random.normal(k1, (c,), jnp.float32)
        beta = 0.1 * jax.random.normal(k2, (c,), jnp.float32)
        mean = 0.1 * jax.random.normal(k3, (c,), jnp.float32)
        var = 1.0 + 0.1 * jax.random.uniform(k4, (c,), jnp.float32)
        return gamma, beta, mean, var

    return {
        "conv1": conv_w(ks[0], 64, 3), "bn1": bn(ks[1], 64),
        "conv2": conv_w(ks[2], 64, 64), "bn2": bn(ks[3], 64),
        "conv3": conv_w(ks[4], 128, 64), "bn3": bn(ks[5], 128),
    }


def reference_forward(x_nchw, params):
    def conv(x, w, stride):
        return lax.conv_general_dilated(
            x, w, window_strides=(stride, stride), padding=((1, 1), (1, 1)),
            dimension_numbers=("NCHW", "OIHW", "NCHW"),
            precision=lax.Precision.HIGHEST)

    def bn(x, p):
        g, b, m, v = p
        s = g / jnp.sqrt(v + 1e-5)
        return x * s[None, :, None, None] + (b - m * s)[None, :, None, None]

    x = jax.nn.relu(bn(conv(x_nchw, params["conv1"], 2), params["bn1"]))
    x = jax.nn.relu(bn(conv(x, params["conv2"], 1), params["bn2"]))
    x = jax.nn.relu(bn(conv(x, params["conv3"], 1), params["bn3"]))
    H1, W1 = x.shape[2], x.shape[3]
    eh = max(0, 2 * (-(-(H1 - 3) // 2)) + 3 - H1)
    ew = max(0, 2 * (-(-(W1 - 3) // 2)) + 3 - W1)
    x = lax.reduce_window(x, -jnp.inf, lax.max, (1, 1, 3, 3), (1, 1, 2, 2),
                          ((0, 0), (0, 0), (0, eh), (0, ew)))
    x = lax.reduce_window(x, 0.0, lax.add, (1, 1, 7, 7), (1, 1, 1, 1),
                          "VALID") / 49.0
    return x.reshape(x.shape[0], -1)


if __name__ == "__main__":
    key = jax.random.PRNGKey(0)
    kx, kp = jax.random.split(key)
    B, H, W = 2, 32, 32
    x = jax.random.normal(kx, (B, 3, H, W), jnp.float32)
    params = init_params(kp)

    y = dccanet_forward(x, params)
    jax.block_until_ready(y)
    assert y.shape[0] == B and y.shape[1] == 128 * 2 * 2, y.shape

    # Validate against a pure-f32 XLA emulation of the PyTorch forward
    # (kernel uses bf16 MXU operands, hence the relative tolerance).
    y_ref = reference_forward(x, params)
    err = float(jnp.max(jnp.abs(y - y_ref)))
    scale = float(jnp.max(jnp.abs(y_ref)))
    assert err <= 0.05 * scale + 0.05, (err, scale)

    print("KERNEL_OK")
</pallas_src>

<mosaic_0001>
module attributes {stable_mosaic.version = 11 : i64} {
  func.func @_layer0_kernel(%arg0: i32, %arg1: memref<1x16x16x128xbf16, #tpu.memory_space<vmem>>, %arg2: memref<128x128xbf16, #tpu.memory_space<vmem>>, %arg3: memref<1x128xf32, #tpu.memory_space<vmem>>, %arg4: memref<1x128xf32, #tpu.memory_space<vmem>>, %arg5: memref<9x128x128xbf16, #tpu.memory_space<vmem>>, %arg6: memref<1x128xf32, #tpu.memory_space<vmem>>, %arg7: memref<1x128xf32, #tpu.memory_space<vmem>>, %arg8: memref<9x128x128xbf16, #tpu.memory_space<vmem>>, %arg9: memref<1x128xf32, #tpu.memory_space<vmem>>, %arg10: memref<1x128xf32, #tpu.memory_space<vmem>>, %arg11: memref<1x15x15x128xf32, #tpu.memory_space<vmem>>, %arg12: memref<18x32x128xf32, #tpu.memory_space<vmem>>) attributes {dimension_semantics = [#tpu.dimension_semantics<parallel>], iteration_bounds = array<i64: 2>, scalar_prefetch = 0 : i64, scratch_operands = 1 : i64, tpu.core_type = #tpu.core_type<tc>, window_params = [{transform_indices = @transform_0, window_bounds = array<i64: 1, 16, 16, 128>}, {pipeline_mode = #tpu.pipeline_mode<synchronous>, transform_indices = @transform_1, window_bounds = array<i64: 128, 128>}, {pipeline_mode = #tpu.pipeline_mode<synchronous>, transform_indices = @transform_2, window_bounds = array<i64: 1, 128>}, {pipeline_mode = #tpu.pipeline_mode<synchronous>, transform_indices = @transform_3, window_bounds = array<i64: 1, 128>}, {pipeline_mode = #tpu.pipeline_mode<synchronous>, transform_indices = @transform_4, window_bounds = array<i64: 9, 128, 128>}, {pipeline_mode = #tpu.pipeline_mode<synchronous>, transform_indices = @transform_5, window_bounds = array<i64: 1, 128>}, {pipeline_mode = #tpu.pipeline_mode<synchronous>, transform_indices = @transform_6, window_bounds = array<i64: 1, 128>}, {pipeline_mode = #tpu.pipeline_mode<synchronous>, transform_indices = @transform_7, window_bounds = array<i64: 9, 128, 128>}, {pipeline_mode = #tpu.pipeline_mode<synchronous>, transform_indices = @transform_8, window_bounds = array<i64: 1, 128>}, {pipeline_mode = #tpu.pipeline_mode<synchronous>, transform_indices = @transform_9, window_bounds = array<i64: 1, 128>}, {transform_indices = @transform_10, window_bounds = array<i64: 1, 15, 15, 128>}]} {
    %cst = arith.constant 0.000000e+00 : f32
    %0 = vector.broadcast %cst : f32 to vector<18x32x128xf32>
    %c0 = arith.constant 0 : index
    %c0_0 = arith.constant 0 : index
    %c0_1 = arith.constant 0 : index
    %1 = vector.load %arg12[%c0, %c0_0, %c0_1] : memref<18x32x128xf32, #tpu.memory_space<vmem>>, vector<18x32x128xf32>
    tpu.vector_store %arg12[%c0, %c0_0, %c0_1], %0 {strides = array<i32>} : memref<18x32x128xf32, #tpu.memory_space<vmem>>, vector<18x32x128xf32>,
    %c0_2 = arith.constant 0 : index
    %c0_3 = arith.constant 0 : index
    %c0_4 = arith.constant 0 : index
    %c0_5 = arith.constant 0 : index
    %2 = vector.load %arg1[%c0_2, %c0_3, %c0_4, %c0_5] : memref<1x16x16x128xbf16, #tpu.memory_space<vmem>>, vector<1x16x16x128xbf16>
    %3 = vector.shape_cast %2 : vector<1x16x16x128xbf16> to vector<16x16x128xbf16>
    %4 = vector.shape_cast %3 : vector<16x16x128xbf16> to vector<256x128xbf16>
    %c0_6 = arith.constant 0 : index
    %c0_7 = arith.constant 0 : index
    %5 = vector.load %arg2[%c0_6, %c0_7] : memref<128x128xbf16, #tpu.memory_space<vmem>>, vector<128x128xbf16>
    %cst_8 = arith.constant dense<0.000000e+00> : vector<256x128xf32>
    %6 = tpu.matmul %4, %5, %cst_8 {dimension_numbers = #tpu.dot_dimension_numbers<[1], [0], [0], [1], [0, 0, 1, 1], [], []>} : vector<256x128xbf16>, vector<128x128xbf16>, vector<256x128xf32> -> vector<256x128xf32>
    %c0_9 = arith.constant 0 : index
    %c0_10 = arith.constant 0 : index
    %7 = vector.load %arg3[%c0_9, %c0_10] : memref<1x128xf32, #tpu.memory_space<vmem>>, vector<1x128xf32>
    %8 = vector.broadcast %7 : vector<1x128xf32> to vector<256x128xf32>
    %9 = arith.mulf %6, %8 : vector<256x128xf32>
    %c0_11 = arith.constant 0 : index
    %c0_12 = arith.constant 0 : index
    %10 = vector.load %arg4[%c0_11, %c0_12] : memref<1x128xf32, #tpu.memory_space<vmem>>, vector<1x128xf32>
    %11 = vector.broadcast %10 : vector<1x128xf32> to vector<256x128xf32>
    %12 = arith.addf %9, %11 : vector<256x128xf32>
    %cst_13 = arith.constant 0.000000e+00 : f32
    %13 = vector.broadcast %cst_13 : f32 to vector<256x128xf32>
    %14 = arith.maximumf %12, %13 : vector<256x128xf32>
    %15 = vector.shape_cast %14 : vector<256x128xf32> to vector<16x16x128xf32>
    %c1 = arith.constant 1 : index
    %c8 = arith.constant 8 : index
    %c0_14 = arith.constant 0 : index
    %16 = vector.load %arg12[%c1, %c8, %c0_14] : memref<18x32x128xf32, #tpu.memory_space<vmem>>, vector<16x16x128xf32>
    tpu.vector_store %arg12[%c1, %c8, %c0_14], %15 {strides = array<i32>} : memref<18x32x128xf32, #tpu.memory_space<vmem>>, vector<16x16x128xf32>,
    %cst_15 = arith.constant 0.000000e+00 : f32
    %17 = vector.broadcast %cst_15 : f32 to vector<256x128xf32>
    %c0_16 = arith.constant 0 : index
    %c7 = arith.constant 7 : index
    %c0_17 = arith.constant 0 : index
    %18 = vector.load %arg12[%c0_16, %c7, %c0_17] : memref<18x32x128xf32, #tpu.memory_space<vmem>>, vector<16x16x128xf32>
    %19 = vector.shape_cast %18 : vector<16x16x128xf32> to vector<256x128xf32>
    %20 = arith.truncf %19 : vector<256x128xf32> to vector<256x128xbf16>
    %c0_18 = arith.constant 0 : index
    %c0_19 = arith.constant 0 : index
    %c0_20 = arith.constant 0 : index
    %21 = vector.load %arg5[%c0_18, %c0_19, %c0_20] : memref<9x128x128xbf16, #tpu.memory_space<vmem>>, vector<1x128x128xbf16>
    %22 = vector.shape_cast %21 : vector<1x128x128xbf16> to vector<128x128xbf16>
    %cst_21 = arith.constant dense<0.000000e+00> : vector<256x128xf32>
    %23 = tpu.matmul %20, %22, %cst_21 {dimension_numbers = #tpu.dot_dimension_numbers<[1], [0], [0], [1], [0, 0, 1, 1], [], []>} : vector<256x128xbf16>, vector<128x128xbf16>, vector<256x128xf32> -> vector<256x128xf32>
    %24 = arith.addf %17, %23 : vector<256x128xf32>
    %c0_22 = arith.constant 0 : index
    %c8_23 = arith.constant 8 : index
    %c0_24 = arith.constant 0 : index
    %25 = vector.load %arg12[%c0_22, %c8_23, %c0_24] : memref<18x32x128xf32, #tpu.memory_space<vmem>>, vector<16x16x128xf32>
    %26 = vector.shape_cast %25 : vector<16x16x128xf32> to vector<256x128xf32>
    %27 = arith.truncf %26 : vector<256x128xf32> to vector<256x128xbf16>
    %c1_25 = arith.constant 1 : index
    %c0_26 = arith.constant 0 : index
    %c0_27 = arith.constant 0 : index
    %28 = vector.load %arg5[%c1_25, %c0_26, %c0_27] : memref<9x128x128xbf16, #tpu.memory_space<vmem>>, vector<1x128x128xbf16>
    %29 = vector.shape_cast %28 : vector<1x128x128xbf16> to vector<128x128xbf16>
    %cst_28 = arith.constant dense<0.000000e+00> : vector<256x128xf32>
    %30 = tpu.matmul %27, %29, %cst_28 {dimension_numbers = #tpu.dot_dimension_numbers<[1], [0], [0], [1], [0, 0, 1, 1], [], []>} : vector<256x128xbf16>, vector<128x128xbf16>, vector<256x128xf32> -> vector<256x128xf32>
    %31 = arith.addf %24, %30 : vector<256x128xf32>
    %c0_29 = arith.constant 0 : index
    %c9 = arith.constant 9 : index
    %c0_30 = arith.constant 0 : index
    %32 = vector.load %arg12[%c0_29, %c9, %c0_30] : memref<18x32x128xf32, #tpu.memory_space<vmem>>, vector<16x16x128xf32>
    %33 = vector.shape_cast %32 : vector<16x16x128xf32> to vector<256x128xf32>
    %34 = arith.truncf %33 : vector<256x128xf32> to vector<256x128xbf16>
    %c2 = arith.constant 2 : index
    %c0_31 = arith.constant 0 : index
    %c0_32 = arith.constant 0 : index
    %35 = vector.load %arg5[%c2, %c0_31, %c0_32] : memref<9x128x128xbf16, #tpu.memory_space<vmem>>, vector<1x128x128xbf16>
    %36 = vector.shape_cast %35 : vector<1x128x128xbf16> to vector<128x128xbf16>
    %cst_33 = arith.constant dense<0.000000e+00> : vector<256x128xf32>
    %37 = tpu.matmul %34, %36, %cst_33 {dimension_numbers = #tpu.dot_dimension_numbers<[1], [0], [0], [1], [0, 0, 1, 1], [], []>} : vector<256x128xbf16>, vector<128x128xbf16>, vector<256x128xf32> -> vector<256x128xf32>
    %38 = arith.addf %31, %37 : vector<256x128xf32>
    %c1_34 = arith.constant 1 : index
    %c7_35 = arith.constant 7 : index
    %c0_36 = arith.constant 0 : index
    %39 = vector.load %arg12[%c1_34, %c7_35, %c0_36] : memref<18x32x128xf32, #tpu.memory_space<vmem>>, vector<16x16x128xf32>
    %40 = vector.shape_cast %39 : vector<16x16x128xf32> to vector<256x128xf32>
    %41 = arith.truncf %40 : vector<256x128xf32> to vector<256x128xbf16>
    %c3 = arith.constant 3 : index
    %c0_37 = arith.constant 0 : index
    %c0_38 = arith.constant 0 : index
    %42 = vector.load %arg5[%c3, %c0_37, %c0_38] : memref<9x128x128xbf16, #tpu.memory_space<vmem>>, vector<1x128x128xbf16>
    %43 = vector.shape_cast %42 : vector<1x128x128xbf16> to vector<128x128xbf16>
    %cst_39 = arith.constant dense<0.000000e+00> : vector<256x128xf32>
    %44 = tpu.matmul %41, %43, %cst_39 {dimension_numbers = #tpu.dot_dimension_numbers<[1], [0], [0], [1], [0, 0, 1, 1], [], []>} : vector<256x128xbf16>, vector<128x128xbf16>, vector<256x128xf32> -> vector<256x128xf32>
    %45 = arith.addf %38, %44 : vector<256x128xf32>
    %c1_40 = arith.constant 1 : index
    %c8_41 = arith.constant 8 : index
    %c0_42 = arith.constant 0 : index
    %46 = vector.load %arg12[%c1_40, %c8_41, %c0_42] : memref<18x32x128xf32, #tpu.memory_space<vmem>>, vector<16x16x128xf32>
    %47 = vector.shape_cast %46 : vector<16x16x128xf32> to vector<256x128xf32>
    %48 = arith.truncf %47 : vector<256x128xf32> to vector<256x128xbf16>
    %c4 = arith.constant 4 : index
    %c0_43 = arith.constant 0 : index
    %c0_44 = arith.constant 0 : index
    %49 = vector.load %arg5[%c4, %c0_43, %c0_44] : memref<9x128x128xbf16, #tpu.memory_space<vmem>>, vector<1x128x128xbf16>
    %50 = vector.shape_cast %49 : vector<1x128x128xbf16> to vector<128x128xbf16>
    %cst_45 = arith.constant dense<0.000000e+00> : vector<256x128xf32>
    %51 = tpu.matmul %48, %50, %cst_45 {dimension_numbers = #tpu.dot_dimension_numbers<[1], [0], [0], [1], [0, 0, 1, 1], [], []>} : vector<256x128xbf16>, vector<128x128xbf16>, vector<256x128xf32> -> vector<256x128xf32>
    %52 = arith.addf %45, %51 : vector<256x128xf32>
    %c1_46 = arith.constant 1 : index
    %c9_47 = arith.constant 9 : index
    %c0_48 = arith.constant 0 : index
    %53 = vector.load %arg12[%c1_46, %c9_47, %c0_48] : memref<18x32x128xf32, #tpu.memory_space<vmem>>, vector<16x16x128xf32>
    %54 = vector.shape_cast %53 : vector<16x16x128xf32> to vector<256x128xf32>
    %55 = arith.truncf %54 : vector<256x128xf32> to vector<256x128xbf16>
    %c5 = arith.constant 5 : index
    %c0_49 = arith.constant 0 : index
    %c0_50 = arith.constant 0 : index
    %56 = vector.load %arg5[%c5, %c0_49, %c0_50] : memref<9x128x128xbf16, #tpu.memory_space<vmem>>, vector<1x128x128xbf16>
    %57 = vector.shape_cast %56 : vector<1x128x128xbf16> to vector<128x128xbf16>
    %cst_51 = arith.constant dense<0.000000e+00> : vector<256x128xf32>
    %58 = tpu.matmul %55, %57, %cst_51 {dimension_numbers = #tpu.dot_dimension_numbers<[1], [0], [0], [1], [0, 0, 1, 1], [], []>} : vector<256x128xbf16>, vector<128x128xbf16>, vector<256x128xf32> -> vector<256x128xf32>
    %59 = arith.addf %52, %58 : vector<256x128xf32>
    %c2_52 = arith.constant 2 : index
    %c7_53 = arith.constant 7 : index
    %c0_54 = arith.constant 0 : index
    %60 = vector.load %arg12[%c2_52, %c7_53, %c0_54] : memref<18x32x128xf32, #tpu.memory_space<vmem>>, vector<16x16x128xf32>
    %61 = vector.shape_cast %60 : vector<16x16x128xf32> to vector<256x128xf32>
    %62 = arith.truncf %61 : vector<256x128xf32> to vector<256x128xbf16>
    %c6 = arith.constant 6 : index
    %c0_55 = arith.constant 0 : index
    %c0_56 = arith.constant 0 : index
    %63 = vector.load %arg5[%c6, %c0_55, %c0_56] : memref<9x128x128xbf16, #tpu.memory_space<vmem>>, vector<1x128x128xbf16>
    %64 = vector.shape_cast %63 : vector<1x128x128xbf16> to vector<128x128xbf16>
    %cst_57 = arith.constant dense<0.000000e+00> : vector<256x128xf32>
    %65 = tpu.matmul %62, %64, %cst_57 {dimension_numbers = #tpu.dot_dimension_numbers<[1], [0], [0], [1], [0, 0, 1, 1], [], []>} : vector<256x128xbf16>, vector<128x128xbf16>, vector<256x128xf32> -> vector<256x128xf32>
    %66 = arith.addf %59, %65 : vector<256x128xf32>
    %c2_58 = arith.constant 2 : index
    %c8_59 = arith.constant 8 : index
    %c0_60 = arith.constant 0 : index
    %67 = vector.load %arg12[%c2_58, %c8_59, %c0_60] : memref<18x32x128xf32, #tpu.memory_space<vmem>>, vector<16x16x128xf32>
    %68 = vector.shape_cast %67 : vector<16x16x128xf32> to vector<256x128xf32>
    %69 = arith.truncf %68 : vector<256x128xf32> to vector<256x128xbf16>
    %c7_61 = arith.constant 7 : index
    %c0_62 = arith.constant 0 : index
    %c0_63 = arith.constant 0 : index
    %70 = vector.load %arg5[%c7_61, %c0_62, %c0_63] : memref<9x128x128xbf16, #tpu.memory_space<vmem>>, vector<1x128x128xbf16>
    %71 = vector.shape_cast %70 : vector<1x128x128xbf16> to vector<128x128xbf16>
    %cst_64 = arith.constant dense<0.000000e+00> : vector<256x128xf32>
    %72 = tpu.matmul %69, %71, %cst_64 {dimension_numbers = #tpu.dot_dimension_numbers<[1], [0], [0], [1], [0, 0, 1, 1], [], []>} : vector<256x128xbf16>, vector<128x128xbf16>, vector<256x128xf32> -> vector<256x128xf32>
    %73 = arith.addf %66, %72 : vector<256x128xf32>
    %c2_65 = arith.constant 2 : index
    %c9_66 = arith.constant 9 : index
    %c0_67 = arith.constant 0 : index
    %74 = vector.load %arg12[%c2_65, %c9_66, %c0_67] : memref<18x32x128xf32, #tpu.memory_space<vmem>>, vector<16x16x128xf32>
    %75 = vector.shape_cast %74 : vector<16x16x128xf32> to vector<256x128xf32>
    %76 = arith.truncf %75 : vector<256x128xf32> to vector<256x128xbf16>
    %c8_68 = arith.constant 8 : index
    %c0_69 = arith.constant 0 : index
    %c0_70 = arith.constant 0 : index
    %77 = vector.load %arg5[%c8_68, %c0_69, %c0_70] : memref<9x128x128xbf16, #tpu.memory_space<vmem>>, vector<1x128x128xbf16>
    %78 = vector.shape_cast %77 : vector<1x128x128xbf16> to vector<128x128xbf16>
    %cst_71 = arith.constant dense<0.000000e+00> : vector<256x128xf32>
    %79 = tpu.matmul %76, %78, %cst_71 {dimension_numbers = #tpu.dot_dimension_numbers<[1], [0], [0], [1], [0, 0, 1, 1], [], []>} : vector<256x128xbf16>, vector<128x128xbf16>, vector<256x128xf32> -> vector<256x128xf32>
    %80 = arith.addf %73, %79 : vector<256x128xf32>
    %c0_72 = arith.constant 0 : index
    %c0_73 = arith.constant 0 : index
    %81 = vector.load %arg6[%c0_72, %c0_73] : memref<1x128xf32, #tpu.memory_space<vmem>>, vector<1x128xf32>
    %82 = vector.broadcast %81 : vector<1x128xf32> to vector<256x128xf32>
    %83 = arith.mulf %80, %82 : vector<256x128xf32>
    %c0_74 = arith.constant 0 : index
    %c0_75 = arith.constant 0 : index
    %84 = vector.load %arg7[%c0_74, %c0_75] : memref<1x128xf32, #tpu.memory_space<vmem>>, vector<1x128xf32>
    %85 = vector.broadcast %84 : vector<1x128xf32> to vector<256x128xf32>
    %86 = arith.addf %83, %85 : vector<256x128xf32>
    %cst_76 = arith.constant 0.000000e+00 : f32
    %87 = vector.broadcast %cst_76 : f32 to vector<256x128xf32>
    %88 = arith.maximumf %86, %87 : vector<256x128xf32>
    %89 = vector.shape_cast %88 : vector<256x128xf32> to vector<16x16x128xf32>
    %c1_77 = arith.constant 1 : index
    %c8_78 = arith.constant 8 : index
    %c0_79 = arith.constant 0 : index
    %90 = vector.load %arg12[%c1_77, %c8_78, %c0_79] : memref<18x32x128xf32, #tpu.memory_space<vmem>>, vector<16x16x128xf32>
    tpu.vector_store %arg12[%c1_77, %c8_78, %c0_79], %89 {strides = array<i32>} : memref<18x32x128xf32, #tpu.memory_space<vmem>>, vector<16x16x128xf32>,
    %cst_80 = arith.constant 0.000000e+00 : f32
    %91 = vector.broadcast %cst_80 : f32 to vector<256x128xf32>
    %c0_81 = arith.constant 0 : index
    %c7_82 = arith.constant 7 : index
    %c0_83 = arith.constant 0 : index
    %92 = vector.load %arg12[%c0_81, %c7_82, %c0_83] : memref<18x32x128xf32, #tpu.memory_space<vmem>>, vector<16x16x128xf32>
    %93 = vector.shape_cast %92 : vector<16x16x128xf32> to vector<256x128xf32>
    %94 = arith.truncf %93 : vector<256x128xf32> to vector<256x128xbf16>
    %c0_84 = arith.constant 0 : index
    %c0_85 = arith.constant 0 : index
    %c0_86 = arith.constant 0 : index
    %95 = vector.load %arg8[%c0_84, %c0_85, %c0_86] : memref<9x128x128xbf16, #tpu.memory_space<vmem>>, vector<1x128x128xbf16>
    %96 = vector.shape_cast %95 : vector<1x128x128xbf16> to vector<128x128xbf16>
    %cst_87 = arith.constant dense<0.000000e+00> : vector<256x128xf32>
    %97 = tpu.matmul %94, %96, %cst_87 {dimension_numbers = #tpu.dot_dimension_numbers<[1], [0], [0], [1], [0, 0, 1, 1], [], []>} : vector<256x128xbf16>, vector<128x128xbf16>, vector<256x128xf32> -> vector<256x128xf32>
    %98 = arith.addf %91, %97 : vector<256x128xf32>
    %c0_88 = arith.constant 0 : index
    %c8_89 = arith.constant 8 : index
    %c0_90 = arith.constant 0 : index
    %99 = vector.load %arg12[%c0_88, %c8_89, %c0_90] : memref<18x32x128xf32, #tpu.memory_space<vmem>>, vector<16x16x128xf32>
    %100 = vector.shape_cast %99 : vector<16x16x128xf32> to vector<256x128xf32>
    %101 = arith.truncf %100 : vector<256x128xf32> to vector<256x128xbf16>
    %c1_91 = arith.constant 1 : index
    %c0_92 = arith.constant 0 : index
    %c0_93 = arith.constant 0 : index
    %102 = vector.load %arg8[%c1_91, %c0_92, %c0_93] : memref<9x128x128xbf16, #tpu.memory_space<vmem>>, vector<1x128x128xbf16>
    %103 = vector.shape_cast %102 : vector<1x128x128xbf16> to vector<128x128xbf16>
    %cst_94 = arith.constant dense<0.000000e+00> : vector<256x128xf32>
    %104 = tpu.matmul %101, %103, %cst_94 {dimension_numbers = #tpu.dot_dimension_numbers<[1], [0], [0], [1], [0, 0, 1, 1], [], []>} : vector<256x128xbf16>, vector<128x128xbf16>, vector<256x128xf32> -> vector<256x128xf32>
    %105 = arith.addf %98, %104 : vector<256x128xf32>
    %c0_95 = arith.constant 0 : index
    %c9_96 = arith.constant 9 : index
    %c0_97 = arith.constant 0 : index
    %106 = vector.load %arg12[%c0_95, %c9_96, %c0_97] : memref<18x32x128xf32, #tpu.memory_space<vmem>>, vector<16x16x128xf32>
    %107 = vector.shape_cast %106 : vector<16x16x128xf32> to vector<256x128xf32>
    %108 = arith.truncf %107 : vector<256x128xf32> to vector<256x128xbf16>
    %c2_98 = arith.constant 2 : index
    %c0_99 = arith.constant 0 : index
    %c0_100 = arith.constant 0 : index
    %109 = vector.load %arg8[%c2_98, %c0_99, %c0_100] : memref<9x128x128xbf16, #tpu.memory_space<vmem>>, vector<1x128x128xbf16>
    %110 = vector.shape_cast %109 : vector<1x128x128xbf16> to vector<128x128xbf16>
    %cst_101 = arith.constant dense<0.000000e+00> : vector<256x128xf32>
    %111 = tpu.matmul %108, %110, %cst_101 {dimension_numbers = #tpu.dot_dimension_numbers<[1], [0], [0], [1], [0, 0, 1, 1], [], []>} : vector<256x128xbf16>, vector<128x128xbf16>, vector<256x128xf32> -> vector<256x128xf32>
    %112 = arith.addf %105, %111 : vector<256x128xf32>
    %c1_102 = arith.constant 1 : index
    %c7_103 = arith.constant 7 : index
    %c0_104 = arith.constant 0 : index
    %113 = vector.load %arg12[%c1_102, %c7_103, %c0_104] : memref<18x32x128xf32, #tpu.memory_space<vmem>>, vector<16x16x128xf32>
    %114 = vector.shape_cast %113 : vector<16x16x128xf32> to vector<256x128xf32>
    %115 = arith.truncf %114 : vector<256x128xf32> to vector<256x128xbf16>
    %c3_105 = arith.constant 3 : index
    %c0_106 = arith.constant 0 : index
    %c0_107 = arith.constant 0 : index
    %116 = vector.load %arg8[%c3_105, %c0_106, %c0_107] : memref<9x128x128xbf16, #tpu.memory_space<vmem>>, vector<1x128x128xbf16>
    %117 = vector.shape_cast %116 : vector<1x128x128xbf16> to vector<128x128xbf16>
    %cst_108 = arith.constant dense<0.000000e+00> : vector<256x128xf32>
    %118 = tpu.matmul %115, %117, %cst_108 {dimension_numbers = #tpu.dot_dimension_numbers<[1], [0], [0], [1], [0, 0, 1, 1], [], []>} : vector<256x128xbf16>, vector<128x128xbf16>, vector<256x128xf32> -> vector<256x128xf32>
    %119 = arith.addf %112, %118 : vector<256x128xf32>
    %c1_109 = arith.constant 1 : index
    %c8_110 = arith.constant 8 : index
    %c0_111 = arith.constant 0 : index
    %120 = vector.load %arg12[%c1_109, %c8_110, %c0_111] : memref<18x32x128xf32, #tpu.memory_space<vmem>>, vector<16x16x128xf32>
    %121 = vector.shape_cast %120 : vector<16x16x128xf32> to vector<256x128xf32>
    %122 = arith.truncf %121 : vector<256x128xf32> to vector<256x128xbf16>
    %c4_112 = arith.constant 4 : index
    %c0_113 = arith.constant 0 : index
    %c0_114 = arith.constant 0 : index
    %123 = vector.load %arg8[%c4_112, %c0_113, %c0_114] : memref<9x128x128xbf16, #tpu.memory_space<vmem>>, vector<1x128x128xbf16>
    %124 = vector.shape_cast %123 : vector<1x128x128xbf16> to vector<128x128xbf16>
    %cst_115 = arith.constant dense<0.000000e+00> : vector<256x128xf32>
    %125 = tpu.matmul %122, %124, %cst_115 {dimension_numbers = #tpu.dot_dimension_numbers<[1], [0], [0], [1], [0, 0, 1, 1], [], []>} : vector<256x128xbf16>, vector<128x128xbf16>, vector<256x128xf32> -> vector<256x128xf32>
    %126 = arith.addf %119, %125 : vector<256x128xf32>
    %c1_116 = arith.constant 1 : index
    %c9_117 = arith.constant 9 : index
    %c0_118 = arith.constant 0 : index
    %127 = vector.load %arg12[%c1_116, %c9_117, %c0_118] : memref<18x32x128xf32, #tpu.memory_space<vmem>>, vector<16x16x128xf32>
    %128 = vector.shape_cast %127 : vector<16x16x128xf32> to vector<256x128xf32>
    %129 = arith.truncf %128 : vector<256x128xf32> to vector<256x128xbf16>
    %c5_119 = arith.constant 5 : index
    %c0_120 = arith.constant 0 : index
    %c0_121 = arith.constant 0 : index
    %130 = vector.load %arg8[%c5_119, %c0_120, %c0_121] : memref<9x128x128xbf16, #tpu.memory_space<vmem>>, vector<1x128x128xbf16>
    %131 = vector.shape_cast %130 : vector<1x128x128xbf16> to vector<128x128xbf16>
    %cst_122 = arith.constant dense<0.000000e+00> : vector<256x128xf32>
    %132 = tpu.matmul %129, %131, %cst_122 {dimension_numbers = #tpu.dot_dimension_numbers<[1], [0], [0], [1], [0, 0, 1, 1], [], []>} : vector<256x128xbf16>, vector<128x128xbf16>, vector<256x128xf32> -> vector<256x128xf32>
    %133 = arith.addf %126, %132 : vector<256x128xf32>
    %c2_123 = arith.constant 2 : index
    %c7_124 = arith.constant 7 : index
    %c0_125 = arith.constant 0 : index
    %134 = vector.load %arg12[%c2_123, %c7_124, %c0_125] : memref<18x32x128xf32, #tpu.memory_space<vmem>>, vector<16x16x128xf32>
    %135 = vector.shape_cast %134 : vector<16x16x128xf32> to vector<256x128xf32>
    %136 = arith.truncf %135 : vector<256x128xf32> to vector<256x128xbf16>
    %c6_126 = arith.constant 6 : index
    %c0_127 = arith.constant 0 : index
    %c0_128 = arith.constant 0 : index
    %137 = vector.load %arg8[%c6_126, %c0_127, %c0_128] : memref<9x128x128xbf16, #tpu.memory_space<vmem>>, vector<1x128x128xbf16>
    %138 = vector.shape_cast %137 : vector<1x128x128xbf16> to vector<128x128xbf16>
    %cst_129 = arith.constant dense<0.000000e+00> : vector<256x128xf32>
    %139 = tpu.matmul %136, %138, %cst_129 {dimension_numbers = #tpu.dot_dimension_numbers<[1], [0], [0], [1], [0, 0, 1, 1], [], []>} : vector<256x128xbf16>, vector<128x128xbf16>, vector<256x128xf32> -> vector<256x128xf32>
    %140 = arith.addf %133, %139 : vector<256x128xf32>
    %c2_130 = arith.constant 2 : index
    %c8_131 = arith.constant 8 : index
    %c0_132 = arith.constant 0 : index
    %141 = vector.load %arg12[%c2_130, %c8_131, %c0_132] : memref<18x32x128xf32, #tpu.memory_space<vmem>>, vector<16x16x128xf32>
    %142 = vector.shape_cast %141 : vector<16x16x128xf32> to vector<256x128xf32>
    %143 = arith.truncf %142 : vector<256x128xf32> to vector<256x128xbf16>
    %c7_133 = arith.constant 7 : index
    %c0_134 = arith.constant 0 : index
    %c0_135 = arith.constant 0 : index
    %144 = vector.load %arg8[%c7_133, %c0_134, %c0_135] : memref<9x128x128xbf16, #tpu.memory_space<vmem>>, vector<1x128x128xbf16>
    %145 = vector.shape_cast %144 : vector<1x128x128xbf16> to vector<128x128xbf16>
    %cst_136 = arith.constant dense<0.000000e+00> : vector<256x128xf32>
    %146 = tpu.matmul %143, %145, %cst_136 {dimension_numbers = #tpu.dot_dimension_numbers<[1], [0], [0], [1], [0, 0, 1, 1], [], []>} : vector<256x128xbf16>, vector<128x128xbf16>, vector<256x128xf32> -> vector<256x128xf32>
    %147 = arith.addf %140, %146 : vector<256x128xf32>
    %c2_137 = arith.constant 2 : index
    %c9_138 = arith.constant 9 : index
    %c0_139 = arith.constant 0 : index
    %148 = vector.load %arg12[%c2_137, %c9_138, %c0_139] : memref<18x32x128xf32, #tpu.memory_space<vmem>>, vector<16x16x128xf32>
    %149 = vector.shape_cast %148 : vector<16x16x128xf32> to vector<256x128xf32>
    %150 = arith.truncf %149 : vector<256x128xf32> to vector<256x128xbf16>
    %c8_140 = arith.constant 8 : index
    %c0_141 = arith.constant 0 : index
    %c0_142 = arith.constant 0 : index
    %151 = vector.load %arg8[%c8_140, %c0_141, %c0_142] : memref<9x128x128xbf16, #tpu.memory_space<vmem>>, vector<1x128x128xbf16>
    %152 = vector.shape_cast %151 : vector<1x128x128xbf16> to vector<128x128xbf16>
    %cst_143 = arith.constant dense<0.000000e+00> : vector<256x128xf32>
    %153 = tpu.matmul %150, %152, %cst_143 {dimension_numbers = #tpu.dot_dimension_numbers<[1], [0], [0], [1], [0, 0, 1, 1], [], []>} : vector<256x128xbf16>, vector<128x128xbf16>, vector<256x128xf32> -> vector<256x128xf32>
    %154 = arith.addf %147, %153 : vector<256x128xf32>
    %c0_144 = arith.constant 0 : index
    %c0_145 = arith.constant 0 : index
    %155 = vector.load %arg9[%c0_144, %c0_145] : memref<1x128xf32, #tpu.memory_space<vmem>>, vector<1x128xf32>
    %156 = vector.broadcast %155 : vector<1x128xf32> to vector<256x128xf32>
    %157 = arith.mulf %154, %156 : vector<256x128xf32>
    %c0_146 = arith.constant 0 : index
    %c0_147 = arith.constant 0 : index
    %158 = vector.load %arg10[%c0_146, %c0_147] : memref<1x128xf32, #tpu.memory_space<vmem>>, vector<1x128xf32>
    %159 = vector.broadcast %158 : vector<1x128xf32> to vector<256x128xf32>
    %160 = arith.addf %157, %159 : vector<256x128xf32>
    %cst_148 = arith.constant 0.000000e+00 : f32
    %161 = vector.broadcast %cst_148 : f32 to vector<256x128xf32>
    %162 = arith.maximumf %160, %161 : vector<256x128xf32>
    %163 = vector.shape_cast %162 : vector<256x128xf32> to vector<16x16x128xf32>
    %c1_149 = arith.constant 1 : index
    %c8_150 = arith.constant 8 : index
    %c0_151 = arith.constant 0 : index
    %164 = vector.load %arg12[%c1_149, %c8_150, %c0_151] : memref<18x32x128xf32, #tpu.memory_space<vmem>>, vector<16x16x128xf32>
    tpu.vector_store %arg12[%c1_149, %c8_150, %c0_151], %163 {strides = array<i32>} : memref<18x32x128xf32, #tpu.memory_space<vmem>>, vector<16x16x128xf32>,
    %c1_152 = arith.constant 1 : index
    %c8_153 = arith.constant 8 : index
    %c0_154 = arith.constant 0 : index
    %165 = vector.load %arg12[%c1_152, %c8_153, %c0_154] : memref<18x32x128xf32, #tpu.memory_space<vmem>>, vector<15x15x128xf32>
    %c1_155 = arith.constant 1 : index
    %c9_156 = arith.constant 9 : index
    %c0_157 = arith.constant 0 : index
    %166 = vector.load %arg12[%c1_155, %c9_156, %c0_157] : memref<18x32x128xf32, #tpu.memory_space<vmem>>, vector<15x15x128xf32>
    %167 = arith.maximumf %165, %166 : vector<15x15x128xf32>
    %c1_158 = arith.constant 1 : index
    %c10 = arith.constant 10 : index
    %c0_159 = arith.constant 0 : index
    %168 = vector.load %arg12[%c1_158, %c10, %c0_159] : memref<18x32x128xf32, #tpu.memory_space<vmem>>, vector<15x15x128xf32>
    %169 = arith.maximumf %167, %168 : vector<15x15x128xf32>
    %c2_160 = arith.constant 2 : index
    %c8_161 = arith.constant 8 : index
    %c0_162 = arith.constant 0 : index
    %170 = vector.load %arg12[%c2_160, %c8_161, %c0_162] : memref<18x32x128xf32, #tpu.memory_space<vmem>>, vector<15x15x128xf32>
    %171 = arith.maximumf %169, %170 : vector<15x15x128xf32>
    %c2_163 = arith.constant 2 : index
    %c9_164 = arith.constant 9 : index
    %c0_165 = arith.constant 0 : index
    %172 = vector.load %arg12[%c2_163, %c9_164, %c0_165] : memref<18x32x128xf32, #tpu.memory_space<vmem>>, vector<15x15x128xf32>
    %173 = arith.maximumf %171, %172 : vector<15x15x128xf32>
    %c2_166 = arith.constant 2 : index
    %c10_167 = arith.constant 10 : index
    %c0_168 = arith.constant 0 : index
    %174 = vector.load %arg12[%c2_166, %c10_167, %c0_168] : memref<18x32x128xf32, #tpu.memory_space<vmem>>, vector<15x15x128xf32>
    %175 = arith.maximumf %173, %174 : vector<15x15x128xf32>
    %c3_169 = arith.constant 3 : index
    %c8_170 = arith.constant 8 : index
    %c0_171 = arith.constant 0 : index
    %176 = vector.load %arg12[%c3_169, %c8_170, %c0_171] : memref<18x32x128xf32, #tpu.memory_space<vmem>>, vector<15x15x128xf32>
    %177 = arith.maximumf %175, %176 : vector<15x15x128xf32>
    %c3_172 = arith.constant 3 : index
    %c9_173 = arith.constant 9 : index
    %c0_174 = arith.constant 0 : index
    %178 = vector.load %arg12[%c3_172, %c9_173, %c0_174] : memref<18x32x128xf32, #tpu.memory_space<vmem>>, vector<15x15x128xf32>
    %179 = arith.maximumf %177, %178 : vector<15x15x128xf32>
    %c3_175 = arith.constant 3 : index
    %c10_176 = arith.constant 10 : index
    %c0_177 = arith.constant 0 : index
    %180 = vector.load %arg12[%c3_175, %c10_176, %c0_177] : memref<18x32x128xf32, #tpu.memory_space<vmem>>, vector<15x15x128xf32>
    %181 = arith.maximumf %179, %180 : vector<15x15x128xf32>
    %c0_178 = arith.constant 0 : index
    %c0_179 = arith.constant 0 : index
    %c0_180 = arith.constant 0 : index
    %c0_181 = arith.constant 0 : index
    %182 = vector.load %arg11[%c0_178, %c0_179, %c0_180, %c0_181] : memref<1x15x15x128xf32, #tpu.memory_space<vmem>>, vector<1x15x15x128xf32>
    %183 = vector.shape_cast %182 : vector<1x15x15x128xf32> to vector<15x15x128xf32>
    %184 = vector.shape_cast %181 : vector<15x15x128xf32> to vector<1x15x15x128xf32>
    tpu.vector_store %arg11[%c0_178, %c0_179, %c0_180, %c0_181], %184 {strides = array<i32>} : memref<1x15x15x128xf32, #tpu.memory_space<vmem>>, vector<1x15x15x128xf32>,
    return
  }
  func.func @transform_0(%arg0: i32) -> (i32, i32, i32, i32) {
    %c0_i32 = arith.constant 0 : i32
    %c0_i32_0 = arith.constant 0 : i32
    %c0_i32_1 = arith.constant 0 : i32
    %c0_i32_2 = arith.constant 0 : i32
    return %arg0, %c0_i32, %c0_i32_0, %c0_i32_1 : i32, i32, i32, i32
  }
  func.func @transform_1(%arg0: i32) -> (i32, i32) {
    %c0_i32 = arith.constant 0 : i32
    %c0_i32_0 = arith.constant 0 : i32
    %c0_i32_1 = arith.constant 0 : i32
    return %c0_i32, %c0_i32_0 : i32, i32
  }
  func.func @transform_2(%arg0: i32) -> (i32, i32) {
    %c0_i32 = arith.constant 0 : i32
    %c0_i32_0 = arith.constant 0 : i32
    %c0_i32_1 = arith.constant 0 : i32
    return %c0_i32, %c0_i32_0 : i32, i32
  }
  func.func @transform_3(%arg0: i32) -> (i32, i32) {
    %c0_i32 = arith.constant 0 : i32
    %c0_i32_0 = arith.constant 0 : i32
    %c0_i32_1 = arith.constant 0 : i32
    return %c0_i32, %c0_i32_0 : i32, i32
  }
  func.func @transform_4(%arg0: i32) -> (i32, i32, i32) {
    %c0_i32 = arith.constant 0 : i32
    %c0_i32_0 = arith.constant 0 : i32
    %c0_i32_1 = arith.constant 0 : i32
    %c0_i32_2 = arith.constant 0 : i32
    return %c0_i32, %c0_i32_0, %c0_i32_1 : i32, i32, i32
  }
  func.func @transform_5(%arg0: i32) -> (i32, i32) {
    %c0_i32 = arith.constant 0 : i32
    %c0_i32_0 = arith.constant 0 : i32
    %c0_i32_1 = arith.constant 0 : i32
    return %c0_i32, %c0_i32_0 : i32, i32
  }
  func.func @transform_6(%arg0: i32) -> (i32, i32) {
    %c0_i32 = arith.constant 0 : i32
    %c0_i32_0 = arith.constant 0 : i32
    %c0_i32_1 = arith.constant 0 : i32
    return %c0_i32, %c0_i32_0 : i32, i32
  }
  func.func @transform_7(%arg0: i32) -> (i32, i32, i32) {
    %c0_i32 = arith.constant 0 : i32
    %c0_i32_0 = arith.constant 0 : i32
    %c0_i32_1 = arith.constant 0 : i32
    %c0_i32_2 = arith.constant 0 : i32
    return %c0_i32, %c0_i32_0, %c0_i32_1 : i32, i32, i32
  }
  func.func @transform_8(%arg0: i32) -> (i32, i32) {
    %c0_i32 = arith.constant 0 : i32
    %c0_i32_0 = arith.constant 0 : i32
    %c0_i32_1 = arith.constant 0 : i32
    return %c0_i32, %c0_i32_0 : i32, i32
  }
  func.func @transform_9(%arg0: i32) -> (i32, i32) {
    %c0_i32 = arith.constant 0 : i32
    %c0_i32_0 = arith.constant 0 : i32
    %c0_i32_1 = arith.constant 0 : i32
    return %c0_i32, %c0_i32_0 : i32, i32
  }
  func.func @transform_10(%arg0: i32) -> (i32, i32, i32, i32) {
    %c0_i32 = arith.constant 0 : i32
    %c0_i32_0 = arith.constant 0 : i32
    %c0_i32_1 = arith.constant 0 : i32
    %c0_i32_2 = arith.constant 0 : i32
    return %arg0, %c0_i32, %c0_i32_0, %c0_i32_1 : i32, i32, i32, i32
  }
}

</mosaic_0001>

<bundles_post_ra>
// kernel: tpu_custom_call.1
= control target key start
LH: loop header
LB: loop body
LE: loop exit
PB: predicated region body
PF: predicated region fallthrough
CT: control target
= control target key end

     0   :  { %s10967_s0 = inlined_call_operand.hbm [shape: bf16[2,16,16,128], index: 0, kind: input, shape index: {}]   ;;  %s10968_s1 = inlined_call_operand.hbm [shape: bf16[128,128], index: 1, kind: input, shape index: {}]   ;;  %s10969_s2 = inlined_call_operand.vmem [shape: f32[1,128], index: 2, kind: input, shape index: {}]   ;;  %s10970_s3 = inlined_call_operand.vmem [shape: f32[1,128], index: 3, kind: input, shape index: {}]   ;;  %s10971_s4 = inlined_call_operand.hbm [shape: bf16[9,128,128], index: 4, kind: input, shape index: {}]   ;;  %s10972_s5 = inlined_call_operand.vmem [shape: f32[1,128], index: 5, kind: input, shape index: {}]   ;;  %s10973_s6 = inlined_call_operand.vmem [shape: f32[1,128], index: 6, kind: input, shape index: {}]   ;;  %s10974_s7 = inlined_call_operand.hbm [shape: bf16[9,128,128], index: 7, kind: input, shape index: {}]   ;;  %s10975_s8 = inlined_call_operand.vmem [shape: f32[1,128], index: 8, kind: input, shape index: {}]   ;;  %s10976_s9 = inlined_call_operand.vmem [shape: f32[1,128], index: 9, kind: input, shape index: {}]   ;;  %s10977_s10 = inlined_call_operand.vmem [shape: f32[2,15,15,128], index: 10, kind: output, shape index: {}]  }
   0x1   :  { %10981 = sst [smem:[#allocation13_spill]] %s10976_s9 }
   0x2   :  { %10982 = sst [smem:[#allocation14_spill]] %s10977_s10 }
   0x3   :  { %15 = vsyncpa [#allocation4], 0 }
   0x4   :  { %17 = vsyncpa [#allocation4 + $0x1], 0 }
   0x5   :  { %18 = vsyncpa [#allocation6], 0 }
   0x6   :  { %19 = vsyncpa [#allocation9], 0  ;;  %s9848_s13 = smov 0   ;;  %s9850_s14 = smov 0  }
   0x7   :  { %s9852_s15 = smov 0   ;;  %s9854_s16 = smov 0  }
   0x8 LB: > { %s9867_s17 = sadd.s32 4294967295, %s9783_s16   ;;  %p45_p0 = scmp.ne.s32.totalorder %s9775_s14, %s9771_s13  ;;  %s9783_s16 = sphi %s9854_s16, %s10999_s16   ;;  %s9779_s15 = sphi %s9852_s15, %s10998_s15   ;;  %s9775_s14 = sphi %s9850_s14, %s10997_s14   ;;  %s9771_s13 = sphi %s9848_s13, %s10996_s13  }
   0x9   : > { %p10978_p1 = scmp.eq.s32.totalorder %s9867_s17, 0  ;;  %p7294_p2 = scmp.ge.s32.totalorder %s9783_s16, 1 }
   0xa   : > { %p271_p3 = scmp.lt.s32.totalorder %s9783_s16, 3  ;;  %s9785_s20 = smov [#allocation5]  }
   0xb   : > { %p9875_p4 = por %p10978_p1, %p45_p0  ;;  %s283_s21 = sshll.u32 %s9785_s20, 4  ;;  %s9883_s21 = int_to_ptr.vmem [resolvable:$true] %s283_s21 }
   0xc   : > { %p9879_p5 = pnand %p7294_p2, %p271_p3  ;;  %s9786_s23 = smov [#allocation7]  }
   0xd   : > { %s10983_s18 = scalar_select %p9875_p4, 1, 0 }
   0xe   : > { %s10984_s19 = scalar_select %p9879_p5, 1, 0 }
   0xf   : > { %p9396_p6 = pneg %p9879_p5  ;;  %s302_s24 = sshll.u32 %s9786_s23, 4  ;;  %s9893_s24 = int_to_ptr.vmem [resolvable:$true] %s302_s24 }
  0x10   : > { %s9787_s25 = smov [#allocation8]   ;;  %s9627_s29 = scalar_lea.hbm %s10968_s1, 1024 }
  0x11   : > { %p9889_p7 = pnand %p9396_p6, %p10978_p1  ;;  %s9895_s26 = sshll.u32 %s9787_s25, 4  ;;  %s322_s26 = int_to_ptr.vmem [resolvable:$true] %s9895_s26 }
  0x12   : > { %p9628_p8 = scmp.ne.s32.totalorder %s10968_s1, %s9627_s29  ;;  %p9634_p12 = scmp.lt.u32.totalorder %s9627_s29, %s10968_s1 }
  0x13   : > { %p9905_p9 = pneg %p9889_p7 }
  0x15   : > { %p9630_p10 = pnand %p9905_p9, %p9628_p8 }
  0x17   : > { %p9631_p11 = pneg %p9630_p10 }
  0x19   : > { %p9636_p13 = pnand %p9634_p12, %p9631_p11 }
  0x1b   : > { %9639 = shalt.err (!%p9636_p13)
}
  0x1c   : > { %s9640_s23 = scalar_lea.vmem %s9883_s21, 1024  ;;  %p9648_p6 = scmp.lt.s32.totalorder %s9883_s21, %s9883_s21 }
  0x1d   : > { %p9641_p0 = scmp.ne.s32.totalorder %s9883_s21, %s9640_s23  ;;  %p9649_p1 = scmp.lt.s32.totalorder %s9640_s23, %s9640_s23 }
  0x1f   : > { %p9643_p2 = pnand %p9641_p0, %p9905_p9  ;;  %p9650_p8 = por %p9649_p1, %p9648_p6 }
  0x21   : > { %p9644_p3 = pneg %p9643_p2 }
  0x23   : > { %p9651_p10 = pnand %p9650_p8, %p9644_p3 }
  0x25   : > { %9654 = shalt.err (!%p9651_p10)
}
  0x26   : > { %s9788_s25 = smov 64   ;;  %s9789_s27 = smov 4  }
  0x27   : > { %9399 = dma.hbm_to_vmem [thread:$0]  (!%p9889_p7), %s10968_s1, 1024, %s9883_s21, [#allocation6], %s9788_s25, %s9788_s25, %s9789_s27  }
  0x28   : > { %s9655_s13 = scalar_lea.hbm %s10971_s4, 9216 }
  0x29   : > { %p9656_p1 = scmp.ne.s32.totalorder %s10971_s4, %s9655_s13  ;;  %p9662_p13 = scmp.lt.u32.totalorder %s9655_s13, %s10971_s4 }
  0x2b   : > { %p9658_p11 = pnand %p9656_p1, %p9905_p9 }
  0x2d   : > { %p9659_p12 = pneg %p9658_p11 }
  0x2f   : > { %p9664_p0 = pnand %p9662_p13, %p9659_p12 }
  0x31   : > { %9667 = shalt.err (!%p9664_p0)
}
  0x32   : > { %s9668_s21 = scalar_lea.vmem %s9893_s24, 9216  ;;  %p9676_p8 = scmp.lt.s32.totalorder %s9893_s24, %s9893_s24 }
  0x33   : > { %p9669_p2 = scmp.ne.s32.totalorder %s9893_s24, %s9668_s21  ;;  %p9677_p10 = scmp.lt.s32.totalorder %s9668_s21, %s9668_s21 }
  0x35   : > { %p9671_p3 = pnand %p9669_p2, %p9905_p9  ;;  %p9678_p1 = por %p9677_p10, %p9676_p8 }
  0x37   : > { %p9672_p6 = pneg %p9671_p3 }
  0x39   : > { %p9679_p11 = pnand %p9678_p1, %p9672_p6 }
  0x3b   : > { %9682 = shalt.err (!%p9679_p11)
}
  0x3c   : > { %9402 = dma.hbm_to_vmem [thread:$0]  (!%p9889_p7), %s10971_s4, 9216, %s9893_s24, [#allocation6], %s9788_s25, %s9788_s25, %s9789_s27  }
  0x3d   : > { %s9683_s30 = scalar_lea.hbm %s10974_s7, 9216 }
  0x3e   : > { %p9684_p12 = scmp.ne.s32.totalorder %s10974_s7, %s9683_s30  ;;  %p9690_p2 = scmp.lt.u32.totalorder %s9683_s30, %s10974_s7 }
  0x40   : > { %p9686_p13 = pnand %p9684_p12, %p9905_p9 }
  0x42   : > { %p9687_p0 = pneg %p9686_p13 }
  0x44   : > { %p9692_p3 = pnand %p9690_p2, %p9687_p0 }
  0x46   : > { %9695 = shalt.err (!%p9692_p3)
}
  0x47   : > { %s9696_s21 = scalar_lea.vmem %s322_s26, 9216  ;;  %p9704_p1 = scmp.lt.s32.totalorder %s322_s26, %s322_s26 }
  0x48   : > { %p9697_p6 = scmp.ne.s32.totalorder %s322_s26, %s9696_s21  ;;  %p9705_p11 = scmp.lt.s32.totalorder %s9696_s21, %s9696_s21 }
  0x4a   : > { %p9699_p8 = pnand %p9697_p6, %p9905_p9  ;;  %p9706_p4 = por %p9705_p11, %p9704_p1 }
  0x4c   : > { %p9700_p10 = pneg %p9699_p8 }
  0x4e   : > { %p9707_p5 = pnand %p9706_p4, %p9700_p10 }
  0x50   : > { %9710 = shalt.err (!%p9707_p5)
}
  0x51   : > { %9405 = dma.hbm_to_vmem [thread:$0]  (!%p9889_p7), %s10974_s7, 9216, %s322_s26, [#allocation9], %s9788_s25, %s9788_s25, %s9789_s27  }
  0x52   : > { %s9978_s12 = sadd.s32 1, %s9783_s16   ;;  %s32_s10 = sadd.s32 1, %s9779_s15 }
  0x53   : > { %s29_s22 = ssub.s32 %s9783_s16, %s9978_s12  ;;  %p39_p5 = scmp.ne.s32.totalorder %s9779_s15, %s9775_s14 }
  0x54   : > { %p30_p4 = scmp.eq.s32.totalorder %s29_s22, 0  ;;  %p40_p9 = scmp.eq.s32.totalorder %s9783_s16, 0 }
  0x55   : > { %p9413_p12 = scmp.lt.s32.totalorder %s9783_s16, 2  ;;  %s341_s29 = sand.u32 1, %s9779_s15  }
  0x56   : > { %s9988_s28 = scalar_select %p30_p4, %s9779_s15, %s32_s10  }
  0x57   : > { %p41_p13 = por %p40_p9, %p39_p5  ;;  %s7299_s30 = sshll.u32 %s341_s29, 7 }
  0x58   : > { %s7484_s11 = sshll.u32 %s9783_s16, 11  ;;  %s345_s26 = scalar_lea.vmem [#allocation3], %s7299_s30 }
  0x59   : > { %s9995_s23 = scalar_lea.hbm %s10967_s0, %s7484_s11  ;;  %s352_s21 = sshll.u32 %s345_s26, 4  ;;  %s9997_s21 = int_to_ptr.vmem [resolvable:$true] %s352_s21 }
  0x5a   : > { %p9999_p7 = pnand %p9413_p12, %p41_p13  ;;  %s10003_s16 = scalar_lea.sflag [#allocation4], %s341_s29 }
  0x5b   : > { %s9711_s9 = scalar_lea.hbm %s9995_s23, 2048  ;;  %s9716_s30 = scalar_lea.hbm %s10967_s0, 4096 }
  0x5c   : > { %p9712_p0 = scmp.ne.s32.totalorder %s9995_s23, %s9711_s9  ;;  %p9713_p2 = pneg %p9999_p7 }
  0x5d   : > { %p9717_p8 = scmp.lt.u32.totalorder %s9995_s23, %s10967_s0  ;;  %p9718_p10 = scmp.lt.u32.totalorder %s9716_s30, %s9711_s9 }
  0x5e   : > { %p9714_p3 = pnand %p9713_p2, %p9712_p0  ;;  %p9720_p11 = scmp.lt.u32.totalorder %s9711_s9, %s9995_s23 }
  0x5f   : > { %p9719_p1 = por %p9718_p10, %p9717_p8 }
  0x60   : > { %p9715_p6 = pneg %p9714_p3 }
  0x61   : > { %p9721_p4 = por %p9720_p11, %p9719_p1 }
  0x63   : > { %p9722_p5 = pnand %p9721_p4, %p9715_p6 }
  0x65   : > { %9725 = shalt.err (!%p9722_p5)
}
  0x66   : > { %s9726_s29 = scalar_lea.vmem %s9997_s21, 2048  ;;  %s9790_s20 = smov [#allocation3]  }
  0x67   : > { %p9727_p9 = scmp.ne.s32.totalorder %s9997_s21, %s9726_s29  ;;  %s9731_s26 = sshll.u32 %s9790_s20, 4  ;;  %s9732_s26 = int_to_ptr.vmem [resolvable:$false] %s9731_s26 }
  0x68   : > { %s9733_s22 = scalar_lea.vmem %s9732_s26, 4096  ;;  %p9734_p0 = scmp.lt.s32.totalorder %s9997_s21, %s9732_s26 }
  0x69   : > { %p9729_p12 = pnand %p9727_p9, %p9713_p2  ;;  %p9735_p3 = scmp.lt.s32.totalorder %s9733_s22, %s9726_s29 }
  0x6b   : > { %p9730_p13 = pneg %p9729_p12  ;;  %p9736_p8 = por %p9735_p3, %p9734_p0 }
  0x6d   : > { %p9737_p10 = pnand %p9736_p8, %p9730_p13 }
  0x6f   : > { %9740 = shalt.err (!%p9737_p10)
}
  0x70   : > { %9409 = dma.hbm_to_vmem [thread:$0]  (!%p9999_p7), %s9995_s23, 2048, %s9997_s21, %s10003_s16, %s9788_s25, %s9788_s25, %s9789_s27  }
  0x71   : > { %p10988_p2 = scmp.ne.s32.totalorder %s10984_s19, 0 }
  0x72   : > { %s366_s9 = sand.u32 (!%p10988_p2), 1, %s9775_s14   ;;  %p10989_p6 = scmp.ne.s32.totalorder (!%p10988_p2), %s10983_s18, 0 }
  0x73   : > { %364 = sbr.rel (%p10988_p2) target bundleno = 1999 (0x7cf), region = 60  ;;  %s7303_s10 = sshll.u32 (!%p10988_p2), %s366_s9, 7 }
  0x74   : > { %s367_s30 = scalar_lea.sflag (!%p10988_p2), [#allocation4], %s366_s9  ;;  %s10037_s11 = scalar_lea.vmem (!%p10988_p2), [#allocation3], %s7303_s10 }
  0x7a   : > { %9758 = dma.done.wait (%p10989_p6), %s367_s30, 2048  }
  0x7b   : > { %9760 = vsyncadd (%p10989_p6), %s367_s30, 4294965248  ;;  %p10990_p1 = scmp.eq.s32.totalorder %s9867_s17, 0 }
  0x7d   : > { %9762 = dma.done.wait (%p10990_p1), [#allocation6], 10240   ;;  %p10991_p7 = pmov %p10990_p1 }
  0x7e   : > { %p10992_p11 = pmov %p10990_p1 }
  0x7f   : > { %9764 = vsyncadd (%p10991_p7), [#allocation6], 4294957056 }
  0x80   : > { %9766 = dma.done.wait (%p10992_p11), [#allocation9], 9216   ;;  %p10993_p4 = pmov %p10990_p1 }
  0x81   : > { %v9791_v0 = vmov 0.0   ;;  %v9455_v1 = vld [vmem:[#allocation5] sm:$0xff]   ;;  %v9456_v2 = vld [vmem:[#allocation5 + $0x8] sm:$0xff]   ;;  %v9457_v3 = vld [vmem:[#allocation5 + $0x10] sm:$0xff]   ;;  %v9792_v33 = vmov 0.0|0.0   ;;  %s10994_s22 = sld [smem:[#allocation13_spill]] }
  0x82   : > { %9768 = vsyncadd (%p10993_p4), [#allocation9], 4294958080  ;;  %425 = vst [vmem:[#allocation2] sm:$0xff] %v9791_v0  ;;  %7941 = vmatprep.subr.bf16.mxu0 %v9455_v1  ;;  %8853 = vmatprep.subr.bf16.mxu1 %v9455_v1  ;;  %v9458_v4 = vld [vmem:[#allocation5 + $0x18] sm:$0xff]   ;;  %v9463_v5 = vld [vmem:[%s10037_s11] sm:$0xff]   ;;  %p419_p5 = scmp.lt.s32.totalorder %s9867_s17, 1 }
  0x83   : > { %426 = vst [vmem:[#allocation2 + $0x8] sm:$0xff] %v9791_v0  ;;  %427 = vst [vmem:[#allocation2 + $0x10] sm:$0xff] %v9791_v0  ;;  %7942 = vmatpush3.bf16.msra.mxu0 %v9455_v1  ;;  %8861 = vmatpush3.bf16.msra.mxu1 %v9455_v1  ;;  %v9459_v6 = vld [vmem:[#allocation5 + $0x20] sm:$0xff]   ;;  %v9460_v7 = vld [vmem:[#allocation5 + $0x28] sm:$0xff]   ;;  %s10995_s30 = sld [smem:[#allocation14_spill]] }
  0x84   : > { %428 = vst [vmem:[#allocation2 + $0x18] sm:$0xff] %v9791_v0  ;;  %429 = vst [vmem:[#allocation2 + $0x20] sm:$0xff] %v9791_v0  ;;  %7943 = vmatprep.subr.bf16.mxu0 %v9456_v2  ;;  %8854 = vmatprep.subr.bf16.mxu1 %v9456_v2  ;;  %v9471_v8 = vld [vmem:[%s10037_s11 + $0x40] sm:$0xff]   ;;  %v9461_v9 = vld [vmem:[#allocation5 + $0x30] sm:$0xff]   ;;  %s11001_s17 = smov (!%p419_p5, %s9867_s17), 1 }
  0x85   : > { %432 = vst [vmem:[#allocation2 + $0x38] sm:$0xff] %v9791_v0  ;;  %433 = vst [vmem:[#allocation2 + $0x40] sm:$0xff] %v9791_v0  ;;  %7957 = vmatprep.mubr.bf16.mxu0 %v9463_v5  ;;  %7973 = vmatprep.mubr.bf16.mxu1 %v9471_v8  ;;  %v9462_v10 = vld [vmem:[#allocation5 + $0x38] sm:$0xff]   ;;  %v9479_v11 = vld [vmem:[#allocation7 + $0x40] sm:$0xff]   ;;  %s9381_s9 = smul.u32 240, %s11001_s17 }
  0x86   : > { %436 = vst [vmem:[#allocation2 + $0x58] sm:$0xff] %v9791_v0  ;;  %437 = vst [vmem:[#allocation2 + $0x60] sm:$0xff] %v9791_v0  ;;  %v9464_v12 = vld [vmem:[%s10037_s11 + $0x8] sm:$0xff]   ;;  %v9465_v14 = vld [vmem:[%s10037_s11 + $0x10] sm:$0xff]  }
  0x87   : > { %440 = vst [vmem:[#allocation2 + $0x78] sm:$0xff] %v9791_v0  ;;  %441 = vst [vmem:[#allocation2 + $0x80] sm:$0xff] %v9791_v0  ;;  %7944 = vmatpush3.bf16.msra.mxu0 %v9456_v2  ;;  %8862 = vmatpush3.bf16.msra.mxu1 %v9456_v2  ;;  %v9472_v13 = vld [vmem:[%s10037_s11 + $0x48] sm:$0xff]   ;;  %v9473_v15 = vld [vmem:[%s10037_s11 + $0x50] sm:$0xff]  }
  0x88   : > { %444 = vst [vmem:[#allocation2 + $0x98] sm:$0xff] %v9791_v0  ;;  %445 = vst [vmem:[#allocation2 + $0xa0] sm:$0xff] %v9791_v0  ;;  %7945 = vmatprep.subr.bf16.mxu0 %v9457_v3  ;;  %8855 = vmatprep.subr.bf16.mxu1 %v9457_v3  ;;  %v9480_v16 = vld [vmem:[#allocation7 + $0x48] sm:$0xff]   ;;  %v9481_v17 = vld [vmem:[#allocation7 + $0x50] sm:$0xff]  }
  0x89   : > { %448 = vst [vmem:[#allocation2 + $0xb8] sm:$0xff] %v9791_v0  ;;  %449 = vst [vmem:[#allocation2 + $0xc0] sm:$0xff] %v9791_v0  ;;  %v9466_v18 = vld [vmem:[%s10037_s11 + $0x18] sm:$0xff]   ;;  %v9467_v20 = vld [vmem:[%s10037_s11 + $0x20] sm:$0xff]  }
  0x8a   : > { %452 = vst [vmem:[#allocation2 + $0xd8] sm:$0xff] %v9791_v0  ;;  %453 = vst [vmem:[#allocation2 + $0xe0] sm:$0xff] %v9791_v0  ;;  %v9474_v19 = vld [vmem:[%s10037_s11 + $0x58] sm:$0xff]   ;;  %v9475_v21 = vld [vmem:[%s10037_s11 + $0x60] sm:$0xff]  }
  0x8b   : > { %456 = vst [vmem:[#allocation2 + $0xf8] sm:$0xff] %v9791_v0  ;;  %457 = vst [vmem:[#allocation2 + $0x100] sm:$0xff] %v9791_v0  ;;  %7946 = vmatpush3.bf16.msra.mxu0 %v9457_v3  ;;  %8863 = vmatpush3.bf16.msra.mxu1 %v9457_v3  ;;  %v9482_v22 = vld [vmem:[#allocation7 + $0x58] sm:$0xff]   ;;  %v9468_v23 = vld [vmem:[%s10037_s11 + $0x28] sm:$0xff]  }
  0x8c   : > { %460 = vst [vmem:[#allocation2 + $0x118] sm:$0xff] %v9791_v0  ;;  %461 = vst [vmem:[#allocation2 + $0x120] sm:$0xff] %v9791_v0  ;;  %7947 = vmatprep.subr.bf16.mxu0 %v9458_v4  ;;  %8856 = vmatprep.subr.bf16.mxu1 %v9458_v4  ;;  %v9476_v24 = vld [vmem:[%s10037_s11 + $0x68] sm:$0xff]   ;;  %v9469_v25 = vld [vmem:[%s10037_s11 + $0x30] sm:$0xff]  }
  0x8d   : > { %464 = vst [vmem:[#allocation2 + $0x138] sm:$0xff] %v9791_v0  ;;  %465 = vst [vmem:[#allocation2 + $0x140] sm:$0xff] %v9791_v0  ;;  %v9477_v26 = vld [vmem:[%s10037_s11 + $0x70] sm:$0xff]   ;;  %v9470_v27 = vld [vmem:[%s10037_s11 + $0x38] sm:$0xff]  }
  0x8e   : > { %468 = vst [vmem:[#allocation2 + $0x158] sm:$0xff] %v9791_v0  ;;  %469 = vst [vmem:[#allocation2 + $0x160] sm:$0xff] %v9791_v0  ;;  %v9478_v28 = vld [vmem:[%s10037_s11 + $0x78] sm:$0xff]   ;;  %v9483_v29 = vld [vmem:[#allocation7 + $0x60] sm:$0xff]   ;;  %s10713_s11 = scalar_lea.vmem %s10995_s30, %s9381_s9 }
  0x8f   : > { %472 = vst [vmem:[#allocation2 + $0x178] sm:$0xff] %v9791_v0  ;;  %473 = vst [vmem:[#allocation2 + $0x180] sm:$0xff] %v9791_v0  ;;  %7948 = vmatpush3.bf16.msra.mxu0 %v9458_v4  ;;  %8864 = vmatpush3.bf16.msra.mxu1 %v9458_v4  ;;  %v9484_v30 = vld [vmem:[#allocation7 + $0x68] sm:$0xff]   ;;  %v9485_v31 = vld [vmem:[#allocation7 + $0x70] sm:$0xff]  }
  0x90   : > { %476 = vst [vmem:[#allocation2 + $0x198] sm:$0xff] %v9791_v0  ;;  %477 = vst [vmem:[#allocation2 + $0x1a0] sm:$0xff] %v9791_v0  ;;  %7949 = vmatprep.subr.bf16.mxu0 %v9459_v6  ;;  %8857 = vmatprep.subr.bf16.mxu1 %v9459_v6  ;;  %v9486_v32 = vld [vmem:[#allocation7 + $0x78] sm:$0xff]   ;;  %v10067_v34 = vld [vmem:[#allocation7] sm:$0xff]  }
  0x91   : > { %480 = vst [vmem:[#allocation2 + $0x1b8] sm:$0xff] %v9791_v0  ;;  %481 = vst [vmem:[#allocation2 + $0x1c0] sm:$0xff] %v9791_v0  ;;  %v10073_v35 = vld [vmem:[%s10969_s2] ss:$0 sm:$0xff] }
  0x92   : > { %484 = vst [vmem:[#allocation2 + $0x1d8] sm:$0xff] %v9791_v0  ;;  %485 = vst [vmem:[#allocation2 + $0x1e0] sm:$0xff] %v9791_v0  ;;  %v10078_v37 = vld [vmem:[%s10970_s3] ss:$0 sm:$0xff] }
  0x93   : > { %488 = vst [vmem:[#allocation2 + $0x1f8] sm:$0xff] %v9791_v0  ;;  %489 = vst [vmem:[#allocation2 + $0x200] sm:$0xff] %v9791_v0  ;;  %7950 = vmatpush3.bf16.msra.mxu0 %v9459_v6  ;;  %8865 = vmatpush3.bf16.msra.mxu1 %v9459_v6 }
  0x94   : > { %492 = vst [vmem:[#allocation2 + $0x218] sm:$0xff] %v9791_v0  ;;  %493 = vst [vmem:[#allocation2 + $0x220] sm:$0xff] %v9791_v0  ;;  %7951 = vmatprep.subr.bf16.mxu0 %v9460_v7  ;;  %8858 = vmatprep.subr.bf16.mxu1 %v9460_v7 }
  0x95   : > { %494 = vst [vmem:[#allocation2 + $0x228] sm:$0xff] %v9791_v0  ;;  %495 = vst [vmem:[#allocation2 + $0x230] sm:$0xff] %v9791_v0 }
  0x96   : > { %496 = vst [vmem:[#allocation2 + $0x238] sm:$0xff] %v9791_v0 }
  0x97   : > { %7952 = vmatpush3.bf16.msra.mxu0 %v9460_v7  ;;  %8866 = vmatpush3.bf16.msra.mxu1 %v9460_v7 }
  0x98   : > { %7953 = vmatprep.subr.bf16.mxu0 %v9461_v9  ;;  %8859 = vmatprep.subr.bf16.mxu1 %v9461_v9 }
  0x9b   : > { %7954 = vmatpush3.bf16.msra.mxu0 %v9461_v9  ;;  %8867 = vmatpush3.bf16.msra.mxu1 %v9461_v9 }
  0x9c   : > { %7955 = vmatprep.subr.bf16.mxu0 %v9462_v10  ;;  %8860 = vmatprep.subr.bf16.mxu1 %v9462_v10 }
  0x9f   : > { %7956 = vmatpush3.bf16.msra.mxu0 %v9462_v10  ;;  %8868 = vmatpush3.bf16.msra.mxu1 %v9462_v10 }
  0xa0   : > { %7989 = vmatprep.subr.bf16.mxu1 %v9479_v11 }
  0xa2   : > { %7958 = vmatmul.mubr.bf16.vlgmr.msra.gmra.mrb[0].mxu0 %v9464_v12  ;;  %7974 = vmatmul.mubr.bf16.vlgmr.msra.gmra.mrb[0].mxu1 %v9472_v13 }
  0xa3   : > { %7961 = vmatprep.mubr.bf16.mxu0 %v9465_v14  ;;  %7977 = vmatprep.mubr.bf16.mxu1 %v9473_v15 }
  0xa4   : > { %7990 = vmatpush3.bf16.msra.mxu1 %v9479_v11 }
  0xa5   : > { %7991 = vmatprep.subr.bf16.mxu1 %v9480_v16 }
  0xa8   : > { %7992 = vmatpush3.bf16.msra.mxu1 %v9480_v16  ;;  %v9488_v16 = vld [vmem:[#allocation7 + $0x8] sm:$0xff]  }
  0xa9   : > { %7993 = vmatprep.subr.bf16.mxu1 %v9481_v17 }
  0xaa   : > { %7962 = vmatmul.mubr.bf16.gmra.mrb[4].mxu0 %v9466_v18  ;;  %7978 = vmatmul.mubr.bf16.gmra.mrb[4].mxu1 %v9474_v19 }
  0xab   : > { %7965 = vmatprep.mubr.bf16.mxu0 %v9467_v20  ;;  %7981 = vmatprep.mubr.bf16.mxu1 %v9475_v21 }
  0xac   : > { %7994 = vmatpush3.bf16.msra.mxu1 %v9481_v17 }
  0xad   : > { %7995 = vmatprep.subr.bf16.mxu1 %v9482_v22 }
  0xb0   : > { %7996 = vmatpush3.bf16.msra.mxu1 %v9482_v22 }
  0xb1   : > { %7997 = vmatprep.subr.bf16.mxu1 %v9483_v29 }
  0xb2   : > { %7966 = vmatmul.mubr.bf16.gmra.mrb[8].mxu0 %v9468_v23  ;;  %7982 = vmatmul.mubr.bf16.gmra.mrb[8].mxu1 %v9476_v24 }
  0xb3   : > { %7969 = vmatprep.mubr.bf16.mxu0 %v9469_v25  ;;  %7985 = vmatprep.mubr.bf16.mxu1 %v9477_v26 }
  0xb4   : > { %7998 = vmatpush3.bf16.msra.mxu1 %v9483_v29 }
  0xb5   : > { %7999 = vmatprep.subr.bf16.mxu1 %v9484_v30 }
  0xb8   : > { %8000 = vmatpush3.bf16.msra.mxu1 %v9484_v30 }
  0xb9   : > { %8001 = vmatprep.subr.bf16.mxu1 %v9485_v31 }
  0xba   : > { %7970 = vmatmul.mubr.bf16.gmra.mrb[12].mxu0 %v9470_v27  ;;  %7986 = vmatmul.mubr.bf16.gmra.mrb[12].mxu1 %v9478_v28 }
  0xbb   : > { %8005 = vmatprep.mubr.bf16.mxu1 %v9792_v33 }
  0xbc   : > { %8002 = vmatpush3.bf16.msra.mxu1 %v9485_v31 }
  0xbd   : > { %8003 = vmatprep.subr.bf16.mxu1 %v9486_v32 }
  0xc0   : > { %8004 = vmatpush3.bf16.msra.mxu1 %v9486_v32 }
  0xc1   : > { %8037 = vmatprep.subr.bf16.mxu1 %v10067_v34 }
 0x175   : > { %v7959_v36 = vpop.f32.mrb[0].mxu0  ;;  %v7975_v38 = vpop.f32.mrb[0].mxu1 }
 0x176   : > { %v859_v39 = vmul.f32 %v7959_v36, %v10073_v35  ;;  %v723_v40 = vpop.f32.mrb[1].mxu0  ;;  %v875_v41 = vmul.f32 %v7975_v38, %v10073_v35  ;;  %v787_v42 = vpop.f32.mrb[1].mxu1 }
 0x177   : > { %v857_v43 = vmul.f32 %v10073_v35, %v723_v40  ;;  %v7960_v44 = vpop.f32.mrb[2].mxu0  ;;  %v873_v45 = vmul.f32 %v10073_v35, %v787_v42  ;;  %v7976_v46 = vpop.f32.mrb[2].mxu1 }
 0x178   : > { %v898_v47 = vadd.f32 %v10078_v37, %v859_v39  ;;  %v860_v48 = vmul.f32 %v7960_v44, %v10073_v35  ;;  %v726_v49 = vpop.f32.mrb[3].mxu0  ;;  %v914_v50 = vadd.f32 %v10078_v37, %v875_v41  ;;  %v876_v51 = vmul.f32 %v7976_v46, %v10073_v35  ;;  %v790_v52 = vpop.f32.mrb[3].mxu1  ;;  %v9489_v39 = vld [vmem:[#allocation7 + $0x10] sm:$0xff]  }
 0x179   : > { %v896_v53 = vadd.f32 %v10078_v37, %v857_v43  ;;  %v858_v54 = vmul.f32 %v10073_v35, %v726_v49  ;;  %v912_v55 = vadd.f32 %v10078_v37, %v873_v45  ;;  %v874_v56 = vmul.f32 %v10073_v35, %v790_v52 }
 0x17a   : > { %v930_v57 = vmax.f32 %v898_v47, 0.0  ;;  %v899_v58 = vadd.f32 %v10078_v37, %v860_v48  ;;  %v946_v59 = vmax.f32 %v914_v50, 0.0  ;;  %v915_v60 = vadd.f32 %v10078_v37, %v876_v51 }
 0x17b   : > { %v928_v61 = vmax.f32 %v896_v53, 0.0  ;;  %v897_v62 = vadd.f32 %v10078_v37, %v858_v54  ;;  %v944_v63 = vmax.f32 %v912_v55, 0.0  ;;  %v913_v0 = vadd.f32 %v10078_v37, %v874_v56  ;;  %v9490_v56 = vld [vmem:[#allocation7 + $0x18] sm:$0xff]  }
 0x17c   : > { %963 = vst [vmem:[#allocation2 + $0x48] sm:$0xff] %v930_v57  ;;  %v931_v1 = vmax.f32 %v899_v58, 0.0  ;;  %979 = vst [vmem:[#allocation2 + $0x148] sm:$0xff] %v946_v59  ;;  %v947_v2 = vmax.f32 %v915_v60, 0.0 }
 0x17d   : > { %961 = vst [vmem:[#allocation2 + $0x28] sm:$0xff] %v928_v61  ;;  %v929_v3 = vmax.f32 %v897_v62, 0.0  ;;  %v7963_v4 = vpop.f32.mrb[4].mxu0  ;;  %977 = vst [vmem:[#allocation2 + $0x128] sm:$0xff] %v944_v63  ;;  %v945_v5 = vmax.f32 %v913_v0, 0.0  ;;  %v7979_v6 = vpop.f32.mrb[4].mxu1 }
 0x17e   : > { %964 = vst [vmem:[#allocation2 + $0x50] sm:$0xff] %v931_v1  ;;  %v863_v7 = vmul.f32 %v7963_v4, %v10073_v35  ;;  %v739_v8 = vpop.f32.mrb[5].mxu0  ;;  %v1091_v9 = vpack.c.bf16 %v931_v1, %v930_v57  ;;  %980 = vst [vmem:[#allocation2 + $0x150] sm:$0xff] %v947_v2  ;;  %v879_v10 = vmul.f32 %v7979_v6, %v10073_v35  ;;  %v803_v11 = vpop.f32.mrb[5].mxu1 }
 0x17f   : > { %v10098_v12 = vpack.c.bf16 %v947_v2, %v946_v59  ;;  %962 = vst [vmem:[#allocation2 + $0x30] sm:$0xff] %v929_v3  ;;  %v861_v13 = vmul.f32 %v10073_v35, %v739_v8  ;;  %v7964_v14 = vpop.f32.mrb[6].mxu0  ;;  %v1090_v15 = vpack.c.bf16 %v929_v3, %v928_v61  ;;  %978 = vst [vmem:[#allocation2 + $0x130] sm:$0xff] %v945_v5  ;;  %v7980_v18 = vpop.f32.mrb[6].mxu1 }
 0x180   : > { %v877_v17 = vmul.f32 %v10073_v35, %v803_v11  ;;  %v10102_v19 = vpack.c.bf16 %v945_v5, %v944_v63  ;;  %v902_v20 = vadd.f32 %v10078_v37, %v863_v7  ;;  %v864_v21 = vmul.f32 %v7964_v14, %v10073_v35  ;;  %v742_v22 = vpop.f32.mrb[7].mxu0  ;;  %v806_v25 = vpop.f32.mrb[7].mxu1 }
 0x181   : > { %v918_v23 = vadd.f32 %v10078_v37, %v879_v10  ;;  %v880_v24 = vmul.f32 %v7980_v18, %v10073_v35  ;;  %v900_v26 = vadd.f32 %v10078_v37, %v861_v13  ;;  %v862_v27 = vmul.f32 %v10073_v35, %v742_v22  ;;  %8006 = vmatmul.mubr.bf16.vlgmr.msra.gmra.mrb[16].mxu1 %v1090_v15  ;;  %v9491_v15 = vld [vmem:[#allocation7 + $0x20] sm:$0xff]  }
 0x182   : > { %v916_v28 = vadd.f32 %v10078_v37, %v877_v17  ;;  %v878_v29 = vmul.f32 %v10073_v35, %v806_v25  ;;  %v934_v30 = vmax.f32 %v902_v20, 0.0  ;;  %v903_v31 = vadd.f32 %v10078_v37, %v864_v21  ;;  %8038 = vmatpush3.bf16.msra.mxu1 %v10067_v34  ;;  %8009 = vmatprep.mubr.bf16.mxu1 %v1091_v9 }
 0x183   : > { %v950_v32 = vmax.f32 %v918_v23, 0.0  ;;  %v919_v33 = vadd.f32 %v10078_v37, %v880_v24  ;;  %v932_v36 = vmax.f32 %v900_v26, 0.0  ;;  %v901_v38 = vadd.f32 %v10078_v37, %v862_v27  ;;  %8039 = vmatprep.subr.bf16.mxu1 %v9488_v16 }
 0x184   : > { %v948_v40 = vmax.f32 %v916_v28, 0.0  ;;  %v917_v41 = vadd.f32 %v10078_v37, %v878_v29  ;;  %967 = vst [vmem:[#allocation2 + $0x88] sm:$0xff] %v934_v30  ;;  %v935_v42 = vmax.f32 %v903_v31, 0.0 }
 0x185   : > { %983 = vst [vmem:[#allocation2 + $0x188] sm:$0xff] %v950_v32  ;;  %v951_v43 = vmax.f32 %v919_v33, 0.0  ;;  %965 = vst [vmem:[#allocation2 + $0x68] sm:$0xff] %v932_v36  ;;  %v933_v44 = vmax.f32 %v901_v38, 0.0  ;;  %v7967_v45 = vpop.f32.mrb[8].mxu0  ;;  %v7983_v46 = vpop.f32.mrb[8].mxu1 }
 0x186   : > { %981 = vst [vmem:[#allocation2 + $0x168] sm:$0xff] %v948_v40  ;;  %v949_v34 = vmax.f32 %v917_v41, 0.0  ;;  %968 = vst [vmem:[#allocation2 + $0x90] sm:$0xff] %v935_v42  ;;  %v867_v47 = vmul.f32 %v7967_v45, %v10073_v35  ;;  %v755_v48 = vpop.f32.mrb[9].mxu0  ;;  %8040 = vmatpush3.bf16.msra.mxu1 %v9488_v16  ;;  %v1093_v49 = vpack.c.bf16 %v935_v42, %v934_v30  ;;  %v819_v51 = vpop.f32.mrb[9].mxu1 }
 0x187   : > { %984 = vst [vmem:[#allocation2 + $0x190] sm:$0xff] %v951_v43  ;;  %v883_v50 = vmul.f32 %v7983_v46, %v10073_v35  ;;  %v10119_v52 = vpack.c.bf16 %v951_v43, %v950_v32  ;;  %966 = vst [vmem:[#allocation2 + $0x70] sm:$0xff] %v933_v44  ;;  %v865_v53 = vmul.f32 %v10073_v35, %v755_v48  ;;  %v7968_v54 = vpop.f32.mrb[10].mxu0  ;;  %8041 = vmatprep.subr.bf16.mxu1 %v9489_v39  ;;  %v7984_v58 = vpop.f32.mrb[10].mxu1 }
 0x188   : > { %v1092_v55 = vpack.c.bf16 %v933_v44, %v932_v36  ;;  %982 = vst [vmem:[#allocation2 + $0x170] sm:$0xff] %v949_v34  ;;  %v881_v57 = vmul.f32 %v10073_v35, %v819_v51  ;;  %v10123_v59 = vpack.c.bf16 %v949_v34, %v948_v40  ;;  %v906_v60 = vadd.f32 %v10078_v37, %v867_v47  ;;  %v758_v62 = vpop.f32.mrb[11].mxu0  ;;  %v822_v1 = vpop.f32.mrb[11].mxu1  ;;  %v9492_v36 = vld [vmem:[#allocation7 + $0x28] sm:$0xff]  }
 0x189   : > { %v868_v61 = vmul.f32 %v7968_v54, %v10073_v35  ;;  %v922_v63 = vadd.f32 %v10078_v37, %v883_v50  ;;  %v884_v0 = vmul.f32 %v7984_v58, %v10073_v35  ;;  %v904_v2 = vadd.f32 %v10078_v37, %v865_v53 }
 0x18a   : > { %v866_v3 = vmul.f32 %v10073_v35, %v758_v62  ;;  %8010 = vmatmul.mubr.bf16.gmra.mrb[20].mxu1 %v1092_v55  ;;  %v920_v4 = vadd.f32 %v10078_v37, %v881_v57  ;;  %v882_v5 = vmul.f32 %v10073_v35, %v822_v1  ;;  %v938_v6 = vmax.f32 %v906_v60, 0.0  ;;  %v9493_v57 = vld [vmem:[#allocation7 + $0x30] sm:$0xff]   ;;  %v9495_v1 = vld [vmem:[#allocation7 + $0x80] sm:$0xff]  }
 0x18b   : > { %v907_v7 = vadd.f32 %v10078_v37, %v868_v61  ;;  %8013 = vmatprep.mubr.bf16.mxu1 %v1093_v49  ;;  %8042 = vmatpush3.bf16.msra.mxu1 %v9489_v39  ;;  %v954_v8 = vmax.f32 %v922_v63, 0.0  ;;  %v923_v9 = vadd.f32 %v10078_v37, %v884_v0  ;;  %v936_v10 = vmax.f32 %v904_v2, 0.0  ;;  %v9494_v0 = vld [vmem:[#allocation7 + $0x38] sm:$0xff]  }
 0x18c   : > { %v905_v11 = vadd.f32 %v10078_v37, %v866_v3  ;;  %8043 = vmatprep.subr.bf16.mxu1 %v9490_v56  ;;  %v952_v13 = vmax.f32 %v920_v4, 0.0  ;;  %v921_v14 = vadd.f32 %v10078_v37, %v882_v5  ;;  %971 = vst [vmem:[#allocation2 + $0xc8] sm:$0xff] %v938_v6  ;;  %v993_v3 = vld [vmem:[#allocation2 + $0x7] sm:$0xff]  ;;  %v994_v4 = vld [vmem:[#allocation2 + $0xf] sm:$0xff] }
 0x18d   : > { %v939_v16 = vmax.f32 %v907_v7, 0.0  ;;  %987 = vst [vmem:[#allocation2 + $0x1c8] sm:$0xff] %v954_v8  ;;  %v955_v17 = vmax.f32 %v923_v9, 0.0  ;;  %969 = vst [vmem:[#allocation2 + $0xa8] sm:$0xff] %v936_v10  ;;  %v7971_v20 = vpop.f32.mrb[12].mxu0  ;;  %v7987_v22 = vpop.f32.mrb[12].mxu1  ;;  %v1025_v5 = vpack.c.bf16 %v994_v4, %v993_v3 }
 0x18e   : > { %v937_v18 = vmax.f32 %v905_v11, 0.0  ;;  %985 = vst [vmem:[#allocation2 + $0x1a8] sm:$0xff] %v952_v13  ;;  %v953_v21 = vmax.f32 %v921_v14, 0.0  ;;  %v871_v23 = vmul.f32 %v7971_v20, %v10073_v35  ;;  %v771_v24 = vpop.f32.mrb[13].mxu0  ;;  %v887_v26 = vmul.f32 %v7987_v22, %v10073_v35  ;;  %v835_v27 = vpop.f32.mrb[13].mxu1  ;;  %v998_v7 = vld [vmem:[#allocation2 + $0x4f] sm:$0xff] }
 0x18f   : > { %972 = vst [vmem:[#allocation2 + $0xd0] sm:$0xff] %v939_v16  ;;  %v1095_v25 = vpack.c.bf16 %v939_v16, %v938_v6  ;;  %8044 = vmatpush3.bf16.msra.mxu1 %v9490_v56  ;;  %988 = vst [vmem:[#allocation2 + $0x1d0] sm:$0xff] %v955_v17  ;;  %v10139_v28 = vpack.c.bf16 %v955_v17, %v954_v8  ;;  %v869_v29 = vmul.f32 %v10073_v35, %v771_v24  ;;  %v7972_v30 = vpop.f32.mrb[14].mxu0  ;;  %v7988_v33 = vpop.f32.mrb[14].mxu1  ;;  %v996_v6 = vld [vmem:[#allocation2 + $0x2f] sm:$0xff]  ;;  %v995_v8 = vld [vmem:[#allocation2 + $0x27] sm:$0xff] }
 0x190   : > { %970 = vst [vmem:[#allocation2 + $0xb0] sm:$0xff] %v937_v18  ;;  %v1094_v31 = vpack.c.bf16 %v937_v18, %v936_v10  ;;  %986 = vst [vmem:[#allocation2 + $0x1b0] sm:$0xff] %v953_v21  ;;  %8045 = vmatprep.subr.bf16.mxu1 %v9491_v15  ;;  %v885_v32 = vmul.f32 %v10073_v35, %v835_v27  ;;  %v10143_v38 = vpack.c.bf16 %v953_v21, %v952_v13  ;;  %v774_v41 = vpop.f32.mrb[15].mxu0  ;;  %v838_v44 = vpop.f32.mrb[15].mxu1  ;;  %v9496_v10 = vld [vmem:[#allocation7 + $0x88] sm:$0xff]   ;;  %v9497_v13 = vld [vmem:[#allocation7 + $0x90] sm:$0xff]  }
 0x191   : > { %v910_v39 = vadd.f32 %v10078_v37, %v871_v23  ;;  %v872_v40 = vmul.f32 %v7972_v30, %v10073_v35  ;;  %v926_v42 = vadd.f32 %v10078_v37, %v887_v26  ;;  %v888_v43 = vmul.f32 %v7988_v33, %v10073_v35  ;;  %v1000_v14 = vld [vmem:[#allocation2 + $0x6f] sm:$0xff]  ;;  %v999_v16 = vld [vmem:[#allocation2 + $0x67] sm:$0xff]  ;;  %v9498_v20 = vld [vmem:[#allocation7 + $0x98] sm:$0xff]  }
 0x192   : > { %v908_v45 = vadd.f32 %v10078_v37, %v869_v29  ;;  %v870_v34 = vmul.f32 %v10073_v35, %v774_v41  ;;  %8014 = vmatmul.mubr.bf16.gmra.mrb[24].mxu1 %v1094_v31  ;;  %v924_v46 = vadd.f32 %v10078_v37, %v885_v32  ;;  %v886_v47 = vmul.f32 %v10073_v35, %v838_v44  ;;  %v1001_v18 = vld [vmem:[#allocation2 + $0x87] sm:$0xff]  ;;  %v9501_v31 = vld [vmem:[#allocation7 + $0xb0] sm:$0xff]   ;;  %v9502_v41 = vld [vmem:[#allocation7 + $0xb8] sm:$0xff]  }
 0x193   : > { %v942_v48 = vmax.f32 %v910_v39, 0.0  ;;  %v911_v49 = vadd.f32 %v10078_v37, %v872_v40  ;;  %8017 = vmatprep.mubr.bf16.mxu1 %v1095_v25  ;;  %8046 = vmatpush3.bf16.msra.mxu1 %v9491_v15  ;;  %v958_v50 = vmax.f32 %v926_v42, 0.0  ;;  %v927_v51 = vadd.f32 %v10078_v37, %v888_v43  ;;  %v1002_v15 = vld [vmem:[#allocation2 + $0x8f] sm:$0xff]  ;;  %v9499_v22 = vld [vmem:[#allocation7 + $0xa0] sm:$0xff]  }
 0x194   : > { %v940_v53 = vmax.f32 %v908_v45, 0.0  ;;  %v909_v54 = vadd.f32 %v10078_v37, %v870_v34  ;;  %v956_v55 = vmax.f32 %v924_v46, 0.0  ;;  %v925_v56 = vadd.f32 %v10078_v37, %v886_v47  ;;  %8047 = vmatprep.subr.bf16.mxu1 %v9492_v36  ;;  %v1003_v25 = vld [vmem:[#allocation2 + $0xa7] sm:$0xff]  ;;  %v1012_v45 = vld [vmem:[#allocation2 + $0x12f] sm:$0xff] }
 0x195   : > { %975 = vst [vmem:[#allocation2 + $0x108] sm:$0xff] %v942_v48  ;;  %v943_v58 = vmax.f32 %v911_v49, 0.0  ;;  %991 = vst [vmem:[#allocation2 + $0x208] sm:$0xff] %v958_v50  ;;  %v959_v35 = vmax.f32 %v927_v51, 0.0  ;;  %v10168_v9 = vpack.c.bf16 %v996_v6, %v995_v8  ;;  %v10174_v17 = vpack.c.bf16 %v1000_v14, %v999_v16  ;;  %v1005_v27 = vld [vmem:[#allocation2 + $0xc7] sm:$0xff]  ;;  %v1014_v46 = vld [vmem:[#allocation2 + $0x14f] sm:$0xff] }
 0x196   : > { %973 = vst [vmem:[#allocation2 + $0xe8] sm:$0xff] %v940_v53  ;;  %v941_v60 = vmax.f32 %v909_v54, 0.0  ;;  %989 = vst [vmem:[#allocation2 + $0x1e8] sm:$0xff] %v956_v55  ;;  %v957_v61 = vmax.f32 %v925_v56, 0.0  ;;  %v10176_v21 = vpack.c.bf16 %v1002_v15, %v1001_v18  ;;  %v1006_v24 = vld [vmem:[#allocation2 + $0xcf] sm:$0xff]  ;;  %v9503_v43 = vld [vmem:[#allocation7 + $0xc0] sm:$0xff]  }
 0x197   : > { %976 = vst [vmem:[#allocation2 + $0x110] sm:$0xff] %v943_v58  ;;  %v1097_v62 = vpack.c.bf16 %v943_v58, %v942_v48  ;;  %992 = vst [vmem:[#allocation2 + $0x210] sm:$0xff] %v959_v35  ;;  %8048 = vmatpush3.bf16.msra.mxu1 %v9492_v36  ;;  %v10159_v2 = vpack.c.bf16 %v959_v35, %v958_v50  ;;  %v1004_v23 = vld [vmem:[#allocation2 + $0xaf] sm:$0xff]  ;;  %v10182_v30 = vpack.c.bf16 %v1006_v24, %v1005_v27  ;;  %v1011_v44 = vld [vmem:[#allocation2 + $0x127] sm:$0xff] }
 0x198   : > { %974 = vst [vmem:[#allocation2 + $0xf0] sm:$0xff] %v941_v60  ;;  %v1096_v63 = vpack.c.bf16 %v941_v60, %v940_v53  ;;  %990 = vst [vmem:[#allocation2 + $0x1f0] sm:$0xff] %v957_v61  ;;  %8049 = vmatprep.subr.bf16.mxu1 %v9493_v57  ;;  %v10157_v37 = vpack.c.bf16 %v957_v61, %v956_v55  ;;  %v10180_v26 = vpack.c.bf16 %v1004_v23, %v1003_v25  ;;  %v9500_v29 = vld [vmem:[#allocation7 + $0xa8] sm:$0xff]   ;;  %v1543_v6 = vld [vmem:[#allocation2 + $0x31] sm:$0xff] }
 0x199   : > { %v1013_v34 = vld [vmem:[#allocation2 + $0x147] sm:$0xff]  ;;  %v10192_v47 = vpack.c.bf16 %v1012_v45, %v1011_v44  ;;  %v1016_v50 = vld [vmem:[#allocation2 + $0x16f] sm:$0xff]  ;;  %v9506_v23 = vld [vmem:[#allocation7 + $0xd8] sm:$0xff]  }
 0x19a   : > { %8018 = vmatmul.mubr.bf16.gmra.mrb[28].mxu1 %v1096_v63  ;;  %v10194_v48 = vpack.c.bf16 %v1014_v46, %v1013_v34  ;;  %v1015_v49 = vld [vmem:[#allocation2 + $0x167] sm:$0xff]  ;;  %v1018_v53 = vld [vmem:[#allocation2 + $0x18f] sm:$0xff] }
 0x19b   : > { %8021 = vmatprep.mubr.bf16.mxu1 %v1097_v62  ;;  %8050 = vmatpush3.bf16.msra.mxu1 %v9493_v57  ;;  %v1017_v51 = vld [vmem:[#allocation2 + $0x187] sm:$0xff]  ;;  %v10198_v54 = vpack.c.bf16 %v1016_v50, %v1015_v49  ;;  %v1020_v57 = vld [vmem:[#allocation2 + $0x1af] sm:$0xff]  ;;  %v9510_v49 = vld [vmem:[#allocation7 + $0xf8] sm:$0xff]  }
 0x19c   : > { %8051 = vmatprep.subr.bf16.mxu1 %v9494_v0  ;;  %v1009_v40 = vld [vmem:[#allocation2 + $0x107] sm:$0xff]  ;;  %v10200_v55 = vpack.c.bf16 %v1018_v53, %v1017_v51  ;;  %v1022_v35 = vld [vmem:[#allocation2 + $0x1cf] sm:$0xff] }
 0x19d   : > { %v1007_v36 = vld [vmem:[#allocation2 + $0xe7] sm:$0xff]  ;;  %v1541_v63 = vld [vmem:[#allocation2 + $0x11] sm:$0xff] }
 0x19e   : > { %v1010_v33 = vld [vmem:[#allocation2 + $0x10f] sm:$0xff]  ;;  %v1019_v56 = vld [vmem:[#allocation2 + $0x1a7] sm:$0xff] }
 0x19f   : > { %8052 = vmatpush3.bf16.msra.mxu1 %v9494_v0  ;;  %v1008_v32 = vld [vmem:[#allocation2 + $0xef] sm:$0xff]  ;;  %v10188_v42 = vpack.c.bf16 %v1010_v33, %v1009_v40  ;;  %v1021_v58 = vld [vmem:[#allocation2 + $0x1c7] sm:$0xff]  ;;  %v10204_v60 = vpack.c.bf16 %v1020_v57, %v1019_v56 }
 0x1a0   : > { %8085 = vmatprep.subr.bf16.mxu1 %v9495_v1  ;;  %v10186_v39 = vpack.c.bf16 %v1008_v32, %v1007_v36  ;;  %v10206_v61 = vpack.c.bf16 %v1022_v35, %v1021_v58  ;;  %v1540_v62 = vld [vmem:[#allocation2 + $0x9] sm:$0xff]  ;;  %v1545_v8 = vld [vmem:[#allocation2 + $0x51] sm:$0xff]  ;;  %v9507_v25 = vld [vmem:[#allocation7 + $0xe0] sm:$0xff]  }
 0x1a1   : > { %v1023_v0 = vld [vmem:[#allocation2 + $0x1e7] sm:$0xff]  ;;  %v1572_v3 = vpack.c.bf16 %v1541_v63, %v1540_v62  ;;  %v9505_v14 = vld [vmem:[#allocation7 + $0xd0] sm:$0xff]  }
 0x1a2   : > { %8022 = vmatmul.mubr.bf16.gmra.mrb[32].mxu1 %v10102_v19  ;;  %v1546_v15 = vld [vmem:[#allocation2 + $0x69] sm:$0xff]  ;;  %v1547_v16 = vld [vmem:[#allocation2 + $0x71] sm:$0xff]  ;;  %v9511_v51 = vld [vmem:[#allocation7 + $0x100] sm:$0xff]  }
 0x1a3   : > { %8025 = vmatprep.mubr.bf16.mxu1 %v10098_v12  ;;  %v997_v12 = vld [vmem:[#allocation2 + $0x47] sm:$0xff]  ;;  %v1553_v32 = vld [vmem:[#allocation2 + $0xd1] sm:$0xff] }
 0x1a4   : > { %v10170_v11 = vpack.c.bf16 %v998_v7, %v997_v12  ;;  %v1544_v7 = vld [vmem:[#allocation2 + $0x49] sm:$0xff]  ;;  %v1555_v44 = vld [vmem:[#allocation2 + $0xf1] sm:$0xff] }
 0x1a5   : > { %v1548_v18 = vld [vmem:[#allocation2 + $0x89] sm:$0xff]  ;;  %v1557_v34 = vld [vmem:[#allocation2 + $0x111] sm:$0xff] }
 0x1a6   : > { %v1550_v27 = vld [vmem:[#allocation2 + $0xa9] sm:$0xff]  ;;  %v1559_v56 = vld [vmem:[#allocation2 + $0x131] sm:$0xff] }
 0x1a7   : > { %v9508_v36 = vld [vmem:[#allocation7 + $0xe8] sm:$0xff]   ;;  %v1561_v58 = vld [vmem:[#allocation2 + $0x151] sm:$0xff] }
 0x1a8   : > { %v1556_v45 = vld [vmem:[#allocation2 + $0x109] sm:$0xff] }
 0x1a9   : > { %v10233_v50 = vpack.c.bf16 %v1557_v34, %v1556_v45  ;;  %v1558_v53 = vld [vmem:[#allocation2 + $0x129] sm:$0xff] }
 0x1aa   : > { %8026 = vmatmul.mubr.bf16.gmra.mrb[36].mxu1 %v10123_v59  ;;  %v1560_v57 = vld [vmem:[#allocation2 + $0x149] sm:$0xff]  ;;  %v10237_v35 = vpack.c.bf16 %v1559_v56, %v1558_v53 }
 0x1ab   : > { %8029 = vmatprep.mubr.bf16.mxu1 %v10119_v52  ;;  %v10239_v62 = vpack.c.bf16 %v1561_v58, %v1560_v57  ;;  %v1562_v63 = vld [vmem:[#allocation2 + $0x169] sm:$0xff] }
 0x1ac   : > { %v2153_v45 = vld [vmem:[#allocation2 + $0x30] sm:$0xff]  ;;  %v2154_v57 = vld [vmem:[#allocation2 + $0x48] sm:$0xff] }
 0x1ad   : > { %v2155_v53 = vld [vmem:[#allocation2 + $0x50] sm:$0xff] }
 0x1ae   : > { %v2157_v56 = vld [vmem:[#allocation2 + $0x70] sm:$0xff]  ;;  %v10276_v58 = vpack.c.bf16 %v2155_v53, %v2154_v57  ;;  %v9526_v53 = vld [vmem:[#allocation7 + $0x178] sm:$0xff]   ;;  %v2170_v57 = vld [vmem:[#allocation2 + $0x148] sm:$0xff] }
 0x1b2   : > { %8030 = vmatmul.mubr.bf16.gmra.mrb[40].mxu1 %v10143_v38 }
 0x1b3   : > { %8033 = vmatprep.mubr.bf16.mxu1 %v10139_v28 }
 0x1ba   : > { %8034 = vmatmul.mubr.bf16.gmra.mrb[44].mxu1 %v10157_v37 }
 0x1bb   : > { %8053 = vmatprep.mubr.bf16.mxu1 %v1025_v5  ;;  %v1542_v5 = vld [vmem:[#allocation2 + $0x29] sm:$0xff] }
 0x1bc   : > { %v10213_v12 = vpack.c.bf16 %v1543_v6, %v1542_v5 }
 0x1c2   : > { %8054 = vmatmul.mubr.bf16.vlgmr.msra.gmra.mrb[16].mxu1 %v10168_v9 }
 0x1c3   : > { %8086 = vmatpush3.bf16.msra.mxu1 %v9495_v1  ;;  %8057 = vmatprep.mubr.bf16.mxu1 %v10170_v11  ;;  %v1024_v1 = vld [vmem:[#allocation2 + $0x1ef] sm:$0xff] }
 0x1c4   : > { %8087 = vmatprep.subr.bf16.mxu1 %v9496_v10  ;;  %v10210_v4 = vpack.c.bf16 %v1024_v1, %v1023_v0  ;;  %v1563_v0 = vld [vmem:[#allocation2 + $0x171] sm:$0xff]  ;;  %v1564_v1 = vld [vmem:[#allocation2 + $0x189] sm:$0xff] }
 0x1c5   : > { %v10243_v5 = vpack.c.bf16 %v1563_v0, %v1562_v63  ;;  %v2156_v63 = vld [vmem:[#allocation2 + $0x68] sm:$0xff] }
 0x1c6   : > { %v9520_v0 = vld [vmem:[#allocation7 + $0x148] sm:$0xff]  }
 0x1c7   : > { %8088 = vmatpush3.bf16.msra.mxu1 %v9496_v10  ;;  %v9504_v10 = vld [vmem:[#allocation7 + $0xc8] sm:$0xff]  }
 0x1c8   : > { %8089 = vmatprep.subr.bf16.mxu1 %v9497_v13 }
 0x1ca   : > { %8058 = vmatmul.mubr.bf16.gmra.mrb[20].mxu1 %v10174_v17 }
 0x1cb   : > { %8061 = vmatprep.mubr.bf16.mxu1 %v10176_v21  ;;  %8090 = vmatpush3.bf16.msra.mxu1 %v9497_v13  ;;  %v10215_v13 = vpack.c.bf16 %v1545_v8, %v1544_v7  ;;  %v1566_v7 = vld [vmem:[#allocation2 + $0x1a9] sm:$0xff]  ;;  %v1567_v8 = vld [vmem:[#allocation2 + $0x1b1] sm:$0xff] }
 0x1cc   : > { %8091 = vmatprep.subr.bf16.mxu1 %v9498_v20 }
 0x1cf   : > { %8092 = vmatpush3.bf16.msra.mxu1 %v9498_v20  ;;  %v1549_v20 = vld [vmem:[#allocation2 + $0x91] sm:$0xff] }
 0x1d0   : > { %8093 = vmatprep.subr.bf16.mxu1 %v9499_v22  ;;  %v10221_v24 = vpack.c.bf16 %v1549_v20, %v1548_v18  ;;  %v1570_v18 = vld [vmem:[#allocation2 + $0x1e9] sm:$0xff]  ;;  %v1571_v20 = vld [vmem:[#allocation2 + $0x1f1] sm:$0xff] }
 0x1d2   : > { %8062 = vmatmul.mubr.bf16.gmra.mrb[24].mxu1 %v10180_v26 }
 0x1d3   : > { %8065 = vmatprep.mubr.bf16.mxu1 %v10182_v30  ;;  %8094 = vmatpush3.bf16.msra.mxu1 %v9499_v22  ;;  %v10219_v22 = vpack.c.bf16 %v1547_v16, %v1546_v15  ;;  %v10249_v15 = vpack.c.bf16 %v1567_v8, %v1566_v7  ;;  %v2159_v7 = vld [vmem:[#allocation2 + $0x90] sm:$0xff] }
 0x1d4   : > { %8095 = vmatprep.subr.bf16.mxu1 %v9500_v29  ;;  %v2161_v8 = vld [vmem:[#allocation2 + $0xb0] sm:$0xff] }
 0x1d7   : > { %8096 = vmatpush3.bf16.msra.mxu1 %v9500_v29  ;;  %v1551_v29 = vld [vmem:[#allocation2 + $0xb1] sm:$0xff] }
 0x1d8   : > { %8097 = vmatprep.subr.bf16.mxu1 %v9501_v31  ;;  %v10225_v33 = vpack.c.bf16 %v1551_v29, %v1550_v27  ;;  %v9513_v27 = vld [vmem:[#allocation7 + $0x110] sm:$0xff]   ;;  %v9514_v29 = vld [vmem:[#allocation7 + $0x118] sm:$0xff]  }
 0x1da   : > { %8066 = vmatmul.mubr.bf16.gmra.mrb[28].mxu1 %v10186_v39 }
 0x1db   : > { %8069 = vmatprep.mubr.bf16.mxu1 %v10188_v42  ;;  %8098 = vmatpush3.bf16.msra.mxu1 %v9501_v31  ;;  %v1552_v31 = vld [vmem:[#allocation2 + $0xc9] sm:$0xff] }
 0x1dc   : > { %8099 = vmatprep.subr.bf16.mxu1 %v9502_v41  ;;  %v10227_v40 = vpack.c.bf16 %v1553_v32, %v1552_v31  ;;  %v9515_v31 = vld [vmem:[#allocation7 + $0x120] sm:$0xff]   ;;  %v9517_v32 = vld [vmem:[#allocation7 + $0x130] sm:$0xff]  }
 0x1df   : > { %8100 = vmatpush3.bf16.msra.mxu1 %v9502_v41  ;;  %v9509_v41 = vld [vmem:[#allocation7 + $0xf0] sm:$0xff]  }
 0x1e0   : > { %8133 = vmatprep.subr.bf16.mxu1 %v9503_v43 }
 0x1e2   : > { %8070 = vmatmul.mubr.bf16.gmra.mrb[32].mxu1 %v10192_v47 }
 0x1e3   : > { %8073 = vmatprep.mubr.bf16.mxu1 %v10194_v48 }
 0x1ea   : > { %8074 = vmatmul.mubr.bf16.gmra.mrb[36].mxu1 %v10198_v54 }
 0x1eb   : > { %8077 = vmatprep.mubr.bf16.mxu1 %v10200_v55 }
 0x1f2   : > { %8078 = vmatmul.mubr.bf16.gmra.mrb[40].mxu1 %v10204_v60 }
 0x1f3   : > { %8081 = vmatprep.mubr.bf16.mxu1 %v10206_v61 }
 0x1fa   : > { %8082 = vmatmul.mubr.bf16.gmra.mrb[44].mxu1 %v10210_v4 }
 0x1fb   : > { %8101 = vmatprep.mubr.bf16.mxu1 %v1572_v3  ;;  %v1565_v3 = vld [vmem:[#allocation2 + $0x191] sm:$0xff] }
 0x1fc   : > { %v10245_v6 = vpack.c.bf16 %v1565_v3, %v1564_v1  ;;  %v10278_v1 = vpack.c.bf16 %v2157_v56, %v2156_v63  ;;  %v9521_v3 = vld [vmem:[#allocation7 + $0x150] sm:$0xff]   ;;  %v9527_v56 = vld [vmem:[#allocation7 + $0x180] sm:$0xff]  }
 0x1fd   : > { %v2171_v63 = vld [vmem:[#allocation2 + $0x150] sm:$0xff] }
 0x202   : > { %8102 = vmatmul.mubr.bf16.vlgmr.msra.gmra.mrb[16].mxu1 %v10213_v12 }
 0x203   : > { %8134 = vmatpush3.bf16.msra.mxu1 %v9503_v43  ;;  %8105 = vmatprep.mubr.bf16.mxu1 %v10215_v13  ;;  %v1554_v43 = vld [vmem:[#allocation2 + $0xe9] sm:$0xff] }
 0x204   : > { %8135 = vmatprep.subr.bf16.mxu1 %v9504_v10  ;;  %v10231_v46 = vpack.c.bf16 %v1555_v44, %v1554_v43  ;;  %v1876_v43 = vld [vmem:[#allocation2 + $0x207] sm:$0xff]  ;;  %v1877_v44 = vld [vmem:[#allocation2 + $0x20f] sm:$0xff] }
 0x205   : > { %v10273_v34 = vpack.c.bf16 %v1877_v44, %v1876_v43  ;;  %v9525_v44 = vld [vmem:[#allocation7 + $0x170] sm:$0xff]  }
 0x207   : > { %8136 = vmatpush3.bf16.msra.mxu1 %v9504_v10  ;;  %v1568_v10 = vld [vmem:[#allocation2 + $0x1c9] sm:$0xff] }
 0x208   : > { %8137 = vmatprep.subr.bf16.mxu1 %v9505_v14 }
 0x20a   : > { %8106 = vmatmul.mubr.bf16.gmra.mrb[20].mxu1 %v10219_v22 }
 0x20b   : > { %8109 = vmatprep.mubr.bf16.mxu1 %v10221_v24  ;;  %8138 = vmatpush3.bf16.msra.mxu1 %v9505_v14  ;;  %v1569_v14 = vld [vmem:[#allocation2 + $0x1d1] sm:$0xff] }
 0x20c   : > { %8139 = vmatprep.subr.bf16.mxu1 %v9506_v23  ;;  %v10251_v16 = vpack.c.bf16 %v1569_v14, %v1568_v10  ;;  %v2158_v10 = vld [vmem:[#allocation2 + $0x88] sm:$0xff] }
 0x20d   : > { %v10282_v14 = vpack.c.bf16 %v2159_v7, %v2158_v10  ;;  %v3091_v7 = vld [vmem:[#allocation2 + $0x188] sm:$0xff] }
 0x20f   : > { %8140 = vmatpush3.bf16.msra.mxu1 %v9506_v23  ;;  %v10255_v23 = vpack.c.bf16 %v1571_v20, %v1570_v18  ;;  %v2160_v18 = vld [vmem:[#allocation2 + $0xa8] sm:$0xff]  ;;  %v9522_v20 = vld [vmem:[#allocation7 + $0x158] sm:$0xff]  }
 0x210   : > { %8141 = vmatprep.subr.bf16.mxu1 %v9507_v25 }
 0x212   : > { %8110 = vmatmul.mubr.bf16.gmra.mrb[24].mxu1 %v10225_v33 }
 0x213   : > { %8113 = vmatprep.mubr.bf16.mxu1 %v10227_v40  ;;  %8142 = vmatpush3.bf16.msra.mxu1 %v9507_v25  ;;  %v9512_v25 = vld [vmem:[#allocation7 + $0x108] sm:$0xff]  }
 0x214   : > { %8143 = vmatprep.subr.bf16.mxu1 %v9508_v36 }
 0x217   : > { %8144 = vmatpush3.bf16.msra.mxu1 %v9508_v36  ;;  %v9518_v36 = vld [vmem:[#allocation7 + $0x138] sm:$0xff]  }
 0x218   : > { %8145 = vmatprep.subr.bf16.mxu1 %v9509_v41 }
 0x21a   : > { %8114 = vmatmul.mubr.bf16.gmra.mrb[28].mxu1 %v10231_v46 }
 0x21b   : > { %8117 = vmatprep.mubr.bf16.mxu1 %v10233_v50  ;;  %8146 = vmatpush3.bf16.msra.mxu1 %v9509_v41  ;;  %v9519_v41 = vld [vmem:[#allocation7 + $0x140] sm:$0xff]  }
 0x21c   : > { %8147 = vmatprep.subr.bf16.mxu1 %v9510_v49 }
 0x21f   : > { %8148 = vmatpush3.bf16.msra.mxu1 %v9510_v49  ;;  %v2152_v49 = vld [vmem:[#allocation2 + $0x28] sm:$0xff] }
 0x220   : > { %8181 = vmatprep.subr.bf16.mxu1 %v9511_v51 }
 0x222   : > { %8118 = vmatmul.mubr.bf16.gmra.mrb[32].mxu1 %v10237_v35 }
 0x223   : > { %8121 = vmatprep.mubr.bf16.mxu1 %v10239_v62 }
 0x22a   : > { %8122 = vmatmul.mubr.bf16.gmra.mrb[36].mxu1 %v10243_v5 }
 0x22b   : > { %8125 = vmatprep.mubr.bf16.mxu1 %v10245_v6 }
 0x232   : > { %8126 = vmatmul.mubr.bf16.gmra.mrb[40].mxu1 %v10249_v15 }
 0x233   : > { %8129 = vmatprep.mubr.bf16.mxu1 %v10251_v16 }
 0x23a   : > { %8130 = vmatmul.mubr.bf16.gmra.mrb[44].mxu1 %v10255_v23 }
 0x23b   : > { %8149 = vmatprep.mubr.bf16.mxu1 %v10168_v9  ;;  %v9516_v9 = vld [vmem:[#allocation7 + $0x128] sm:$0xff]  }
 0x242   : > { %8150 = vmatmul.mubr.bf16.vlgmr.msra.gmra.mrb[16].mxu1 %v10170_v11 }
 0x243   : > { %8182 = vmatpush3.bf16.msra.mxu1 %v9511_v51  ;;  %8153 = vmatprep.mubr.bf16.mxu1 %v10174_v17  ;;  %v2184_v51 = vpack.c.bf16 %v2153_v45, %v2152_v49  ;;  %v2167_v45 = vld [vmem:[#allocation2 + $0x110] sm:$0xff]  ;;  %v2166_v49 = vld [vmem:[#allocation2 + $0x108] sm:$0xff] }
 0x244   : > { %8183 = vmatprep.subr.bf16.mxu1 %v9512_v25 }
 0x247   : > { %8184 = vmatpush3.bf16.msra.mxu1 %v9512_v25  ;;  %v10284_v25 = vpack.c.bf16 %v2161_v8, %v2160_v18  ;;  %v3092_v8 = vld [vmem:[#allocation2 + $0x190] sm:$0xff]  ;;  %v3093_v18 = vld [vmem:[#allocation2 + $0x1a8] sm:$0xff] }
 0x248   : > { %8185 = vmatprep.subr.bf16.mxu1 %v9513_v27 }
 0x24a   : > { %8154 = vmatmul.mubr.bf16.gmra.mrb[20].mxu1 %v10176_v21 }
 0x24b   : > { %8157 = vmatprep.mubr.bf16.mxu1 %v10180_v26  ;;  %8186 = vmatpush3.bf16.msra.mxu1 %v9513_v27  ;;  %v9523_v27 = vld [vmem:[#allocation7 + $0x160] sm:$0xff]  }
 0x24c   : > { %8187 = vmatprep.subr.bf16.mxu1 %v9514_v29 }
 0x24f   : > { %8188 = vmatpush3.bf16.msra.mxu1 %v9514_v29  ;;  %v2163_v29 = vld [vmem:[#allocation2 + $0xd0] sm:$0xff] }
 0x250   : > { %8189 = vmatprep.subr.bf16.mxu1 %v9515_v31 }
 0x252   : > { %8158 = vmatmul.mubr.bf16.gmra.mrb[24].mxu1 %v10182_v30 }
 0x253   : > { %8161 = vmatprep.mubr.bf16.mxu1 %v10186_v39  ;;  %8190 = vmatpush3.bf16.msra.mxu1 %v9515_v31  ;;  %v2165_v31 = vld [vmem:[#allocation2 + $0xf0] sm:$0xff] }
 0x254   : > { %8191 = vmatprep.subr.bf16.mxu1 %v9516_v9 }
 0x257   : > { %8192 = vmatpush3.bf16.msra.mxu1 %v9516_v9  ;;  %v2162_v9 = vld [vmem:[#allocation2 + $0xc8] sm:$0xff] }
 0x258   : > { %8193 = vmatprep.subr.bf16.mxu1 %v9517_v32 }
 0x25a   : > { %8162 = vmatmul.mubr.bf16.gmra.mrb[28].mxu1 %v10188_v42 }
 0x25b   : > { %8165 = vmatprep.mubr.bf16.mxu1 %v10192_v47  ;;  %8194 = vmatpush3.bf16.msra.mxu1 %v9517_v32  ;;  %v10288_v32 = vpack.c.bf16 %v2163_v29, %v2162_v9  ;;  %v3097_v9 = vld [vmem:[#allocation2 + $0x1e8] sm:$0xff] }
 0x25c   : > { %8195 = vmatprep.subr.bf16.mxu1 %v9518_v36 }
 0x25f   : > { %8196 = vmatpush3.bf16.msra.mxu1 %v9518_v36  ;;  %v2164_v36 = vld [vmem:[#allocation2 + $0xe8] sm:$0xff] }
 0x260   : > { %8229 = vmatprep.subr.bf16.mxu1 %v9519_v41  ;;  %v10290_v43 = vpack.c.bf16 %v2165_v31, %v2164_v36  ;;  %v3099_v36 = vld [vmem:[#allocation2 + $0x208] sm:$0xff] }
 0x262   : > { %8166 = vmatmul.mubr.bf16.gmra.mrb[32].mxu1 %v10194_v48 }
 0x263   : > { %8169 = vmatprep.mubr.bf16.mxu1 %v10198_v54 }
 0x26a   : > { %8170 = vmatmul.mubr.bf16.gmra.mrb[36].mxu1 %v10200_v55 }
 0x26b   : > { %8173 = vmatprep.mubr.bf16.mxu1 %v10204_v60 }
 0x272   : > { %8174 = vmatmul.mubr.bf16.gmra.mrb[40].mxu1 %v10206_v61 }
 0x273   : > { %8177 = vmatprep.mubr.bf16.mxu1 %v10210_v4 }
 0x27a   : > { %8178 = vmatmul.mubr.bf16.gmra.mrb[44].mxu1 %v10273_v34 }
 0x27b   : > { %8197 = vmatprep.mubr.bf16.mxu1 %v2184_v51  ;;  %v10294_v51 = vpack.c.bf16 %v2167_v45, %v2166_v49  ;;  %v3377_v45 = vld [vmem:[#allocation2 + $0x49] sm:$0xff]  ;;  %v3378_v49 = vld [vmem:[#allocation2 + $0x51] sm:$0xff] }
 0x282   : > { %8198 = vmatmul.mubr.bf16.vlgmr.msra.gmra.mrb[16].mxu1 %v10276_v58 }
 0x283   : > { %8230 = vmatpush3.bf16.msra.mxu1 %v9519_v41  ;;  %8201 = vmatprep.mubr.bf16.mxu1 %v10278_v1  ;;  %v9524_v41 = vld [vmem:[#allocation7 + $0x168] sm:$0xff]  }
 0x284   : > { %8231 = vmatprep.subr.bf16.mxu1 %v9520_v0 }
 0x287   : > { %8232 = vmatpush3.bf16.msra.mxu1 %v9520_v0  ;;  %v10298_v0 = vpack.c.bf16 %v2171_v63, %v2170_v57  ;;  %v3381_v57 = vld [vmem:[#allocation2 + $0x89] sm:$0xff]  ;;  %v3382_v63 = vld [vmem:[#allocation2 + $0x91] sm:$0xff] }
 0x288   : > { %8233 = vmatprep.subr.bf16.mxu1 %v9521_v3 }
 0x28a   : > { %8202 = vmatmul.mubr.bf16.gmra.mrb[20].mxu1 %v10282_v14 }
 0x28b   : > { %8205 = vmatprep.mubr.bf16.mxu1 %v10284_v25  ;;  %8234 = vmatpush3.bf16.msra.mxu1 %v9521_v3  ;;  %v3090_v3 = vld [vmem:[#allocation2 + $0x170] sm:$0xff] }
 0x28c   : > { %8235 = vmatprep.subr.bf16.mxu1 %v9522_v20 }
 0x28f   : > { %8236 = vmatpush3.bf16.msra.mxu1 %v9522_v20  ;;  %v3094_v20 = vld [vmem:[#allocation2 + $0x1b0] sm:$0xff] }
 0x290   : > { %8237 = vmatprep.subr.bf16.mxu1 %v9523_v27  ;;  %v3114_v29 = vpack.c.bf16 %v3094_v20, %v3093_v18  ;;  %v10361_v18 = vld [vmem:[%s10973_s6] ss:$0 sm:$0xff] }
 0x292   : > { %8206 = vmatmul.mubr.bf16.gmra.mrb[24].mxu1 %v10288_v32 }
 0x293   : > { %8209 = vmatprep.mubr.bf16.mxu1 %v10290_v43  ;;  %8238 = vmatpush3.bf16.msra.mxu1 %v9523_v27  ;;  %v3096_v27 = vld [vmem:[#allocation2 + $0x1d0] sm:$0xff] }
 0x294   : > { %8239 = vmatprep.subr.bf16.mxu1 %v9524_v41 }
 0x297   : > { %8240 = vmatpush3.bf16.msra.mxu1 %v9524_v41  ;;  %v3100_v41 = vld [vmem:[#allocation2 + $0x210] sm:$0xff] }
 0x298   : > { %8241 = vmatprep.subr.bf16.mxu1 %v9525_v44 }
 0x29a   : > { %8210 = vmatmul.mubr.bf16.gmra.mrb[28].mxu1 %v10294_v51 }
 0x29b   : > { %8213 = vmatprep.mubr.bf16.mxu1 %v10102_v19  ;;  %8242 = vmatpush3.bf16.msra.mxu1 %v9525_v44  ;;  %v9528_v19 = vld [vmem:[#allocation7 + $0x188] sm:$0xff]   ;;  %v3117_v44 = vpack.c.bf16 %v3100_v41, %v3099_v36 }
 0x29c   : > { %8243 = vmatprep.subr.bf16.mxu1 %v9526_v53 }
 0x29f   : > { %8244 = vmatpush3.bf16.msra.mxu1 %v9526_v53  ;;  %v3379_v53 = vld [vmem:[#allocation2 + $0x69] sm:$0xff] }
 0x2a0   : > { %8277 = vmatprep.subr.bf16.mxu1 %v9527_v56 }
 0x2a2   : > { %8214 = vmatmul.mubr.bf16.gmra.mrb[32].mxu1 %v10298_v0 }
 0x2a3   : > { %8217 = vmatprep.mubr.bf16.mxu1 %v10123_v59  ;;  %v9529_v59 = vld [vmem:[#allocation7 + $0x190] sm:$0xff]  }
 0x2aa   : > { %8218 = vmatmul.mubr.bf16.gmra.mrb[36].mxu1 %v10119_v52  ;;  %v9530_v52 = vld [vmem:[#allocation7 + $0x198] sm:$0xff]  }
 0x2ab   : > { %8221 = vmatprep.mubr.bf16.mxu1 %v10143_v38  ;;  %v9532_v38 = vld [vmem:[#allocation7 + $0x1a8] sm:$0xff]  }
 0x2b2   : > { %8222 = vmatmul.mubr.bf16.gmra.mrb[40].mxu1 %v10139_v28  ;;  %v9531_v28 = vld [vmem:[#allocation7 + $0x1a0] sm:$0xff]  }
 0x2b3   : > { %8225 = vmatprep.mubr.bf16.mxu1 %v10157_v37  ;;  %v9533_v37 = vld [vmem:[#allocation7 + $0x1b0] sm:$0xff]  }
 0x2ba   : > { %8226 = vmatmul.mubr.bf16.gmra.mrb[44].mxu1 %v10159_v2  ;;  %v9534_v2 = vld [vmem:[#allocation7 + $0x1b8] sm:$0xff]  }
 0x2bb   : > { %8245 = vmatprep.mubr.bf16.mxu1 %v10213_v12  ;;  %v9535_v12 = vld [vmem:[#allocation7 + $0x1c0] sm:$0xff]  }
 0x2c2   : > { %8246 = vmatmul.mubr.bf16.vlgmr.msra.gmra.mrb[16].mxu1 %v10215_v13  ;;  %v9623_v13 = vld [vmem:[#allocation2] sm:$0xff] }
 0x2c3   : > { %8278 = vmatpush3.bf16.msra.mxu1 %v9527_v56  ;;  %8249 = vmatprep.mubr.bf16.mxu1 %v10219_v22  ;;  %v10322_v22 = vpack.c.bf16 %v9623_v13, %v9623_v13  ;;  %v3380_v56 = vld [vmem:[#allocation2 + $0x71] sm:$0xff] }
 0x2c4   : > { %8279 = vmatprep.subr.bf16.mxu1 %v9528_v19  ;;  %v3388_v13 = vld [vmem:[#allocation2 + $0xf1] sm:$0xff] }
 0x2c5   : > { %8437 = vmatprep.mubr.bf16.mxu0 %v10322_v22 }
 0x2c7   : > { %8280 = vmatpush3.bf16.msra.mxu1 %v9528_v19  ;;  %v3411_v19 = vpack.c.bf16 %v3382_v63, %v3381_v57 }
 0x2c8   : > { %8281 = vmatprep.subr.bf16.mxu1 %v9529_v59 }
 0x2ca   : > { %8250 = vmatmul.mubr.bf16.gmra.mrb[20].mxu1 %v10221_v24  ;;  %v2488_v24 = vld [vmem:[#allocation2 + $0x209] sm:$0xff] }
 0x2cb   : > { %8253 = vmatprep.mubr.bf16.mxu1 %v10225_v33  ;;  %8282 = vmatpush3.bf16.msra.mxu1 %v9529_v59  ;;  %v2489_v33 = vld [vmem:[#allocation2 + $0x211] sm:$0xff]  ;;  %v3383_v59 = vld [vmem:[#allocation2 + $0xa9] sm:$0xff] }
 0x2cc   : > { %8283 = vmatprep.subr.bf16.mxu1 %v9530_v52 }
 0x2cf   : > { %8284 = vmatpush3.bf16.msra.mxu1 %v9530_v52  ;;  %v3384_v52 = vld [vmem:[#allocation2 + $0xb1] sm:$0xff] }
 0x2d0   : > { %8285 = vmatprep.subr.bf16.mxu1 %v9531_v28 }
 0x2d2   : > { %8254 = vmatmul.mubr.bf16.gmra.mrb[24].mxu1 %v10227_v40  ;;  %v10325_v40 = vpack.c.bf16 %v2489_v33, %v2488_v24  ;;  %v3390_v24 = vld [vmem:[#allocation2 + $0x111] sm:$0xff] }
 0x2d3   : > { %8257 = vmatprep.mubr.bf16.mxu1 %v10231_v46  ;;  %8286 = vmatpush3.bf16.msra.mxu1 %v9531_v28  ;;  %v9536_v46 = vld [vmem:[#allocation7 + $0x1c8] sm:$0xff]  }
 0x2d4   : > { %8287 = vmatprep.subr.bf16.mxu1 %v9532_v38  ;;  %v3385_v28 = vld [vmem:[#allocation2 + $0xc9] sm:$0xff] }
 0x2d7   : > { %8288 = vmatpush3.bf16.msra.mxu1 %v9532_v38  ;;  %v3386_v38 = vld [vmem:[#allocation2 + $0xd1] sm:$0xff] }
 0x2d8   : > { %8289 = vmatprep.subr.bf16.mxu1 %v9533_v37 }
 0x2da   : > { %8258 = vmatmul.mubr.bf16.gmra.mrb[28].mxu1 %v10233_v50  ;;  %v9537_v50 = vld [vmem:[#allocation7 + $0x1d0] sm:$0xff]  }
 0x2db   : > { %8261 = vmatprep.mubr.bf16.mxu1 %v10237_v35  ;;  %8290 = vmatpush3.bf16.msra.mxu1 %v9533_v37  ;;  %v9538_v35 = vld [vmem:[#allocation7 + $0x1d8] sm:$0xff]   ;;  %v3412_v37 = vpack.c.bf16 %v3384_v52, %v3383_v59 }
 0x2dc   : > { %8291 = vmatprep.subr.bf16.mxu1 %v9534_v2 }
 0x2df   : > { %8292 = vmatpush3.bf16.msra.mxu1 %v9534_v2  ;;  %v3413_v2 = vpack.c.bf16 %v3386_v38, %v3385_v28  ;;  %v9560_v28 = vld [vmem:[#allocation8 + $0x8] sm:$0xff]  }
 0x2e0   : > { %8325 = vmatprep.subr.bf16.mxu1 %v9535_v12 }
 0x2e2   : > { %8262 = vmatmul.mubr.bf16.gmra.mrb[32].mxu1 %v10239_v62  ;;  %v9539_v62 = vld [vmem:[#allocation7 + $0x1e0] sm:$0xff]  }
 0x2e3   : > { %8265 = vmatprep.mubr.bf16.mxu1 %v10243_v5  ;;  %v9547_v5 = vld [vmem:[#allocation7 + $0x220] sm:$0xff]  }
 0x2ea   : > { %8266 = vmatmul.mubr.bf16.gmra.mrb[36].mxu1 %v10245_v6  ;;  %v9548_v6 = vld [vmem:[#allocation7 + $0x228] sm:$0xff]  }
 0x2eb   : > { %8269 = vmatprep.mubr.bf16.mxu1 %v10249_v15  ;;  %v9549_v15 = vld [vmem:[#allocation7 + $0x230] sm:$0xff]  }
 0x2f2   : > { %8270 = vmatmul.mubr.bf16.gmra.mrb[40].mxu1 %v10251_v16  ;;  %v3085_v16 = vld [vmem:[#allocation2 + $0x128] sm:$0xff] }
 0x2f3   : > { %8273 = vmatprep.mubr.bf16.mxu1 %v10255_v23  ;;  %v3086_v23 = vld [vmem:[#allocation2 + $0x130] sm:$0xff] }
 0x2fa   : > { %8274 = vmatmul.mubr.bf16.gmra.mrb[44].mxu1 %v10325_v40 }
 0x2fb   : > { %8293 = vmatprep.mubr.bf16.mxu1 %v10170_v11  ;;  %v9540_v11 = vld [vmem:[#allocation7 + $0x1e8] sm:$0xff]  }
 0x302   : > { %8294 = vmatmul.mubr.bf16.vlgmr.msra.gmra.mrb[16].mxu1 %v10174_v17  ;;  %v9541_v17 = vld [vmem:[#allocation7 + $0x1f0] sm:$0xff]  }
 0x303   : > { %8326 = vmatpush3.bf16.msra.mxu1 %v9535_v12  ;;  %8297 = vmatprep.mubr.bf16.mxu1 %v10176_v21  ;;  %v9542_v21 = vld [vmem:[#allocation7 + $0x1f8] sm:$0xff]   ;;  %v3387_v12 = vld [vmem:[#allocation2 + $0xe9] sm:$0xff] }
 0x304   : > { %8327 = vmatprep.subr.bf16.mxu1 %v9536_v46  ;;  %v3414_v33 = vpack.c.bf16 %v3388_v13, %v3387_v12 }
 0x307   : > { %8328 = vmatpush3.bf16.msra.mxu1 %v9536_v46 }
 0x308   : > { %8329 = vmatprep.subr.bf16.mxu1 %v9537_v50 }
 0x30a   : > { %8298 = vmatmul.mubr.bf16.gmra.mrb[20].mxu1 %v10180_v26  ;;  %v9543_v26 = vld [vmem:[#allocation7 + $0x200] sm:$0xff]  }
 0x30b   : > { %8301 = vmatprep.mubr.bf16.mxu1 %v10182_v30  ;;  %8330 = vmatpush3.bf16.msra.mxu1 %v9537_v50  ;;  %v2795_v30 = vld [vmem:[#allocation2 + $0x227] sm:$0xff] }
 0x30c   : > { %8331 = vmatprep.subr.bf16.mxu1 %v9538_v35  ;;  %v3391_v50 = vld [vmem:[#allocation2 + $0x129] sm:$0xff] }
 0x30f   : > { %8332 = vmatpush3.bf16.msra.mxu1 %v9538_v35  ;;  %v3392_v35 = vld [vmem:[#allocation2 + $0x131] sm:$0xff] }
 0x310   : > { %8333 = vmatprep.subr.bf16.mxu1 %v9539_v62 }
 0x312   : > { %8302 = vmatmul.mubr.bf16.gmra.mrb[24].mxu1 %v10186_v39  ;;  %v2796_v39 = vld [vmem:[#allocation2 + $0x22f] sm:$0xff] }
 0x313   : > { %8305 = vmatprep.mubr.bf16.mxu1 %v10188_v42  ;;  %8334 = vmatpush3.bf16.msra.mxu1 %v9539_v62  ;;  %v2812_v42 = vpack.c.bf16 %v2796_v39, %v2795_v30  ;;  %v3393_v62 = vld [vmem:[#allocation2 + $0x149] sm:$0xff]  ;;  %v3396_v30 = vld [vmem:[#allocation2 + $0x171] sm:$0xff] }
 0x314   : > { %8335 = vmatprep.subr.bf16.mxu1 %v9540_v11  ;;  %v3397_v39 = vld [vmem:[#allocation2 + $0x189] sm:$0xff] }
 0x317   : > { %8336 = vmatpush3.bf16.msra.mxu1 %v9540_v11  ;;  %v3394_v11 = vld [vmem:[#allocation2 + $0x151] sm:$0xff] }
 0x318   : > { %8337 = vmatprep.subr.bf16.mxu1 %v9541_v17 }
 0x31a   : > { %8306 = vmatmul.mubr.bf16.gmra.mrb[28].mxu1 %v10192_v47  ;;  %v9551_v47 = vld [vmem:[#allocation8 + $0x40] sm:$0xff]  }
 0x31b   : > { %8309 = vmatprep.mubr.bf16.mxu1 %v10194_v48  ;;  %8338 = vmatpush3.bf16.msra.mxu1 %v9541_v17  ;;  %v9552_v48 = vld [vmem:[#allocation8 + $0x48] sm:$0xff]   ;;  %v3416_v17 = vpack.c.bf16 %v3392_v35, %v3391_v50  ;;  %v9561_v50 = vld [vmem:[#allocation8 + $0x10] sm:$0xff]  }
 0x31c   : > { %8339 = vmatprep.subr.bf16.mxu1 %v9542_v21  ;;  %8421 = vmatprep.subr.bf16.mxu0 %v9551_v47 }
 0x31d   : > { %8422 = vmatpush3.bf16.msra.mxu0 %v9551_v47 }
 0x31e   : > { %8423 = vmatprep.subr.bf16.mxu0 %v9552_v48 }
 0x31f   : > { %8340 = vmatpush3.bf16.msra.mxu1 %v9542_v21  ;;  %v3417_v21 = vpack.c.bf16 %v3394_v11, %v3393_v62 }
 0x320   : > { %8373 = vmatprep.subr.bf16.mxu1 %v9543_v26 }
 0x321   : > { %8424 = vmatpush3.bf16.msra.mxu0 %v9552_v48 }
 0x322   : > { %8310 = vmatmul.mubr.bf16.gmra.mrb[32].mxu1 %v10198_v54  ;;  %v9553_v54 = vld [vmem:[#allocation8 + $0x50] sm:$0xff]  }
 0x323   : > { %8313 = vmatprep.mubr.bf16.mxu1 %v10200_v55  ;;  %v9544_v55 = vld [vmem:[#allocation7 + $0x208] sm:$0xff]   ;;  %8425 = vmatprep.subr.bf16.mxu0 %v9553_v54 }
 0x325   : > { %8426 = vmatpush3.bf16.msra.mxu0 %v9553_v54  ;;  %v3399_v54 = vld [vmem:[#allocation2 + $0x1a9] sm:$0xff] }
 0x32a   : > { %8314 = vmatmul.mubr.bf16.gmra.mrb[36].mxu1 %v10204_v60  ;;  %v9554_v60 = vld [vmem:[#allocation8 + $0x58] sm:$0xff]  }
 0x32b   : > { %8317 = vmatprep.mubr.bf16.mxu1 %v10206_v61  ;;  %v9545_v61 = vld [vmem:[#allocation7 + $0x210] sm:$0xff]   ;;  %8427 = vmatprep.subr.bf16.mxu0 %v9554_v60 }
 0x32c   : > { %8428 = vmatpush3.bf16.msra.mxu0 %v9554_v60  ;;  %v3401_v60 = vld [vmem:[#allocation2 + $0x1c9] sm:$0xff] }
 0x332   : > { %8318 = vmatmul.mubr.bf16.gmra.mrb[40].mxu1 %v10210_v4  ;;  %v9546_v4 = vld [vmem:[#allocation7 + $0x218] sm:$0xff]  }
 0x333   : > { %8321 = vmatprep.mubr.bf16.mxu1 %v10273_v34  ;;  %v3110_v34 = vpack.c.bf16 %v3086_v23, %v3085_v16  ;;  %v7075_v23 = vld [vmem:[#allocation2 + $0x229] sm:$0xff] }
 0x33a   : > { %8322 = vmatmul.mubr.bf16.gmra.mrb[44].mxu1 %v2812_v42  ;;  %v3398_v42 = vld [vmem:[#allocation2 + $0x191] sm:$0xff] }
 0x33b   : > { %8341 = vmatprep.mubr.bf16.mxu1 %v10276_v58  ;;  %v9550_v58 = vld [vmem:[#allocation7 + $0x238] sm:$0xff]   ;;  %v3419_v48 = vpack.c.bf16 %v3398_v42, %v3397_v39 }
 0x342   : > { %8342 = vmatmul.mubr.bf16.vlgmr.msra.gmra.mrb[16].mxu1 %v10278_v1  ;;  %v3089_v1 = vld [vmem:[#allocation2 + $0x168] sm:$0xff] }
 0x343   : > { %8374 = vmatpush3.bf16.msra.mxu1 %v9543_v26  ;;  %8345 = vmatprep.mubr.bf16.mxu1 %v10282_v14  ;;  %v3112_v10 = vpack.c.bf16 %v3090_v3, %v3089_v1  ;;  %v3113_v14 = vpack.c.bf16 %v3092_v8, %v3091_v7  ;;  %v3395_v26 = vld [vmem:[#allocation2 + $0x169] sm:$0xff]  ;;  %v9555_v1 = vld [vmem:[#allocation8 + $0x60] sm:$0xff]   ;;  %v9558_v8 = vld [vmem:[#allocation8 + $0x78] sm:$0xff]  }
 0x344   : > { %8375 = vmatprep.subr.bf16.mxu1 %v9544_v55  ;;  %v3418_v47 = vpack.c.bf16 %v3396_v30, %v3395_v26  ;;  %v9556_v3 = vld [vmem:[#allocation8 + $0x68] sm:$0xff]   ;;  %8429 = vmatprep.subr.bf16.mxu0 %v9555_v1  ;;  %v9557_v7 = vld [vmem:[#allocation8 + $0x70] sm:$0xff]  }
 0x345   : > { %8430 = vmatpush3.bf16.msra.mxu0 %v9555_v1 }
 0x346   : > { %8431 = vmatprep.subr.bf16.mxu0 %v9556_v3 }
 0x347   : > { %8376 = vmatpush3.bf16.msra.mxu1 %v9544_v55  ;;  %v3400_v55 = vld [vmem:[#allocation2 + $0x1b1] sm:$0xff] }
 0x348   : > { %8377 = vmatprep.subr.bf16.mxu1 %v9545_v61 }
 0x349   : > { %8432 = vmatpush3.bf16.msra.mxu0 %v9556_v3 }
 0x34a   : > { %8346 = vmatmul.mubr.bf16.gmra.mrb[20].mxu1 %v10284_v25  ;;  %v3095_v25 = vld [vmem:[#allocation2 + $0x1c8] sm:$0xff]  ;;  %8433 = vmatprep.subr.bf16.mxu0 %v9557_v7 }
 0x34b   : > { %8349 = vmatprep.mubr.bf16.mxu1 %v10288_v32  ;;  %8378 = vmatpush3.bf16.msra.mxu1 %v9545_v61  ;;  %v3115_v31 = vpack.c.bf16 %v3096_v27, %v3095_v25  ;;  %v3098_v32 = vld [vmem:[#allocation2 + $0x1f0] sm:$0xff] }
 0x34c   : > { %8379 = vmatprep.subr.bf16.mxu1 %v9546_v4  ;;  %v3402_v61 = vld [vmem:[#allocation2 + $0x1d1] sm:$0xff] }
 0x34d   : > { %8434 = vmatpush3.bf16.msra.mxu0 %v9557_v7 }
 0x34e   : > { %8435 = vmatprep.subr.bf16.mxu0 %v9558_v8 }
 0x34f   : > { %8380 = vmatpush3.bf16.msra.mxu1 %v9546_v4  ;;  %v3420_v4 = vpack.c.bf16 %v3400_v55, %v3399_v54 }
 0x350   : > { %8381 = vmatprep.subr.bf16.mxu1 %v9547_v5 }
 0x351   : > { %8436 = vmatpush3.bf16.msra.mxu0 %v9558_v8 }
 0x352   : > { %8350 = vmatmul.mubr.bf16.gmra.mrb[24].mxu1 %v10290_v43  ;;  %v3116_v43 = vpack.c.bf16 %v3098_v32, %v3097_v9 }
 0x353   : > { %8353 = vmatprep.mubr.bf16.mxu1 %v10294_v51  ;;  %8382 = vmatpush3.bf16.msra.mxu1 %v9547_v5  ;;  %v3409_v51 = vpack.c.bf16 %v3378_v49, %v3377_v45  ;;  %v3421_v5 = vpack.c.bf16 %v3402_v61, %v3401_v60 }
 0x354   : > { %8383 = vmatprep.subr.bf16.mxu1 %v9548_v6 }
 0x357   : > { %8384 = vmatpush3.bf16.msra.mxu1 %v9548_v6  ;;  %v3403_v6 = vld [vmem:[#allocation2 + $0x1e9] sm:$0xff] }
 0x358   : > { %8385 = vmatprep.subr.bf16.mxu1 %v9549_v15 }
 0x35a   : > { %8354 = vmatmul.mubr.bf16.gmra.mrb[28].mxu1 %v3110_v34  ;;  %v3408_v34 = vld [vmem:[#allocation2 + $0x231] sm:$0xff] }
 0x35b   : > { %8357 = vmatprep.mubr.bf16.mxu1 %v10298_v0  ;;  %8386 = vmatpush3.bf16.msra.mxu1 %v9549_v15  ;;  %v3410_v0 = vpack.c.bf16 %v3380_v56, %v3379_v53  ;;  %v3404_v15 = vld [vmem:[#allocation2 + $0x1f1] sm:$0xff] }
 0x35c   : > { %8387 = vmatprep.subr.bf16.mxu1 %v9550_v58  ;;  %v3422_v16 = vpack.c.bf16 %v3404_v15, %v3403_v6 }
 0x35f   : > { %8388 = vmatpush3.bf16.msra.mxu1 %v9550_v58  ;;  %v3424_v58 = vpack.c.bf16 %v3408_v34, %v7075_v23 }
 0x362   : > { %8358 = vmatmul.mubr.bf16.gmra.mrb[32].mxu1 %v3112_v10  ;;  %v9559_v10 = vld [vmem:[#allocation8] sm:$0xff]  }
 0x363   : > { %8361 = vmatprep.mubr.bf16.mxu1 %v3113_v14  ;;  %8469 = vmatprep.subr.bf16.mxu0 %v9559_v10 }
 0x36a   : > { %8362 = vmatmul.mubr.bf16.gmra.mrb[36].mxu1 %v3114_v29 }
 0x36b   : > { %8365 = vmatprep.mubr.bf16.mxu1 %v3115_v31 }
 0x372   : > { %8366 = vmatmul.mubr.bf16.gmra.mrb[40].mxu1 %v3116_v43 }
 0x373   : > { %8369 = vmatprep.mubr.bf16.mxu1 %v3117_v44 }
 0x37a   : > { %8370 = vmatmul.mubr.bf16.gmra.mrb[44].mxu1 %v10322_v22  ;;  %v3389_v22 = vld [vmem:[#allocation2 + $0x109] sm:$0xff] }
 0x37b   : > { %8389 = vmatprep.mubr.bf16.mxu1 %v3409_v51  ;;  %v3415_v46 = vpack.c.bf16 %v3390_v24, %v3389_v22 }
 0x382   : > { %8390 = vmatmul.mubr.bf16.vlgmr.msra.gmra.mrb[16].mxu1 %v3410_v0 }
 0x383   : > { %8393 = vmatprep.mubr.bf16.mxu1 %v3411_v19 }
 0x38a   : > { %8394 = vmatmul.mubr.bf16.gmra.mrb[20].mxu1 %v3412_v37 }
 0x38b   : > { %8397 = vmatprep.mubr.bf16.mxu1 %v3413_v2 }
 0x392   : > { %8398 = vmatmul.mubr.bf16.gmra.mrb[24].mxu1 %v3414_v33 }
 0x393   : > { %8401 = vmatprep.mubr.bf16.mxu1 %v3415_v46 }
 0x39a   : > { %8402 = vmatmul.mubr.bf16.gmra.mrb[28].mxu1 %v3416_v17 }
 0x39b   : > { %8405 = vmatprep.mubr.bf16.mxu1 %v3417_v21 }
 0x3a2   : > { %8406 = vmatmul.mubr.bf16.gmra.mrb[32].mxu1 %v3418_v47  ;;  %v9562_v47 = vld [vmem:[#allocation8 + $0x18] sm:$0xff]  }
 0x3a3   : > { %8409 = vmatprep.mubr.bf16.mxu1 %v3419_v48 }
 0x3aa   : > { %8410 = vmatmul.mubr.bf16.gmra.mrb[36].mxu1 %v3420_v4 }
 0x3ab   : > { %8413 = vmatprep.mubr.bf16.mxu1 %v3421_v5 }
 0x3b2   : > { %8414 = vmatmul.mubr.bf16.gmra.mrb[40].mxu1 %v3422_v16  ;;  %v9563_v16 = vld [vmem:[#allocation8 + $0x20] sm:$0xff]  }
 0x3b3   : > { %8417 = vmatprep.mubr.bf16.mxu1 %v10325_v40  ;;  %v10356_v40 = vld [vmem:[%s10972_s5] ss:$0 sm:$0xff] }
 0x3ba   : > { %8418 = vmatmul.mubr.bf16.gmra.mrb[44].mxu1 %v3424_v58 }
 0x455   : > { %v8391_v14 = vpop.f32.mrb[16].mxu1 }
 0x456   : > { %v3692_v20 = vmul.f32 %v8391_v14, %v10356_v40  ;;  %v3524_v25 = vpop.f32.mrb[17].mxu1 }
 0x457   : > { %v3690_v27 = vmul.f32 %v10356_v40, %v3524_v25  ;;  %v8392_v29 = vpop.f32.mrb[18].mxu1 }
 0x458   : > { %v3731_v31 = vadd.f32 %v10361_v18, %v3692_v20  ;;  %v3693_v9 = vmul.f32 %v8392_v29, %v10356_v40  ;;  %v3527_v32 = vpop.f32.mrb[19].mxu1  ;;  %v9564_v20 = vld [vmem:[#allocation8 + $0x28] sm:$0xff]  }
 0x459   : > { %v3729_v36 = vadd.f32 %v10361_v18, %v3690_v27  ;;  %v3691_v41 = vmul.f32 %v10356_v40, %v3527_v32 }
 0x45a   : > { %v3763_v43 = vmax.f32 %v3731_v31, 0.0  ;;  %v3732_v44 = vadd.f32 %v10361_v18, %v3693_v9 }
 0x45b   : > { %v3761_v45 = vmax.f32 %v3729_v36, 0.0  ;;  %v3730_v49 = vadd.f32 %v10361_v18, %v3691_v41 }
 0x45c   : > { %3795 = vst [vmem:[#allocation2 + $0x48] sm:$0xff] %v3763_v43  ;;  %v3764_v51 = vmax.f32 %v3732_v44, 0.0  ;;  %v9565_v44 = vld [vmem:[#allocation8 + $0x30] sm:$0xff]  }
 0x45d   : > { %3793 = vst [vmem:[#allocation2 + $0x28] sm:$0xff] %v3761_v45  ;;  %v3762_v53 = vmax.f32 %v3730_v49, 0.0  ;;  %v8395_v56 = vpop.f32.mrb[20].mxu1 }
 0x45e   : > { %3796 = vst [vmem:[#allocation2 + $0x50] sm:$0xff] %v3764_v51  ;;  %v3696_v57 = vmul.f32 %v8395_v56, %v10356_v40  ;;  %v3540_v63 = vpop.f32.mrb[21].mxu1  ;;  %v3923_v0 = vpack.c.bf16 %v3764_v51, %v3763_v43 }
 0x45f   : > { %3794 = vst [vmem:[#allocation2 + $0x30] sm:$0xff] %v3762_v53  ;;  %v3694_v19 = vmul.f32 %v10356_v40, %v3540_v63  ;;  %v8396_v59 = vpop.f32.mrb[22].mxu1  ;;  %v3922_v52 = vpack.c.bf16 %v3762_v53, %v3761_v45 }
 0x460   : > { %v3735_v38 = vadd.f32 %v10361_v18, %v3696_v57  ;;  %v3697_v37 = vmul.f32 %v8396_v59, %v10356_v40  ;;  %v3543_v2 = vpop.f32.mrb[23].mxu1  ;;  %v9566_v59 = vld [vmem:[#allocation8 + $0x38] sm:$0xff]  }
 0x461   : > { %v3733_v12 = vadd.f32 %v10361_v18, %v3694_v19  ;;  %v3695_v13 = vmul.f32 %v10356_v40, %v3543_v2  ;;  %8438 = vmatmul.mubr.bf16.vlgmr.msra.gmra.mrb[16].mxu0 %v3922_v52 }
 0x462   : > { %v3767_v22 = vmax.f32 %v3735_v38, 0.0  ;;  %v3736_v24 = vadd.f32 %v10361_v18, %v3697_v37  ;;  %8470 = vmatpush3.bf16.msra.mxu0 %v9559_v10  ;;  %8441 = vmatprep.mubr.bf16.mxu0 %v3923_v0 }
 0x463   : > { %v3765_v33 = vmax.f32 %v3733_v12, 0.0  ;;  %v3734_v46 = vadd.f32 %v10361_v18, %v3695_v13  ;;  %8471 = vmatprep.subr.bf16.mxu0 %v9560_v28 }
 0x464   : > { %3799 = vst [vmem:[#allocation2 + $0x88] sm:$0xff] %v3767_v22  ;;  %v3768_v35 = vmax.f32 %v3736_v24, 0.0 }
 0x465   : > { %3797 = vst [vmem:[#allocation2 + $0x68] sm:$0xff] %v3765_v33  ;;  %v3766_v62 = vmax.f32 %v3734_v46, 0.0  ;;  %v8399_v11 = vpop.f32.mrb[24].mxu1 }
 0x466   : > { %3800 = vst [vmem:[#allocation2 + $0x90] sm:$0xff] %v3768_v35  ;;  %v3700_v17 = vmul.f32 %v8399_v11, %v10356_v40  ;;  %v3556_v21 = vpop.f32.mrb[25].mxu1  ;;  %8472 = vmatpush3.bf16.msra.mxu0 %v9560_v28  ;;  %v3925_v26 = vpack.c.bf16 %v3768_v35, %v3767_v22 }
 0x467   : > { %3798 = vst [vmem:[#allocation2 + $0x70] sm:$0xff] %v3766_v62  ;;  %v3698_v30 = vmul.f32 %v10356_v40, %v3556_v21  ;;  %v8400_v39 = vpop.f32.mrb[26].mxu1  ;;  %v3924_v42 = vpack.c.bf16 %v3766_v62, %v3765_v33  ;;  %8473 = vmatprep.subr.bf16.mxu0 %v9561_v50  ;;  %v10403_v33 = vld [vmem:[#allocation8 + $0x80] sm:$0xff]  }
 0x468   : > { %v3739_v48 = vadd.f32 %v10361_v18, %v3700_v17  ;;  %v3701_v54 = vmul.f32 %v8400_v39, %v10356_v40  ;;  %v3559_v55 = vpop.f32.mrb[27].mxu1 }
 0x469   : > { %v3737_v60 = vadd.f32 %v10361_v18, %v3698_v30  ;;  %v3699_v61 = vmul.f32 %v10356_v40, %v3559_v55  ;;  %8442 = vmatmul.mubr.bf16.gmra.mrb[20].mxu0 %v3924_v42 }
 0x46a   : > { %v3771_v4 = vmax.f32 %v3739_v48, 0.0  ;;  %v3740_v5 = vadd.f32 %v10361_v18, %v3701_v54  ;;  %8445 = vmatprep.mubr.bf16.mxu0 %v3925_v26  ;;  %8474 = vmatpush3.bf16.msra.mxu0 %v9561_v50 }
 0x46b   : > { %v3769_v6 = vmax.f32 %v3737_v60, 0.0  ;;  %v3738_v15 = vadd.f32 %v10361_v18, %v3699_v61  ;;  %8475 = vmatprep.subr.bf16.mxu0 %v9562_v47 }
 0x46c   : > { %3803 = vst [vmem:[#allocation2 + $0xc8] sm:$0xff] %v3771_v4  ;;  %v3772_v23 = vmax.f32 %v3740_v5, 0.0 }
 0x46d   : > { %3801 = vst [vmem:[#allocation2 + $0xa8] sm:$0xff] %v3769_v6  ;;  %v3770_v34 = vmax.f32 %v3738_v15, 0.0  ;;  %v8403_v58 = vpop.f32.mrb[28].mxu1 }
 0x46e   : > { %3804 = vst [vmem:[#allocation2 + $0xd0] sm:$0xff] %v3772_v23  ;;  %v3704_v1 = vmul.f32 %v8403_v58, %v10356_v40  ;;  %v3572_v3 = vpop.f32.mrb[29].mxu1  ;;  %v3927_v7 = vpack.c.bf16 %v3772_v23, %v3771_v4  ;;  %8476 = vmatpush3.bf16.msra.mxu0 %v9562_v47 }
 0x46f   : > { %3802 = vst [vmem:[#allocation2 + $0xb0] sm:$0xff] %v3770_v34  ;;  %v3702_v8 = vmul.f32 %v10356_v40, %v3572_v3  ;;  %v8404_v10 = vpop.f32.mrb[30].mxu1  ;;  %v3926_v14 = vpack.c.bf16 %v3770_v34, %v3769_v6  ;;  %8477 = vmatprep.subr.bf16.mxu0 %v9563_v16 }
 0x470   : > { %v3743_v25 = vadd.f32 %v10361_v18, %v3704_v1  ;;  %v3705_v27 = vmul.f32 %v8404_v10, %v10356_v40  ;;  %v3575_v29 = vpop.f32.mrb[31].mxu1 }
 0x471   : > { %v3741_v31 = vadd.f32 %v10361_v18, %v3702_v8  ;;  %v3703_v9 = vmul.f32 %v10356_v40, %v3575_v29  ;;  %8446 = vmatmul.mubr.bf16.gmra.mrb[24].mxu0 %v3926_v14 }
 0x472   : > { %v3775_v32 = vmax.f32 %v3743_v25, 0.0  ;;  %v3744_v36 = vadd.f32 %v10361_v18, %v3705_v27  ;;  %8449 = vmatprep.mubr.bf16.mxu0 %v3927_v7  ;;  %8478 = vmatpush3.bf16.msra.mxu0 %v9563_v16 }
 0x473   : > { %v3773_v41 = vmax.f32 %v3741_v31, 0.0  ;;  %v3742_v43 = vadd.f32 %v10361_v18, %v3703_v9  ;;  %8479 = vmatprep.subr.bf16.mxu0 %v9564_v20 }
 0x474   : > { %3807 = vst [vmem:[#allocation2 + $0x108] sm:$0xff] %v3775_v32  ;;  %v3776_v45 = vmax.f32 %v3744_v36, 0.0 }
 0x475   : > { %3805 = vst [vmem:[#allocation2 + $0xe8] sm:$0xff] %v3773_v41  ;;  %v3774_v49 = vmax.f32 %v3742_v43, 0.0  ;;  %v8407_v51 = vpop.f32.mrb[32].mxu1 }
 0x476   : > { %3808 = vst [vmem:[#allocation2 + $0x110] sm:$0xff] %v3776_v45  ;;  %v3708_v53 = vmul.f32 %v8407_v51, %v10356_v40  ;;  %v3588_v56 = vpop.f32.mrb[33].mxu1  ;;  %v3929_v57 = vpack.c.bf16 %v3776_v45, %v3775_v32  ;;  %8480 = vmatpush3.bf16.msra.mxu0 %v9564_v20 }
 0x477   : > { %3806 = vst [vmem:[#allocation2 + $0xf0] sm:$0xff] %v3774_v49  ;;  %v3706_v63 = vmul.f32 %v10356_v40, %v3588_v56  ;;  %v8408_v0 = vpop.f32.mrb[34].mxu1  ;;  %v3928_v19 = vpack.c.bf16 %v3774_v49, %v3773_v41  ;;  %8481 = vmatprep.subr.bf16.mxu0 %v9565_v44 }
 0x478   : > { %v3747_v52 = vadd.f32 %v10361_v18, %v3708_v53  ;;  %v3709_v28 = vmul.f32 %v8408_v0, %v10356_v40  ;;  %v3591_v38 = vpop.f32.mrb[35].mxu1 }
 0x479   : > { %v3745_v37 = vadd.f32 %v10361_v18, %v3706_v63  ;;  %v3707_v2 = vmul.f32 %v10356_v40, %v3591_v38  ;;  %8450 = vmatmul.mubr.bf16.gmra.mrb[28].mxu0 %v3928_v19  ;;  %v3825_v38 = vld [vmem:[#allocation2 + $0x7] sm:$0xff] }
 0x47a   : > { %v3779_v12 = vmax.f32 %v3747_v52, 0.0  ;;  %v3748_v13 = vadd.f32 %v10361_v18, %v3709_v28  ;;  %8453 = vmatprep.mubr.bf16.mxu0 %v3929_v57  ;;  %8482 = vmatpush3.bf16.msra.mxu0 %v9565_v44 }
 0x47b   : > { %v3777_v22 = vmax.f32 %v3745_v37, 0.0  ;;  %v3746_v24 = vadd.f32 %v10361_v18, %v3707_v2  ;;  %8483 = vmatprep.subr.bf16.mxu0 %v9566_v59  ;;  %v3826_v37 = vld [vmem:[#allocation2 + $0xf] sm:$0xff] }
 0x47c   : > { %3811 = vst [vmem:[#allocation2 + $0x148] sm:$0xff] %v3779_v12  ;;  %v3780_v46 = vmax.f32 %v3748_v13, 0.0  ;;  %v3857_v13 = vpack.c.bf16 %v3826_v37, %v3825_v38 }
 0x47d   : > { %3809 = vst [vmem:[#allocation2 + $0x128] sm:$0xff] %v3777_v22  ;;  %v3778_v50 = vmax.f32 %v3746_v24, 0.0  ;;  %v8411_v35 = vpop.f32.mrb[36].mxu1  ;;  %v3828_v24 = vld [vmem:[#allocation2 + $0x2f] sm:$0xff] }
 0x47e   : > { %3812 = vst [vmem:[#allocation2 + $0x150] sm:$0xff] %v3780_v46  ;;  %v3712_v62 = vmul.f32 %v8411_v35, %v10356_v40  ;;  %v3604_v11 = vpop.f32.mrb[37].mxu1  ;;  %v3931_v17 = vpack.c.bf16 %v3780_v46, %v3779_v12  ;;  %8484 = vmatpush3.bf16.msra.mxu0 %v9566_v59  ;;  %v3830_v46 = vld [vmem:[#allocation2 + $0x4f] sm:$0xff]  ;;  %v3829_v35 = vld [vmem:[#allocation2 + $0x47] sm:$0xff] }
 0x47f   : > { %3810 = vst [vmem:[#allocation2 + $0x130] sm:$0xff] %v3778_v50  ;;  %v3710_v21 = vmul.f32 %v10356_v40, %v3604_v11  ;;  %v8412_v26 = vpop.f32.mrb[38].mxu1  ;;  %v10407_v30 = vpack.c.bf16 %v3778_v50, %v3777_v22  ;;  %8517 = vmatprep.subr.bf16.mxu0 %v10403_v33  ;;  %v3827_v50 = vld [vmem:[#allocation2 + $0x27] sm:$0xff]  ;;  %v10452_v11 = vpack.c.bf16 %v3830_v46, %v3829_v35 }
 0x480   : > { %v3751_v39 = vadd.f32 %v10361_v18, %v3712_v62  ;;  %v3713_v42 = vmul.f32 %v8412_v26, %v10356_v40  ;;  %v3607_v47 = vpop.f32.mrb[39].mxu1  ;;  %v9568_v62 = vld [vmem:[#allocation8 + $0x88] sm:$0xff]  }
 0x481   : > { %v3749_v48 = vadd.f32 %v10361_v18, %v3710_v21  ;;  %v3711_v54 = vmul.f32 %v10356_v40, %v3607_v47  ;;  %8454 = vmatmul.mubr.bf16.gmra.mrb[32].mxu0 %v10407_v30  ;;  %v3832_v21 = vld [vmem:[#allocation2 + $0x6f] sm:$0xff]  ;;  %v3833_v47 = vld [vmem:[#allocation2 + $0x87] sm:$0xff] }
 0x482   : > { %v3783_v55 = vmax.f32 %v3751_v39, 0.0  ;;  %v3752_v60 = vadd.f32 %v10361_v18, %v3713_v42  ;;  %8457 = vmatprep.mubr.bf16.mxu0 %v3931_v17  ;;  %v9569_v17 = vld [vmem:[#allocation8 + $0x90] sm:$0xff]   ;;  %v3831_v39 = vld [vmem:[#allocation2 + $0x67] sm:$0xff] }
 0x483   : > { %v3781_v61 = vmax.f32 %v3749_v48, 0.0  ;;  %v3750_v4 = vadd.f32 %v10361_v18, %v3711_v54  ;;  %v3834_v26 = vld [vmem:[#allocation2 + $0x8f] sm:$0xff]  ;;  %v10457_v42 = vpack.c.bf16 %v3832_v21, %v3831_v39  ;;  %v9570_v48 = vld [vmem:[#allocation8 + $0x98] sm:$0xff]  }
 0x484   : > { %3815 = vst [vmem:[#allocation2 + $0x188] sm:$0xff] %v3783_v55  ;;  %v3784_v5 = vmax.f32 %v3752_v60, 0.0  ;;  %v10459_v54 = vpack.c.bf16 %v3834_v26, %v3833_v47  ;;  %v3838_v60 = vld [vmem:[#allocation2 + $0xcf] sm:$0xff] }
 0x485   : > { %3813 = vst [vmem:[#allocation2 + $0x168] sm:$0xff] %v3781_v61  ;;  %v3782_v6 = vmax.f32 %v3750_v4, 0.0  ;;  %v8415_v15 = vpop.f32.mrb[40].mxu1  ;;  %v4376_v46 = vld [vmem:[#allocation2 + $0x49] sm:$0xff]  ;;  %v4379_v39 = vld [vmem:[#allocation2 + $0x71] sm:$0xff] }
 0x486   : > { %3816 = vst [vmem:[#allocation2 + $0x190] sm:$0xff] %v3784_v5  ;;  %v3716_v16 = vmul.f32 %v8415_v15, %v10356_v40  ;;  %v3620_v23 = vpop.f32.mrb[41].mxu1  ;;  %v10418_v34 = vpack.c.bf16 %v3784_v5, %v3783_v55  ;;  %v3836_v55 = vld [vmem:[#allocation2 + $0xaf] sm:$0xff]  ;;  %v3837_v5 = vld [vmem:[#allocation2 + $0xc7] sm:$0xff] }
 0x487   : > { %3814 = vst [vmem:[#allocation2 + $0x170] sm:$0xff] %v3782_v6  ;;  %v3714_v58 = vmul.f32 %v10356_v40, %v3620_v23  ;;  %v8416_v1 = vpop.f32.mrb[42].mxu1  ;;  %v10421_v3 = vpack.c.bf16 %v3782_v6, %v3781_v61  ;;  %v3835_v61 = vld [vmem:[#allocation2 + $0xa7] sm:$0xff]  ;;  %v10465_v15 = vpack.c.bf16 %v3838_v60, %v3837_v5  ;;  %v3840_v23 = vld [vmem:[#allocation2 + $0xef] sm:$0xff] }
 0x488   : > { %v3755_v7 = vadd.f32 %v10361_v18, %v3716_v16  ;;  %v3717_v8 = vmul.f32 %v8416_v1, %v10356_v40  ;;  %v3623_v10 = vpop.f32.mrb[43].mxu1  ;;  %v10463_v4 = vpack.c.bf16 %v3836_v55, %v3835_v61  ;;  %v9572_v6 = vld [vmem:[#allocation8 + $0xa8] sm:$0xff]   ;;  %v9573_v16 = vld [vmem:[#allocation8 + $0xb0] sm:$0xff]   ;;  %v9578_v55 = vld [vmem:[#allocation8 + $0xd8] sm:$0xff]  }
 0x489   : > { %v3753_v14 = vadd.f32 %v10361_v18, %v3714_v58  ;;  %v3715_v20 = vmul.f32 %v10356_v40, %v3623_v10  ;;  %8458 = vmatmul.mubr.bf16.gmra.mrb[36].mxu0 %v10421_v3  ;;  %v3842_v58 = vld [vmem:[#allocation2 + $0x10f] sm:$0xff]  ;;  %v3839_v1 = vld [vmem:[#allocation2 + $0xe7] sm:$0xff]  ;;  %v9574_v10 = vld [vmem:[#allocation8 + $0xb8] sm:$0xff]  }
 0x48a   : > { %v3787_v25 = vmax.f32 %v3755_v7, 0.0  ;;  %v3756_v27 = vadd.f32 %v10361_v18, %v3717_v8  ;;  %8461 = vmatprep.mubr.bf16.mxu0 %v10418_v34  ;;  %v10469_v7 = vpack.c.bf16 %v3840_v23, %v3839_v1  ;;  %v3841_v8 = vld [vmem:[#allocation2 + $0x107] sm:$0xff]  ;;  %v9577_v21 = vld [vmem:[#allocation8 + $0xd0] sm:$0xff]  }
 0x48b   : > { %v3785_v29 = vmax.f32 %v3753_v14, 0.0  ;;  %v3754_v31 = vadd.f32 %v10361_v18, %v3715_v20  ;;  %v10471_v14 = vpack.c.bf16 %v3842_v58, %v3841_v8  ;;  %v9575_v20 = vld [vmem:[#allocation8 + $0xc0] sm:$0xff]   ;;  %v4378_v26 = vld [vmem:[#allocation2 + $0x69] sm:$0xff]  ;;  %v4385_v23 = vld [vmem:[#allocation2 + $0xd1] sm:$0xff] }
 0x48c   : > { %3819 = vst [vmem:[#allocation2 + $0x1c8] sm:$0xff] %v3787_v25  ;;  %v3788_v9 = vmax.f32 %v3756_v27, 0.0  ;;  %v3846_v27 = vld [vmem:[#allocation2 + $0x14f] sm:$0xff]  ;;  %v9579_v61 = vld [vmem:[#allocation8 + $0xe0] sm:$0xff]  }
 0x48d   : > { %3817 = vst [vmem:[#allocation2 + $0x1a8] sm:$0xff] %v3785_v29  ;;  %v3786_v32 = vmax.f32 %v3754_v31, 0.0  ;;  %v8419_v36 = vpop.f32.mrb[44].mxu1  ;;  %v4380_v47 = vld [vmem:[#allocation2 + $0x89] sm:$0xff] }
 0x48e   : > { %3820 = vst [vmem:[#allocation2 + $0x1d0] sm:$0xff] %v3788_v9  ;;  %v3720_v41 = vmul.f32 %v8419_v36, %v10356_v40  ;;  %v3636_v43 = vpop.f32.mrb[45].mxu1  ;;  %v10432_v44 = vpack.c.bf16 %v3788_v9, %v3787_v25  ;;  %v3844_v25 = vld [vmem:[#allocation2 + $0x12f] sm:$0xff]  ;;  %v3845_v9 = vld [vmem:[#allocation2 + $0x147] sm:$0xff] }
 0x48f   : > { %3818 = vst [vmem:[#allocation2 + $0x1b0] sm:$0xff] %v3786_v32  ;;  %v3718_v45 = vmul.f32 %v10356_v40, %v3636_v43  ;;  %v8420_v49 = vpop.f32.mrb[46].mxu1  ;;  %v10435_v51 = vpack.c.bf16 %v3786_v32, %v3785_v29  ;;  %v3843_v29 = vld [vmem:[#allocation2 + $0x127] sm:$0xff]  ;;  %v10477_v32 = vpack.c.bf16 %v3846_v27, %v3845_v9  ;;  %v3848_v36 = vld [vmem:[#allocation2 + $0x16f] sm:$0xff] }
 0x490   : > { %v3759_v53 = vadd.f32 %v10361_v18, %v3720_v41  ;;  %v3721_v56 = vmul.f32 %v8420_v49, %v10356_v40  ;;  %v3639_v57 = vpop.f32.mrb[47].mxu1  ;;  %v10475_v31 = vpack.c.bf16 %v3844_v25, %v3843_v29  ;;  %v3850_v41 = vld [vmem:[#allocation2 + $0x18f] sm:$0xff]  ;;  %v3847_v43 = vld [vmem:[#allocation2 + $0x167] sm:$0xff] }
 0x491   : > { %v3757_v63 = vadd.f32 %v10361_v18, %v3718_v45  ;;  %v3719_v0 = vmul.f32 %v10356_v40, %v3639_v57  ;;  %8462 = vmatmul.mubr.bf16.gmra.mrb[40].mxu0 %v10435_v51  ;;  %v10481_v45 = vpack.c.bf16 %v3848_v36, %v3847_v43  ;;  %v3849_v49 = vld [vmem:[#allocation2 + $0x187] sm:$0xff]  ;;  %v4387_v25 = vld [vmem:[#allocation2 + $0xf1] sm:$0xff] }
 0x492   : > { %v3791_v19 = vmax.f32 %v3759_v53, 0.0  ;;  %v3760_v59 = vadd.f32 %v10361_v18, %v3721_v56  ;;  %8465 = vmatprep.mubr.bf16.mxu0 %v10432_v44  ;;  %v10483_v53 = vpack.c.bf16 %v3850_v41, %v3849_v49  ;;  %v4382_v5 = vld [vmem:[#allocation2 + $0xa9] sm:$0xff]  ;;  %v4389_v29 = vld [vmem:[#allocation2 + $0x111] sm:$0xff]  ;;  %v9583_v43 = vld [vmem:[#allocation8 + $0x100] sm:$0xff]  }
 0x493   : > { %v3789_v52 = vmax.f32 %v3757_v63, 0.0  ;;  %v3758_v28 = vadd.f32 %v10361_v18, %v3719_v0  ;;  %v10450_v18 = vpack.c.bf16 %v3828_v24, %v3827_v50  ;;  %v4375_v24 = vld [vmem:[#allocation2 + $0x31] sm:$0xff]  ;;  %v9580_v1 = vld [vmem:[#allocation8 + $0xe8] sm:$0xff]  }
 0x494   : > { %3823 = vst [vmem:[#allocation2 + $0x208] sm:$0xff] %v3791_v19  ;;  %v3792_v2 = vmax.f32 %v3760_v59, 0.0  ;;  %v3851_v63 = vld [vmem:[#allocation2 + $0x1a7] sm:$0xff]  ;;  %v4377_v50 = vld [vmem:[#allocation2 + $0x51] sm:$0xff] }
 0x495   : > { %3821 = vst [vmem:[#allocation2 + $0x1e8] sm:$0xff] %v3789_v52  ;;  %v3790_v12 = vmax.f32 %v3758_v28, 0.0  ;;  %v3854_v57 = vld [vmem:[#allocation2 + $0x1cf] sm:$0xff]  ;;  %v9582_v36 = vld [vmem:[#allocation8 + $0xf8] sm:$0xff]  }
 0x496   : > { %3824 = vst [vmem:[#allocation2 + $0x210] sm:$0xff] %v3792_v2  ;;  %v10445_v22 = vpack.c.bf16 %v3792_v2, %v3791_v19  ;;  %v3852_v56 = vld [vmem:[#allocation2 + $0x1af] sm:$0xff]  ;;  %v3853_v19 = vld [vmem:[#allocation2 + $0x1c7] sm:$0xff] }
 0x497   : > { %3822 = vst [vmem:[#allocation2 + $0x1f0] sm:$0xff] %v3790_v12  ;;  %v10447_v40 = vpack.c.bf16 %v3790_v12, %v3789_v52  ;;  %v10487_v0 = vpack.c.bf16 %v3852_v56, %v3851_v63  ;;  %v10489_v59 = vpack.c.bf16 %v3854_v57, %v3853_v19  ;;  %v4372_v52 = vld [vmem:[#allocation2 + $0x9] sm:$0xff]  ;;  %v4373_v28 = vld [vmem:[#allocation2 + $0x11] sm:$0xff] }
 0x498   : > { %v4404_v2 = vpack.c.bf16 %v4373_v28, %v4372_v52  ;;  %v4388_v27 = vld [vmem:[#allocation2 + $0x109] sm:$0xff]  ;;  %v4391_v56 = vld [vmem:[#allocation2 + $0x131] sm:$0xff] }
 0x499   : > { %8466 = vmatmul.mubr.bf16.gmra.mrb[44].mxu0 %v10447_v40  ;;  %v10516_v41 = vpack.c.bf16 %v4389_v29, %v4388_v27  ;;  %v4390_v49 = vld [vmem:[#allocation2 + $0x129] sm:$0xff]  ;;  %v4393_v63 = vld [vmem:[#allocation2 + $0x151] sm:$0xff] }
 0x49a   : > { %8485 = vmatprep.mubr.bf16.mxu0 %v3857_v13  ;;  %v4374_v13 = vld [vmem:[#allocation2 + $0x29] sm:$0xff]  ;;  %v10520_v19 = vpack.c.bf16 %v4391_v56, %v4390_v49 }
 0x49b   : > { %v10496_v35 = vpack.c.bf16 %v4375_v24, %v4374_v13  ;;  %v4392_v57 = vld [vmem:[#allocation2 + $0x149] sm:$0xff] }
 0x49c   : > { %v3855_v37 = vld [vmem:[#allocation2 + $0x1e7] sm:$0xff]  ;;  %v10522_v52 = vpack.c.bf16 %v4393_v63, %v4392_v57  ;;  %v4987_v49 = vld [vmem:[#allocation2 + $0x50] sm:$0xff] }
 0x49d   : > { %v4394_v28 = vld [vmem:[#allocation2 + $0x169] sm:$0xff] }
 0x49e   : > { %v3856_v38 = vld [vmem:[#allocation2 + $0x1ef] sm:$0xff]  ;;  %v4708_v27 = vld [vmem:[#allocation2 + $0x207] sm:$0xff] }
 0x49f   : > { %v10493_v12 = vpack.c.bf16 %v3856_v38, %v3855_v37  ;;  %v4395_v38 = vld [vmem:[#allocation2 + $0x171] sm:$0xff]  ;;  %v4396_v37 = vld [vmem:[#allocation2 + $0x189] sm:$0xff] }
 0x4a0   : > { %v10526_v13 = vpack.c.bf16 %v4395_v38, %v4394_v28  ;;  %v4989_v56 = vld [vmem:[#allocation2 + $0x70] sm:$0xff]  ;;  %v4986_v57 = vld [vmem:[#allocation2 + $0x48] sm:$0xff] }
 0x4a1   : > { %8486 = vmatmul.mubr.bf16.vlgmr.msra.gmra.mrb[16].mxu0 %v10450_v18  ;;  %v10559_v63 = vpack.c.bf16 %v4987_v49, %v4986_v57  ;;  %v4988_v28 = vld [vmem:[#allocation2 + $0x68] sm:$0xff]  ;;  %v9598_v49 = vld [vmem:[#allocation8 + $0x178] sm:$0xff]   ;;  %v5003_v57 = vld [vmem:[#allocation2 + $0x150] sm:$0xff] }
 0x4a2   : > { %8518 = vmatpush3.bf16.msra.mxu0 %v10403_v33  ;;  %8489 = vmatprep.mubr.bf16.mxu0 %v10452_v11  ;;  %v9571_v33 = vld [vmem:[#allocation8 + $0xa0] sm:$0xff]   ;;  %v9592_v38 = vld [vmem:[#allocation8 + $0x148] sm:$0xff]  }
 0x4a3   : > { %8519 = vmatprep.subr.bf16.mxu0 %v9568_v62 }
 0x4a6   : > { %8520 = vmatpush3.bf16.msra.mxu0 %v9568_v62  ;;  %v9576_v62 = vld [vmem:[#allocation8 + $0xc8] sm:$0xff]  }
 0x4a7   : > { %8521 = vmatprep.subr.bf16.mxu0 %v9569_v17 }
 0x4a9   : > { %8490 = vmatmul.mubr.bf16.gmra.mrb[20].mxu0 %v10457_v42 }
 0x4aa   : > { %8493 = vmatprep.mubr.bf16.mxu0 %v10459_v54  ;;  %8522 = vmatpush3.bf16.msra.mxu0 %v9569_v17  ;;  %v10498_v17 = vpack.c.bf16 %v4377_v50, %v4376_v46  ;;  %v4398_v46 = vld [vmem:[#allocation2 + $0x1a9] sm:$0xff]  ;;  %v4399_v50 = vld [vmem:[#allocation2 + $0x1b1] sm:$0xff] }
 0x4ab   : > { %8523 = vmatprep.subr.bf16.mxu0 %v9570_v48 }
 0x4ae   : > { %8524 = vmatpush3.bf16.msra.mxu0 %v9570_v48  ;;  %v4381_v48 = vld [vmem:[#allocation2 + $0x91] sm:$0xff] }
 0x4af   : > { %8525 = vmatprep.subr.bf16.mxu0 %v9571_v33  ;;  %v10504_v60 = vpack.c.bf16 %v4381_v48, %v4380_v47  ;;  %v4402_v47 = vld [vmem:[#allocation2 + $0x1e9] sm:$0xff]  ;;  %v4403_v48 = vld [vmem:[#allocation2 + $0x1f1] sm:$0xff] }
 0x4b1   : > { %8494 = vmatmul.mubr.bf16.gmra.mrb[24].mxu0 %v10463_v4 }
 0x4b2   : > { %8497 = vmatprep.mubr.bf16.mxu0 %v10465_v15  ;;  %8526 = vmatpush3.bf16.msra.mxu0 %v9571_v33  ;;  %v10502_v33 = vpack.c.bf16 %v4379_v39, %v4378_v26  ;;  %v10532_v26 = vpack.c.bf16 %v4399_v50, %v4398_v46  ;;  %v4991_v46 = vld [vmem:[#allocation2 + $0x90] sm:$0xff] }
 0x4b3   : > { %8527 = vmatprep.subr.bf16.mxu0 %v9572_v6  ;;  %v4993_v50 = vld [vmem:[#allocation2 + $0xb0] sm:$0xff] }
 0x4b6   : > { %8528 = vmatpush3.bf16.msra.mxu0 %v9572_v6  ;;  %v4383_v6 = vld [vmem:[#allocation2 + $0xb1] sm:$0xff] }
 0x4b7   : > { %8529 = vmatprep.subr.bf16.mxu0 %v9573_v16  ;;  %v10508_v58 = vpack.c.bf16 %v4383_v6, %v4382_v5  ;;  %v9585_v5 = vld [vmem:[#allocation8 + $0x110] sm:$0xff]   ;;  %v9586_v6 = vld [vmem:[#allocation8 + $0x118] sm:$0xff]  }
 0x4b9   : > { %8498 = vmatmul.mubr.bf16.gmra.mrb[28].mxu0 %v10469_v7 }
 0x4ba   : > { %8501 = vmatprep.mubr.bf16.mxu0 %v10471_v14  ;;  %8530 = vmatpush3.bf16.msra.mxu0 %v9573_v16  ;;  %v4384_v16 = vld [vmem:[#allocation2 + $0xc9] sm:$0xff] }
 0x4bb   : > { %8531 = vmatprep.subr.bf16.mxu0 %v9574_v10  ;;  %v10510_v8 = vpack.c.bf16 %v4385_v23, %v4384_v16  ;;  %v9587_v16 = vld [vmem:[#allocation8 + $0x120] sm:$0xff]   ;;  %v9589_v23 = vld [vmem:[#allocation8 + $0x130] sm:$0xff]  }
 0x4be   : > { %8532 = vmatpush3.bf16.msra.mxu0 %v9574_v10  ;;  %v9581_v10 = vld [vmem:[#allocation8 + $0xf0] sm:$0xff]  }
 0x4bf   : > { %8565 = vmatprep.subr.bf16.mxu0 %v9575_v20 }
 0x4c1   : > { %8502 = vmatmul.mubr.bf16.gmra.mrb[32].mxu0 %v10475_v31 }
 0x4c2   : > { %8505 = vmatprep.mubr.bf16.mxu0 %v10477_v32 }
 0x4c9   : > { %8506 = vmatmul.mubr.bf16.gmra.mrb[36].mxu0 %v10481_v45 }
 0x4ca   : > { %8509 = vmatprep.mubr.bf16.mxu0 %v10483_v53 }
 0x4d1   : > { %8510 = vmatmul.mubr.bf16.gmra.mrb[40].mxu0 %v10487_v0 }
 0x4d2   : > { %8513 = vmatprep.mubr.bf16.mxu0 %v10489_v59 }
 0x4d9   : > { %8514 = vmatmul.mubr.bf16.gmra.mrb[44].mxu0 %v10493_v12 }
 0x4da   : > { %8533 = vmatprep.mubr.bf16.mxu0 %v4404_v2  ;;  %v4397_v2 = vld [vmem:[#allocation2 + $0x191] sm:$0xff] }
 0x4db   : > { %v10528_v24 = vpack.c.bf16 %v4397_v2, %v4396_v37  ;;  %v10561_v37 = vpack.c.bf16 %v4989_v56, %v4988_v28  ;;  %v9593_v2 = vld [vmem:[#allocation8 + $0x150] sm:$0xff]   ;;  %v9599_v56 = vld [vmem:[#allocation8 + $0x180] sm:$0xff]   ;;  %v5002_v28 = vld [vmem:[#allocation2 + $0x148] sm:$0xff] }
 0x4e1   : > { %8534 = vmatmul.mubr.bf16.vlgmr.msra.gmra.mrb[16].mxu0 %v10496_v35 }
 0x4e2   : > { %8566 = vmatpush3.bf16.msra.mxu0 %v9575_v20  ;;  %8537 = vmatprep.mubr.bf16.mxu0 %v10498_v17  ;;  %v4386_v20 = vld [vmem:[#allocation2 + $0xe9] sm:$0xff] }
 0x4e3   : > { %8567 = vmatprep.subr.bf16.mxu0 %v9576_v62  ;;  %v10514_v9 = vpack.c.bf16 %v4387_v25, %v4386_v20  ;;  %v4709_v20 = vld [vmem:[#allocation2 + $0x20f] sm:$0xff] }
 0x4e4   : > { %v4985_v25 = vld [vmem:[#allocation2 + $0x30] sm:$0xff]  ;;  %v10556_v29 = vpack.c.bf16 %v4709_v20, %v4708_v27 }
 0x4e5   : > { %v4999_v27 = vld [vmem:[#allocation2 + $0x110] sm:$0xff] }
 0x4e6   : > { %8568 = vmatpush3.bf16.msra.mxu0 %v9576_v62  ;;  %v4400_v62 = vld [vmem:[#allocation2 + $0x1c9] sm:$0xff] }
 0x4e7   : > { %8569 = vmatprep.subr.bf16.mxu0 %v9577_v21 }
 0x4e9   : > { %8538 = vmatmul.mubr.bf16.gmra.mrb[20].mxu0 %v10502_v33 }
 0x4ea   : > { %8541 = vmatprep.mubr.bf16.mxu0 %v10504_v60  ;;  %8570 = vmatpush3.bf16.msra.mxu0 %v9577_v21  ;;  %v4401_v21 = vld [vmem:[#allocation2 + $0x1d1] sm:$0xff] }
 0x4eb   : > { %8571 = vmatprep.subr.bf16.mxu0 %v9578_v55  ;;  %v10534_v39 = vpack.c.bf16 %v4401_v21, %v4400_v62  ;;  %v4990_v62 = vld [vmem:[#allocation2 + $0x88] sm:$0xff] }
 0x4ec   : > { %v10565_v21 = vpack.c.bf16 %v4991_v46, %v4990_v62  ;;  %v5924_v46 = vld [vmem:[#allocation2 + $0x1a8] sm:$0xff] }
 0x4ed   : > { %v5926_v62 = vld [vmem:[#allocation2 + $0x1c8] sm:$0xff] }
 0x4ee   : > { %8572 = vmatpush3.bf16.msra.mxu0 %v9578_v55  ;;  %v10538_v55 = vpack.c.bf16 %v4403_v48, %v4402_v47  ;;  %v4992_v47 = vld [vmem:[#allocation2 + $0xa8] sm:$0xff]  ;;  %v9594_v48 = vld [vmem:[#allocation8 + $0x158] sm:$0xff]  }
 0x4ef   : > { %8573 = vmatprep.subr.bf16.mxu0 %v9579_v61 }
 0x4f1   : > { %8542 = vmatmul.mubr.bf16.gmra.mrb[24].mxu0 %v10508_v58 }
 0x4f2   : > { %8545 = vmatprep.mubr.bf16.mxu0 %v10510_v8  ;;  %8574 = vmatpush3.bf16.msra.mxu0 %v9579_v61  ;;  %v9584_v61 = vld [vmem:[#allocation8 + $0x108] sm:$0xff]  }
 0x4f3   : > { %8575 = vmatprep.subr.bf16.mxu0 %v9580_v1 }
 0x4f6   : > { %8576 = vmatpush3.bf16.msra.mxu0 %v9580_v1  ;;  %v9590_v1 = vld [vmem:[#allocation8 + $0x138] sm:$0xff]  }
 0x4f7   : > { %8577 = vmatprep.subr.bf16.mxu0 %v9581_v10 }
 0x4f9   : > { %8546 = vmatmul.mubr.bf16.gmra.mrb[28].mxu0 %v10514_v9 }
 0x4fa   : > { %8549 = vmatprep.mubr.bf16.mxu0 %v10516_v41  ;;  %8578 = vmatpush3.bf16.msra.mxu0 %v9581_v10  ;;  %v9591_v10 = vld [vmem:[#allocation8 + $0x140] sm:$0xff]  }
 0x4fb   : > { %8579 = vmatprep.subr.bf16.mxu0 %v9582_v36 }
 0x4fe   : > { %8580 = vmatpush3.bf16.msra.mxu0 %v9582_v36  ;;  %v4984_v36 = vld [vmem:[#allocation2 + $0x28] sm:$0xff] }
 0x4ff   : > { %8613 = vmatprep.subr.bf16.mxu0 %v9583_v43 }
 0x501   : > { %8550 = vmatmul.mubr.bf16.gmra.mrb[32].mxu0 %v10520_v19 }
 0x502   : > { %8553 = vmatprep.mubr.bf16.mxu0 %v10522_v52 }
 0x509   : > { %8554 = vmatmul.mubr.bf16.gmra.mrb[36].mxu0 %v10526_v13 }
 0x50a   : > { %8557 = vmatprep.mubr.bf16.mxu0 %v10528_v24 }
 0x511   : > { %8558 = vmatmul.mubr.bf16.gmra.mrb[40].mxu0 %v10532_v26 }
 0x512   : > { %8561 = vmatprep.mubr.bf16.mxu0 %v10534_v39 }
 0x519   : > { %8562 = vmatmul.mubr.bf16.gmra.mrb[44].mxu0 %v10538_v55 }
 0x51a   : > { %8581 = vmatprep.mubr.bf16.mxu0 %v10450_v18  ;;  %v9588_v18 = vld [vmem:[#allocation8 + $0x128] sm:$0xff]  }
 0x521   : > { %8582 = vmatmul.mubr.bf16.vlgmr.msra.gmra.mrb[16].mxu0 %v10452_v11 }
 0x522   : > { %8614 = vmatpush3.bf16.msra.mxu0 %v9583_v43  ;;  %8585 = vmatprep.mubr.bf16.mxu0 %v10457_v42  ;;  %v5016_v43 = vpack.c.bf16 %v4985_v25, %v4984_v36  ;;  %v9597_v25 = vld [vmem:[#allocation8 + $0x170] sm:$0xff]   ;;  %v4998_v36 = vld [vmem:[#allocation2 + $0x108] sm:$0xff] }
 0x523   : > { %8615 = vmatprep.subr.bf16.mxu0 %v9584_v61 }
 0x526   : > { %8616 = vmatpush3.bf16.msra.mxu0 %v9584_v61  ;;  %v10567_v61 = vpack.c.bf16 %v4993_v50, %v4992_v47  ;;  %v5929_v47 = vld [vmem:[#allocation2 + $0x1f0] sm:$0xff] }
 0x527   : > { %8617 = vmatprep.subr.bf16.mxu0 %v9585_v5 }
 0x529   : > { %8586 = vmatmul.mubr.bf16.gmra.mrb[20].mxu0 %v10459_v54 }
 0x52a   : > { %8589 = vmatprep.mubr.bf16.mxu0 %v10463_v4  ;;  %8618 = vmatpush3.bf16.msra.mxu0 %v9585_v5  ;;  %v9595_v5 = vld [vmem:[#allocation8 + $0x160] sm:$0xff]  }
 0x52b   : > { %8619 = vmatprep.subr.bf16.mxu0 %v9586_v6 }
 0x52e   : > { %8620 = vmatpush3.bf16.msra.mxu0 %v9586_v6  ;;  %v4995_v6 = vld [vmem:[#allocation2 + $0xd0] sm:$0xff] }
 0x52f   : > { %8621 = vmatprep.subr.bf16.mxu0 %v9587_v16 }
 0x531   : > { %8590 = vmatmul.mubr.bf16.gmra.mrb[24].mxu0 %v10465_v15 }
 0x532   : > { %8593 = vmatprep.mubr.bf16.mxu0 %v10469_v7  ;;  %8622 = vmatpush3.bf16.msra.mxu0 %v9587_v16  ;;  %v4997_v16 = vld [vmem:[#allocation2 + $0xf0] sm:$0xff] }
 0x533   : > { %8623 = vmatprep.subr.bf16.mxu0 %v9588_v18 }
 0x536   : > { %8624 = vmatpush3.bf16.msra.mxu0 %v9588_v18  ;;  %v4994_v18 = vld [vmem:[#allocation2 + $0xc8] sm:$0xff] }
 0x537   : > { %8625 = vmatprep.subr.bf16.mxu0 %v9589_v23 }
 0x539   : > { %8594 = vmatmul.mubr.bf16.gmra.mrb[28].mxu0 %v10471_v14 }
 0x53a   : > { %8597 = vmatprep.mubr.bf16.mxu0 %v10475_v31  ;;  %8626 = vmatpush3.bf16.msra.mxu0 %v9589_v23  ;;  %v10571_v23 = vpack.c.bf16 %v4995_v6, %v4994_v18  ;;  %v5930_v6 = vld [vmem:[#allocation2 + $0x208] sm:$0xff]  ;;  %v9624_v18 = vld [vmem:[#allocation2] sm:$0xff] }
 0x53b   : > { %8627 = vmatprep.subr.bf16.mxu0 %v9590_v1 }
 0x53e   : > { %8628 = vmatpush3.bf16.msra.mxu0 %v9590_v1  ;;  %v4996_v1 = vld [vmem:[#allocation2 + $0xe8] sm:$0xff] }
 0x53f   : > { %8661 = vmatprep.subr.bf16.mxu0 %v9591_v10  ;;  %v10573_v20 = vpack.c.bf16 %v4997_v16, %v4996_v1  ;;  %v6208_v1 = vld [vmem:[#allocation2 + $0x49] sm:$0xff] }
 0x541   : > { %8598 = vmatmul.mubr.bf16.gmra.mrb[32].mxu0 %v10477_v32 }
 0x542   : > { %8601 = vmatprep.mubr.bf16.mxu0 %v10481_v45 }
 0x549   : > { %8602 = vmatmul.mubr.bf16.gmra.mrb[36].mxu0 %v10483_v53 }
 0x54a   : > { %8605 = vmatprep.mubr.bf16.mxu0 %v10487_v0 }
 0x551   : > { %8606 = vmatmul.mubr.bf16.gmra.mrb[40].mxu0 %v10489_v59 }
 0x552   : > { %8609 = vmatprep.mubr.bf16.mxu0 %v10493_v12 }
 0x559   : > { %8610 = vmatmul.mubr.bf16.gmra.mrb[44].mxu0 %v10556_v29 }
 0x55a   : > { %8629 = vmatprep.mubr.bf16.mxu0 %v5016_v43  ;;  %v10577_v43 = vpack.c.bf16 %v4999_v27, %v4998_v36  ;;  %v6211_v27 = vld [vmem:[#allocation2 + $0x71] sm:$0xff]  ;;  %v6212_v36 = vld [vmem:[#allocation2 + $0x89] sm:$0xff] }
 0x561   : > { %8630 = vmatmul.mubr.bf16.vlgmr.msra.gmra.mrb[16].mxu0 %v10559_v63 }
 0x562   : > { %8662 = vmatpush3.bf16.msra.mxu0 %v9591_v10  ;;  %8633 = vmatprep.mubr.bf16.mxu0 %v10561_v37  ;;  %v9596_v10 = vld [vmem:[#allocation8 + $0x168] sm:$0xff]  }
 0x563   : > { %8663 = vmatprep.subr.bf16.mxu0 %v9592_v38 }
 0x566   : > { %8664 = vmatpush3.bf16.msra.mxu0 %v9592_v38  ;;  %v10581_v38 = vpack.c.bf16 %v5003_v57, %v5002_v28  ;;  %v6214_v57 = vld [vmem:[#allocation2 + $0xa9] sm:$0xff]  ;;  %v6215_v28 = vld [vmem:[#allocation2 + $0xb1] sm:$0xff] }
 0x567   : > { %8665 = vmatprep.subr.bf16.mxu0 %v9593_v2 }
 0x569   : > { %8634 = vmatmul.mubr.bf16.gmra.mrb[20].mxu0 %v10565_v21 }
 0x56a   : > { %8637 = vmatprep.mubr.bf16.mxu0 %v10567_v61  ;;  %8666 = vmatpush3.bf16.msra.mxu0 %v9593_v2  ;;  %v5927_v2 = vld [vmem:[#allocation2 + $0x1d0] sm:$0xff] }
 0x56b   : > { %8667 = vmatprep.subr.bf16.mxu0 %v9594_v48 }
 0x56e   : > { %8668 = vmatpush3.bf16.msra.mxu0 %v9594_v48  ;;  %v5931_v48 = vld [vmem:[#allocation2 + $0x210] sm:$0xff] }
 0x56f   : > { %8669 = vmatprep.subr.bf16.mxu0 %v9595_v5  ;;  %v5948_v16 = vpack.c.bf16 %v5931_v48, %v5930_v6 }
 0x571   : > { %8638 = vmatmul.mubr.bf16.gmra.mrb[24].mxu0 %v10571_v23 }
 0x572   : > { %8641 = vmatprep.mubr.bf16.mxu0 %v10573_v20  ;;  %8670 = vmatpush3.bf16.msra.mxu0 %v9595_v5 }
 0x573   : > { %8671 = vmatprep.subr.bf16.mxu0 %v9596_v10 }
 0x576   : > { %8672 = vmatpush3.bf16.msra.mxu0 %v9596_v10  ;;  %v6209_v10 = vld [vmem:[#allocation2 + $0x51] sm:$0xff] }
 0x577   : > { %8673 = vmatprep.subr.bf16.mxu0 %v9597_v25 }
 0x579   : > { %8642 = vmatmul.mubr.bf16.gmra.mrb[28].mxu0 %v10577_v43 }
 0x57a   : > { %8645 = vmatprep.mubr.bf16.mxu0 %v10407_v30  ;;  %8674 = vmatpush3.bf16.msra.mxu0 %v9597_v25  ;;  %v9600_v30 = vld [vmem:[#allocation8 + $0x188] sm:$0xff]  }
 0x57b   : > { %8675 = vmatprep.subr.bf16.mxu0 %v9598_v49  ;;  %v6210_v25 = vld [vmem:[#allocation2 + $0x69] sm:$0xff] }
 0x57e   : > { %8676 = vmatpush3.bf16.msra.mxu0 %v9598_v49  ;;  %v6241_v49 = vpack.c.bf16 %v6211_v27, %v6210_v25 }
 0x57f   : > { %8709 = vmatprep.subr.bf16.mxu0 %v9599_v56 }
 0x581   : > { %8646 = vmatmul.mubr.bf16.gmra.mrb[32].mxu0 %v10581_v38 }
 0x582   : > { %8649 = vmatprep.mubr.bf16.mxu0 %v10421_v3  ;;  %v9601_v3 = vld [vmem:[#allocation8 + $0x190] sm:$0xff]  }
 0x589   : > { %8650 = vmatmul.mubr.bf16.gmra.mrb[36].mxu0 %v10418_v34  ;;  %v9602_v34 = vld [vmem:[#allocation8 + $0x198] sm:$0xff]  }
 0x58a   : > { %8653 = vmatprep.mubr.bf16.mxu0 %v10435_v51  ;;  %v9604_v51 = vld [vmem:[#allocation8 + $0x1a8] sm:$0xff]  }
 0x591   : > { %8654 = vmatmul.mubr.bf16.gmra.mrb[40].mxu0 %v10432_v44  ;;  %v9603_v44 = vld [vmem:[#allocation8 + $0x1a0] sm:$0xff]  }
 0x592   : > { %8657 = vmatprep.mubr.bf16.mxu0 %v10447_v40  ;;  %v9606_v40 = vld [vmem:[#allocation8 + $0x1b8] sm:$0xff]  }
 0x599   : > { %8658 = vmatmul.mubr.bf16.gmra.mrb[44].mxu0 %v10445_v22  ;;  %v9605_v22 = vld [vmem:[#allocation8 + $0x1b0] sm:$0xff]  }
 0x59a   : > { %8677 = vmatprep.mubr.bf16.mxu0 %v10496_v35  ;;  %v9607_v35 = vld [vmem:[#allocation8 + $0x1c0] sm:$0xff]  }
 0x5a1   : > { %8678 = vmatmul.mubr.bf16.vlgmr.msra.gmra.mrb[16].mxu0 %v10498_v17  ;;  %v5320_v17 = vld [vmem:[#allocation2 + $0x209] sm:$0xff] }
 0x5a2   : > { %8710 = vmatpush3.bf16.msra.mxu0 %v9599_v56  ;;  %8681 = vmatprep.mubr.bf16.mxu0 %v10502_v33  ;;  %v5321_v33 = vld [vmem:[#allocation2 + $0x211] sm:$0xff] }
 0x5a3   : > { %8711 = vmatprep.subr.bf16.mxu0 %v9600_v30 }
 0x5a6   : > { %8712 = vmatpush3.bf16.msra.mxu0 %v9600_v30  ;;  %v6217_v30 = vld [vmem:[#allocation2 + $0xd1] sm:$0xff] }
 0x5a7   : > { %8713 = vmatprep.subr.bf16.mxu0 %v9601_v3 }
 0x5a9   : > { %8682 = vmatmul.mubr.bf16.gmra.mrb[20].mxu0 %v10504_v60  ;;  %v10605_v60 = vpack.c.bf16 %v5321_v33, %v5320_v17  ;;  %v6222_v33 = vld [vmem:[#allocation2 + $0x129] sm:$0xff] }
 0x5aa   : > { %8685 = vmatprep.mubr.bf16.mxu0 %v10508_v58  ;;  %8714 = vmatpush3.bf16.msra.mxu0 %v9601_v3  ;;  %v9608_v58 = vld [vmem:[#allocation8 + $0x1c8] sm:$0xff]   ;;  %v6243_v3 = vpack.c.bf16 %v6215_v28, %v6214_v57 }
 0x5ab   : > { %8715 = vmatprep.subr.bf16.mxu0 %v9602_v34 }
 0x5ae   : > { %8716 = vmatpush3.bf16.msra.mxu0 %v9602_v34 }
 0x5af   : > { %8717 = vmatprep.subr.bf16.mxu0 %v9603_v44 }
 0x5b1   : > { %8686 = vmatmul.mubr.bf16.gmra.mrb[24].mxu0 %v10510_v8  ;;  %v9609_v8 = vld [vmem:[#allocation8 + $0x1d0] sm:$0xff]  }
 0x5b2   : > { %8689 = vmatprep.mubr.bf16.mxu0 %v10514_v9  ;;  %8718 = vmatpush3.bf16.msra.mxu0 %v9603_v44  ;;  %v9610_v9 = vld [vmem:[#allocation8 + $0x1d8] sm:$0xff]   ;;  %v6218_v44 = vld [vmem:[#allocation2 + $0xe9] sm:$0xff] }
 0x5b3   : > { %8719 = vmatprep.subr.bf16.mxu0 %v9604_v51 }
 0x5b6   : > { %8720 = vmatpush3.bf16.msra.mxu0 %v9604_v51  ;;  %v6219_v51 = vld [vmem:[#allocation2 + $0xf1] sm:$0xff] }
 0x5b7   : > { %8721 = vmatprep.subr.bf16.mxu0 %v9605_v22 }
 0x5b9   : > { %8690 = vmatmul.mubr.bf16.gmra.mrb[28].mxu0 %v10516_v41  ;;  %v9611_v41 = vld [vmem:[#allocation8 + $0x1e0] sm:$0xff]  }
 0x5ba   : > { %8693 = vmatprep.mubr.bf16.mxu0 %v10520_v19  ;;  %8722 = vmatpush3.bf16.msra.mxu0 %v9605_v22  ;;  %v5916_v19 = vld [vmem:[#allocation2 + $0x128] sm:$0xff] }
 0x5bb   : > { %8723 = vmatprep.subr.bf16.mxu0 %v9606_v40  ;;  %v6220_v22 = vld [vmem:[#allocation2 + $0x109] sm:$0xff] }
 0x5be   : > { %8724 = vmatpush3.bf16.msra.mxu0 %v9606_v40  ;;  %v6221_v40 = vld [vmem:[#allocation2 + $0x111] sm:$0xff] }
 0x5bf   : > { %8757 = vmatprep.subr.bf16.mxu0 %v9607_v35  ;;  %v6246_v17 = vpack.c.bf16 %v6221_v40, %v6220_v22 }
 0x5c1   : > { %8694 = vmatmul.mubr.bf16.gmra.mrb[32].mxu0 %v10522_v52 }
 0x5c2   : > { %8697 = vmatprep.mubr.bf16.mxu0 %v10526_v13  ;;  %v9622_v13 = vld [vmem:[#allocation8 + $0x238] sm:$0xff]  }
 0x5c9   : > { %8698 = vmatmul.mubr.bf16.gmra.mrb[36].mxu0 %v10528_v24  ;;  %v5921_v24 = vld [vmem:[#allocation2 + $0x170] sm:$0xff] }
 0x5ca   : > { %8701 = vmatprep.mubr.bf16.mxu0 %v10532_v26  ;;  %v5923_v26 = vld [vmem:[#allocation2 + $0x190] sm:$0xff] }
 0x5d1   : > { %8702 = vmatmul.mubr.bf16.gmra.mrb[40].mxu0 %v10534_v39  ;;  %v5920_v39 = vld [vmem:[#allocation2 + $0x168] sm:$0xff] }
 0x5d2   : > { %8705 = vmatprep.mubr.bf16.mxu0 %v10538_v55  ;;  %v5943_v55 = vpack.c.bf16 %v5921_v24, %v5920_v39  ;;  %v6239_v24 = vld [vmem:[#allocation2 + $0x231] sm:$0xff]  ;;  %v10635_v39 = vld [vmem:[%s10975_s8] ss:$0 sm:$0xff] }
 0x5d9   : > { %8706 = vmatmul.mubr.bf16.gmra.mrb[44].mxu0 %v10605_v60 }
 0x5da   : > { %8725 = vmatprep.mubr.bf16.mxu0 %v10452_v11  ;;  %v9612_v11 = vld [vmem:[#allocation8 + $0x1e8] sm:$0xff]  }
 0x5e1   : > { %8726 = vmatmul.mubr.bf16.vlgmr.msra.gmra.mrb[16].mxu0 %v10457_v42  ;;  %v9613_v42 = vld [vmem:[#allocation8 + $0x1f0] sm:$0xff]  }
 0x5e2   : > { %8758 = vmatpush3.bf16.msra.mxu0 %v9607_v35  ;;  %8729 = vmatprep.mubr.bf16.mxu0 %v10459_v54  ;;  %v9614_v54 = vld [vmem:[#allocation8 + $0x1f8] sm:$0xff]   ;;  %v6245_v35 = vpack.c.bf16 %v6219_v51, %v6218_v44 }
 0x5e3   : > { %8759 = vmatprep.subr.bf16.mxu0 %v9608_v58 }
 0x5e6   : > { %8760 = vmatpush3.bf16.msra.mxu0 %v9608_v58  ;;  %v6223_v58 = vld [vmem:[#allocation2 + $0x131] sm:$0xff] }
 0x5e7   : > { %8761 = vmatprep.subr.bf16.mxu0 %v9609_v8 }
 0x5e9   : > { %8730 = vmatmul.mubr.bf16.gmra.mrb[20].mxu0 %v10463_v4  ;;  %v9615_v4 = vld [vmem:[#allocation8 + $0x200] sm:$0xff]  }
 0x5ea   : > { %8733 = vmatprep.mubr.bf16.mxu0 %v10465_v15  ;;  %8762 = vmatpush3.bf16.msra.mxu0 %v9609_v8  ;;  %v5626_v15 = vld [vmem:[#allocation2 + $0x227] sm:$0xff] }
 0x5eb   : > { %8763 = vmatprep.subr.bf16.mxu0 %v9610_v9  ;;  %v6224_v8 = vld [vmem:[#allocation2 + $0x149] sm:$0xff] }
 0x5ee   : > { %8764 = vmatpush3.bf16.msra.mxu0 %v9610_v9  ;;  %v6225_v9 = vld [vmem:[#allocation2 + $0x151] sm:$0xff] }
 0x5ef   : > { %8765 = vmatprep.subr.bf16.mxu0 %v9611_v41 }
 0x5f1   : > { %8734 = vmatmul.mubr.bf16.gmra.mrb[24].mxu0 %v10469_v7  ;;  %v5627_v7 = vld [vmem:[#allocation2 + $0x22f] sm:$0xff] }
 0x5f2   : > { %8737 = vmatprep.mubr.bf16.mxu0 %v10471_v14  ;;  %8766 = vmatpush3.bf16.msra.mxu0 %v9611_v41  ;;  %v5643_v14 = vpack.c.bf16 %v5627_v7, %v5626_v15  ;;  %v6247_v41 = vpack.c.bf16 %v6223_v58, %v6222_v33  ;;  %v6229_v15 = vld [vmem:[#allocation2 + $0x191] sm:$0xff] }
 0x5f3   : > { %8767 = vmatprep.subr.bf16.mxu0 %v9612_v11 }
 0x5f6   : > { %8768 = vmatpush3.bf16.msra.mxu0 %v9612_v11  ;;  %v6248_v11 = vpack.c.bf16 %v6225_v9, %v6224_v8 }
 0x5f7   : > { %8769 = vmatprep.subr.bf16.mxu0 %v9613_v42 }
 0x5f9   : > { %8738 = vmatmul.mubr.bf16.gmra.mrb[28].mxu0 %v10475_v31  ;;  %v9616_v31 = vld [vmem:[#allocation8 + $0x208] sm:$0xff]  }
 0x5fa   : > { %8741 = vmatprep.mubr.bf16.mxu0 %v10477_v32  ;;  %8770 = vmatpush3.bf16.msra.mxu0 %v9613_v42  ;;  %v9617_v32 = vld [vmem:[#allocation8 + $0x210] sm:$0xff]  }
 0x5fb   : > { %8771 = vmatprep.subr.bf16.mxu0 %v9614_v54  ;;  %v6226_v42 = vld [vmem:[#allocation2 + $0x169] sm:$0xff] }
 0x5fe   : > { %8772 = vmatpush3.bf16.msra.mxu0 %v9614_v54  ;;  %v6227_v54 = vld [vmem:[#allocation2 + $0x171] sm:$0xff] }
 0x5ff   : > { %8805 = vmatprep.subr.bf16.mxu0 %v9615_v4  ;;  %v6249_v7 = vpack.c.bf16 %v6227_v54, %v6226_v42 }
 0x601   : > { %8742 = vmatmul.mubr.bf16.gmra.mrb[32].mxu0 %v10481_v45  ;;  %v9618_v45 = vld [vmem:[#allocation8 + $0x218] sm:$0xff]  }
 0x602   : > { %8745 = vmatprep.mubr.bf16.mxu0 %v10483_v53  ;;  %v9619_v53 = vld [vmem:[#allocation8 + $0x220] sm:$0xff]  }
 0x609   : > { %8746 = vmatmul.mubr.bf16.gmra.mrb[36].mxu0 %v10487_v0  ;;  %v9620_v0 = vld [vmem:[#allocation8 + $0x228] sm:$0xff]  }
 0x60a   : > { %8749 = vmatprep.mubr.bf16.mxu0 %v10489_v59  ;;  %v9621_v59 = vld [vmem:[#allocation8 + $0x230] sm:$0xff]  }
 0x611   : > { %8750 = vmatmul.mubr.bf16.gmra.mrb[40].mxu0 %v10493_v12  ;;  %v5917_v12 = vld [vmem:[#allocation2 + $0x130] sm:$0xff] }
 0x612   : > { %8753 = vmatprep.mubr.bf16.mxu0 %v10556_v29  ;;  %v5941_v52 = vpack.c.bf16 %v5917_v12, %v5916_v19  ;;  %v5922_v29 = vld [vmem:[#allocation2 + $0x188] sm:$0xff]  ;;  %v6235_v19 = vld [vmem:[#allocation2 + $0x1f1] sm:$0xff] }
 0x613   : > { %v6234_v12 = vld [vmem:[#allocation2 + $0x1e9] sm:$0xff] }
 0x619   : > { %8754 = vmatmul.mubr.bf16.gmra.mrb[44].mxu0 %v5643_v14 }
 0x61a   : > { %8773 = vmatprep.mubr.bf16.mxu0 %v10559_v63  ;;  %v5944_v63 = vpack.c.bf16 %v5923_v26, %v5922_v29  ;;  %v10640_v29 = vld [vmem:[%s10994_s22] ss:$0 sm:$0xff] }
 0x621   : > { %8774 = vmatmul.mubr.bf16.vlgmr.msra.gmra.mrb[16].mxu0 %v10561_v37  ;;  %v5925_v37 = vld [vmem:[#allocation2 + $0x1b0] sm:$0xff] }
 0x622   : > { %8806 = vmatpush3.bf16.msra.mxu0 %v9615_v4  ;;  %8777 = vmatprep.mubr.bf16.mxu0 %v10565_v21  ;;  %v5945_v50 = vpack.c.bf16 %v5925_v37, %v5924_v46  ;;  %v5946_v21 = vpack.c.bf16 %v5927_v2, %v5926_v62  ;;  %v6228_v4 = vld [vmem:[#allocation2 + $0x189] sm:$0xff] }
 0x623   : > { %8807 = vmatprep.subr.bf16.mxu0 %v9616_v31  ;;  %v6250_v14 = vpack.c.bf16 %v6229_v15, %v6228_v4 }
 0x626   : > { %8808 = vmatpush3.bf16.msra.mxu0 %v9616_v31  ;;  %v6230_v31 = vld [vmem:[#allocation2 + $0x1a9] sm:$0xff] }
 0x627   : > { %8809 = vmatprep.subr.bf16.mxu0 %v9617_v32 }
 0x629   : > { %8778 = vmatmul.mubr.bf16.gmra.mrb[20].mxu0 %v10567_v61  ;;  %v5928_v61 = vld [vmem:[#allocation2 + $0x1e8] sm:$0xff] }
 0x62a   : > { %8781 = vmatprep.mubr.bf16.mxu0 %v10571_v23  ;;  %8810 = vmatpush3.bf16.msra.mxu0 %v9617_v32  ;;  %v5947_v5 = vpack.c.bf16 %v5929_v47, %v5928_v61  ;;  %v5949_v23 = vpack.c.bf16 %v9624_v18, %v9624_v18  ;;  %v6231_v32 = vld [vmem:[#allocation2 + $0x1b1] sm:$0xff] }
 0x62b   : > { %8811 = vmatprep.subr.bf16.mxu0 %v9618_v45 }
 0x62e   : > { %8812 = vmatpush3.bf16.msra.mxu0 %v9618_v45  ;;  %v6232_v45 = vld [vmem:[#allocation2 + $0x1c9] sm:$0xff] }
 0x62f   : > { %8813 = vmatprep.subr.bf16.mxu0 %v9619_v53 }
 0x631   : > { %8782 = vmatmul.mubr.bf16.gmra.mrb[24].mxu0 %v10573_v20  ;;  %v6240_v20 = vpack.c.bf16 %v6209_v10, %v6208_v1 }
 0x632   : > { %8785 = vmatprep.mubr.bf16.mxu0 %v10577_v43  ;;  %8814 = vmatpush3.bf16.msra.mxu0 %v9619_v53  ;;  %v6213_v43 = vld [vmem:[#allocation2 + $0x91] sm:$0xff] }
 0x633   : > { %8815 = vmatprep.subr.bf16.mxu0 %v9620_v0  ;;  %v6242_v56 = vpack.c.bf16 %v6213_v43, %v6212_v36  ;;  %v6233_v53 = vld [vmem:[#allocation2 + $0x1d1] sm:$0xff] }
 0x636   : > { %8816 = vmatpush3.bf16.msra.mxu0 %v9620_v0  ;;  %v6251_v0 = vpack.c.bf16 %v6231_v32, %v6230_v31 }
 0x637   : > { %8817 = vmatprep.subr.bf16.mxu0 %v9621_v59 }
 0x639   : > { %8786 = vmatmul.mubr.bf16.gmra.mrb[28].mxu0 %v5941_v52  ;;  %v6253_v52 = vpack.c.bf16 %v6235_v19, %v6234_v12 }
 0x63a   : > { %8789 = vmatprep.mubr.bf16.mxu0 %v10581_v38  ;;  %8818 = vmatpush3.bf16.msra.mxu0 %v9621_v59  ;;  %v6216_v38 = vld [vmem:[#allocation2 + $0xc9] sm:$0xff]  ;;  %v6252_v59 = vpack.c.bf16 %v6233_v53, %v6232_v45 }
 0x63b   : > { %8819 = vmatprep.subr.bf16.mxu0 %v9622_v13  ;;  %v6244_v34 = vpack.c.bf16 %v6217_v30, %v6216_v38 }
 0x63e   : > { %8820 = vmatpush3.bf16.msra.mxu0 %v9622_v13  ;;  %v6238_v13 = vld [vmem:[#allocation2 + $0x229] sm:$0xff] }
 0x63f   : > { %v6255_v26 = vpack.c.bf16 %v6239_v24, %v6238_v13 }
 0x641   : > { %8790 = vmatmul.mubr.bf16.gmra.mrb[32].mxu0 %v5943_v55 }
 0x642   : > { %8793 = vmatprep.mubr.bf16.mxu0 %v5944_v63 }
 0x649   : > { %8794 = vmatmul.mubr.bf16.gmra.mrb[36].mxu0 %v5945_v50 }
 0x64a   : > { %8797 = vmatprep.mubr.bf16.mxu0 %v5946_v21 }
 0x651   : > { %8798 = vmatmul.mubr.bf16.gmra.mrb[40].mxu0 %v5947_v5 }
 0x652   : > { %8801 = vmatprep.mubr.bf16.mxu0 %v5948_v16 }
 0x659   : > { %8802 = vmatmul.mubr.bf16.gmra.mrb[44].mxu0 %v5949_v23 }
 0x65a   : > { %8821 = vmatprep.mubr.bf16.mxu0 %v6240_v20 }
 0x661   : > { %8822 = vmatmul.mubr.bf16.vlgmr.msra.gmra.mrb[16].mxu0 %v6241_v49 }
 0x662   : > { %8825 = vmatprep.mubr.bf16.mxu0 %v6242_v56 }
 0x669   : > { %8826 = vmatmul.mubr.bf16.gmra.mrb[20].mxu0 %v6243_v3 }
 0x66a   : > { %8829 = vmatprep.mubr.bf16.mxu0 %v6244_v34 }
 0x671   : > { %8830 = vmatmul.mubr.bf16.gmra.mrb[24].mxu0 %v6245_v35 }
 0x672   : > { %8833 = vmatprep.mubr.bf16.mxu0 %v6246_v17 }
 0x679   : > { %8834 = vmatmul.mubr.bf16.gmra.mrb[28].mxu0 %v6247_v41 }
 0x67a   : > { %8837 = vmatprep.mubr.bf16.mxu0 %v6248_v11 }
 0x681   : > { %8838 = vmatmul.mubr.bf16.gmra.mrb[32].mxu0 %v6249_v7 }
 0x682   : > { %8841 = vmatprep.mubr.bf16.mxu0 %v6250_v14 }
 0x689   : > { %8842 = vmatmul.mubr.bf16.gmra.mrb[36].mxu0 %v6251_v0 }
 0x68a   : > { %8845 = vmatprep.mubr.bf16.mxu0 %v6252_v59 }
 0x691   : > { %8846 = vmatmul.mubr.bf16.gmra.mrb[40].mxu0 %v6253_v52 }
 0x692   : > { %8849 = vmatprep.mubr.bf16.mxu0 %v10605_v60 }
 0x699   : > { %8850 = vmatmul.mubr.bf16.gmra.mrb[44].mxu0 %v6255_v26 }
 0x734   : > { %v8823_v55 = vpop.f32.mrb[16].mxu0 }
 0x735   : > { %v6523_v63 = vmul.f32 %v8823_v55, %v10635_v39  ;;  %v6355_v37 = vpop.f32.mrb[17].mxu0 }
 0x736   : > { %v6521_v60 = vmul.f32 %v10635_v39, %v6355_v37  ;;  %v8824_v2 = vpop.f32.mrb[18].mxu0 }
 0x737   : > { %v6562_v46 = vadd.f32 %v10640_v29, %v6523_v63  ;;  %v6524_v50 = vmul.f32 %v8824_v2, %v10635_v39  ;;  %v6358_v62 = vpop.f32.mrb[19].mxu0 }
 0x738   : > { %v6560_v21 = vadd.f32 %v10640_v29, %v6521_v60  ;;  %v6522_v47 = vmul.f32 %v10635_v39, %v6358_v62 }
 0x739   : > { %v6594_v48 = vmax.f32 %v6562_v46, 0.0  ;;  %v6563_v61 = vadd.f32 %v10640_v29, %v6524_v50 }
 0x73a   : > { %v6592_v5 = vmax.f32 %v6560_v21, 0.0  ;;  %v6561_v6 = vadd.f32 %v10640_v29, %v6522_v47 }
 0x73b   : > { %6626 = vst [vmem:[#allocation2 + $0x48] sm:$0xff] %v6594_v48  ;;  %v6595_v16 = vmax.f32 %v6563_v61, 0.0 }
 0x73c   : > { %6624 = vst [vmem:[#allocation2 + $0x28] sm:$0xff] %v6592_v5  ;;  %v6593_v18 = vmax.f32 %v6561_v6, 0.0  ;;  %v8827_v23 = vpop.f32.mrb[20].mxu0 }
 0x73d   : > { %6627 = vst [vmem:[#allocation2 + $0x50] sm:$0xff] %v6595_v16  ;;  %v6527_v1 = vmul.f32 %v8827_v23, %v10635_v39  ;;  %v6371_v10 = vpop.f32.mrb[21].mxu0 }
 0x73e   : > { %6625 = vst [vmem:[#allocation2 + $0x30] sm:$0xff] %v6593_v18  ;;  %v6525_v20 = vmul.f32 %v10635_v39, %v6371_v10  ;;  %v8828_v25 = vpop.f32.mrb[22].mxu0 }
 0x73f   : > { %v6566_v27 = vadd.f32 %v10640_v29, %v6527_v1  ;;  %v6528_v36 = vmul.f32 %v8828_v25, %v10635_v39  ;;  %v6374_v43 = vpop.f32.mrb[23].mxu0 }
 0x740   : > { %v6564_v49 = vadd.f32 %v10640_v29, %v6525_v20  ;;  %v6526_v56 = vmul.f32 %v10635_v39, %v6374_v43 }
 0x741   : > { %v10656_v57 = vmax.f32 %v6566_v27, 0.0  ;;  %v6567_v28 = vadd.f32 %v10640_v29, %v6528_v36 }
 0x742   : > { %v10659_v38 = vmax.f32 %v6564_v49, 0.0  ;;  %v6565_v30 = vadd.f32 %v10640_v29, %v6526_v56 }
 0x743   : > { %6630 = vst [vmem:[#allocation2 + $0x88] sm:$0xff] %v10656_v57  ;;  %v6599_v3 = vmax.f32 %v6567_v28, 0.0 }
 0x744   : > { %v6688_v34 = vld [vmem:[#allocation2 + $0x49] sm:$0xff]  ;;  %6628 = vst [vmem:[#allocation2 + $0x68] sm:$0xff] %v10659_v38  ;;  %v6597_v44 = vmax.f32 %v6565_v30, 0.0  ;;  %v8831_v40 = vpop.f32.mrb[24].mxu0  ;;  %v6689_v31 = vld [vmem:[#allocation2 + $0x51] sm:$0x7f] }
 0x745   : > { %v6718_v51 = vmax.f32 %v6594_v48, %v6688_v34  ;;  %v6657_v22 = vld [vmem:[#allocation2 + $0x30] sm:$0x7f]  ;;  %6631 = vst [vmem:[#allocation2 + $0x90] sm:$0xff] %v6599_v3  ;;  %v6531_v58 = vmul.f32 %v8831_v40, %v10635_v39  ;;  %v6387_v8 = vpop.f32.mrb[25].mxu0 }
 0x746   : > { %v6748_v35 = vld [vmem:[#allocation2 + $0x4a] sm:$0xff]  ;;  %6629 = vst [vmem:[#allocation2 + $0x70] sm:$0xff] %v6597_v44  ;;  %v6747_v54 = vld [vmem:[#allocation2 + $0x32] sm:$0x7f]  ;;  %v6529_v15 = vmul.f32 %v10635_v39, %v6387_v8  ;;  %v8832_v7 = vpop.f32.mrb[26].mxu0 }
 0x747   : > { %v6686_v17 = vld [vmem:[#allocation2 + $0x29] sm:$0xff]  ;;  %v6687_v33 = vld [vmem:[#allocation2 + $0x31] sm:$0x7f]  ;;  %v6778_v9 = vmax.f32 %v6718_v51, %v6748_v35  ;;  %v6570_v4 = vadd.f32 %v10640_v29, %v6531_v58  ;;  %v6532_v0 = vmul.f32 %v8832_v7, %v10635_v39  ;;  %v6390_v59 = vpop.f32.mrb[27].mxu0 }
 0x748   : > { %v6716_v41 = vmax.f32 %v6592_v5, %v6686_v17  ;;  %v6717_v11 = vmax.f32 %v6657_v22, %v6687_v33  ;;  %v6746_v42 = vld [vmem:[#allocation2 + $0x2a] sm:$0xff]  ;;  %v6568_v52 = vadd.f32 %v10640_v29, %v6529_v15  ;;  %v6530_v13 = vmul.f32 %v10635_v39, %v6390_v59  ;;  %v6927_v61 = vld [vmem:[#allocation2 + $0x52] sm:$0x7f] }
 0x749   : > { %v6659_v14 = vld [vmem:[#allocation2 + $0x50] sm:$0x7f]  ;;  %v6838_v53 = vmax.f32 %v6778_v9, %v10659_v38  ;;  %v10670_v19 = vmax.f32 %v6570_v4, 0.0  ;;  %v6571_v2 = vadd.f32 %v10640_v29, %v6532_v0 }
 0x74a   : > { %v6776_v32 = vmax.f32 %v6716_v41, %v6746_v42  ;;  %v6777_v45 = vmax.f32 %v6717_v11, %v6747_v54  ;;  %v6807_v12 = vld [vmem:[#allocation2 + $0x50] sm:$0x7f]  ;;  %v6719_v55 = vmax.f32 %v6659_v14, %v6689_v31  ;;  %v10677_v60 = vmax.f32 %v6568_v52, 0.0 }
 0x74b   : > { %v6867_v63 = vld [vmem:[#allocation2 + $0x51] sm:$0x7f]  ;;  %6634 = vst [vmem:[#allocation2 + $0xc8] sm:$0xff] %v10670_v19  ;;  %v6569_v46 = vadd.f32 %v10640_v29, %v6530_v13  ;;  %v6603_v43 = vmax.f32 %v6571_v2, 0.0 }
 0x74c   : > { %v6836_v24 = vmax.f32 %v6776_v32, %v6594_v48  ;;  %v6837_v26 = vmax.f32 %v6777_v45, %v6807_v12  ;;  %v10674_v37 = vld [vmem:[#allocation2 + $0x89] sm:$0xff]  ;;  %v8835_v47 = vpop.f32.mrb[28].mxu0  ;;  %v6749_v48 = vld [vmem:[#allocation2 + $0x52] sm:$0x7f]  ;;  %6632 = vst [vmem:[#allocation2 + $0xa8] sm:$0xff] %v10677_v60 }
 0x74d   : > { %v6722_v21 = vmax.f32 %v10656_v57, %v10674_v37  ;;  %v10688_v5 = vld [vmem:[#allocation2 + $0x8a] sm:$0xff]  ;;  %v6535_v6 = vmul.f32 %v8835_v47, %v10635_v39  ;;  %v6779_v25 = vmax.f32 %v6719_v55, %v6749_v48  ;;  %v6601_v49 = vmax.f32 %v6569_v46, 0.0  ;;  %v6751_v40 = vld [vmem:[#allocation2 + $0x72] sm:$0x7f]  ;;  %6635 = vst [vmem:[#allocation2 + $0xd0] sm:$0xff] %v6603_v43  ;;  %v6403_v11 = vpop.f32.mrb[29].mxu0 }
 0x74e   : > { %v6896_v50 = vmax.f32 %v6836_v24, %v6688_v34  ;;  %v6897_v62 = vmax.f32 %v6837_v26, %v6867_v63  ;;  %v10692_v23 = vld [vmem:[#allocation2 + $0x90] sm:$0x7f]  ;;  %v6533_v14 = vmul.f32 %v10635_v39, %v6403_v11  ;;  %v8836_v31 = vpop.f32.mrb[30].mxu0 }
 0x74f   : > { %v10694_v1 = vld [vmem:[#allocation2 + $0x91] sm:$0x7f]  ;;  %v10697_v10 = vmax.f32 %v6722_v21, %v10688_v5  ;;  %v6690_v27 = vld [vmem:[#allocation2 + $0x69] sm:$0xff]  ;;  %v6574_v56 = vadd.f32 %v10640_v29, %v6535_v6  ;;  %6633 = vst [vmem:[#allocation2 + $0xb0] sm:$0xff] %v6601_v49  ;;  %v6406_v12 = vpop.f32.mrb[31].mxu0  ;;  %v6536_v63 = vmul.f32 %v8836_v31, %v10635_v39 }
 0x750   : > { %v6956_v16 = vmax.f32 %v6896_v50, %v6748_v35  ;;  %v6957_v18 = vmax.f32 %v6897_v62, %v6927_v61  ;;  %v6661_v20 = vld [vmem:[#allocation2 + $0x70] sm:$0x7f]  ;;  %v6720_v30 = vmax.f32 %v10659_v38, %v6690_v27  ;;  %v6898_v44 = vmax.f32 %v6838_v53, %v6690_v27 }
 0x751   : > { %v6691_v36 = vld [vmem:[#allocation2 + $0x71] sm:$0x7f]  ;;  %v6723_v51 = vmax.f32 %v10692_v23, %v10694_v1  ;;  %v6842_v33 = vmax.f32 %v10697_v10, %v10677_v60  ;;  %v10707_v7 = vmax.f32 %v6574_v56, 0.0  ;;  %v6572_v55 = vadd.f32 %v10640_v29, %v6533_v14 }
 0x752   : > { %v7017_v28 = vmax.f32 %v6956_v16, %v10659_v38  ;;  %v6721_v3 = vmax.f32 %v6661_v20, %v6691_v36  ;;  %v6809_v34 = vld [vmem:[#allocation2 + $0x70] sm:$0x7f]  ;;  %v6575_v23 = vadd.f32 %v10640_v29, %v6536_v63  ;;  %v6534_v1 = vmul.f32 %v10635_v39, %v6406_v12 }
 0x753   : > { %v6750_v22 = vld [vmem:[#allocation2 + $0x6a] sm:$0xff]  ;;  %v6839_v35 = vmax.f32 %v6779_v25, %v6809_v34  ;;  %v6929_v53 = vld [vmem:[#allocation2 + $0x72] sm:$0x7f]  ;;  %6638 = vst [vmem:[#allocation2 + $0x108] sm:$0xff] %v10707_v7 }
 0x754   : > { %v6988_v17 = vld [vmem:[#allocation2 + $0x70] sm:$0x7f]  ;;  %v6780_v58 = vmax.f32 %v6720_v30, %v6750_v22  ;;  %v6781_v8 = vmax.f32 %v6721_v3, %v6751_v40  ;;  %v6958_v41 = vmax.f32 %v6898_v44, %v6750_v22  ;;  %v7077_v15 = vmax.f32 %v7017_v28, %v6690_v27  ;;  %v8839_v2 = vpop.f32.mrb[32].mxu0 }
 0x755   : > { %v6869_v9 = vld [vmem:[#allocation2 + $0x71] sm:$0x7f]  ;;  %v7018_v38 = vmax.f32 %v6957_v18, %v6988_v17  ;;  %v6419_v48 = vpop.f32.mrb[33].mxu0  ;;  %v10725_v18 = vmax.f32 %v6572_v55, 0.0  ;;  %v10734_v43 = vld [vmem:[#allocation2 + $0xc9] sm:$0xff]  ;;  %v6539_v56 = vmul.f32 %v8839_v2, %v10635_v39  ;;  %v6607_v44 = vmax.f32 %v6575_v23, 0.0 }
 0x756   : > { %v6811_v42 = vld [vmem:[#allocation2 + $0x90] sm:$0x7f]  ;;  %v6899_v54 = vmax.f32 %v6839_v35, %v6869_v9  ;;  %v6840_v32 = vmax.f32 %v6780_v58, %v10656_v57  ;;  %v7019_v0 = vmax.f32 %v6958_v41, %v10656_v57  ;;  %v7137_v26 = vmax.f32 %v7077_v15, %v6750_v22  ;;  %v8840_v20 = vpop.f32.mrb[34].mxu0 }
 0x757   : > { %v7048_v4 = vld [vmem:[#allocation2 + $0x71] sm:$0x7f]  ;;  %v6841_v45 = vmax.f32 %v6781_v8, %v6811_v42  ;;  %v6422_v28 = vpop.f32.mrb[35].mxu0  ;;  %v6726_v3 = vmax.f32 %v10670_v19, %v10734_v43  ;;  %6636 = vst [vmem:[#allocation2 + $0xe8] sm:$0xff] %v10725_v18  ;;  %v6573_v40 = vadd.f32 %v10640_v29, %v6534_v1  ;;  %v6578_v35 = vadd.f32 %v10640_v29, %v6539_v56  ;;  %v6694_v11 = vld [vmem:[#allocation2 + $0xa9] sm:$0xff] }
 0x758   : > { %v7078_v59 = vmax.f32 %v7018_v38, %v7048_v4  ;;  %v6871_v52 = vld [vmem:[#allocation2 + $0x91] sm:$0x7f]  ;;  %v6959_v13 = vmax.f32 %v6899_v54, %v6929_v53  ;;  %v7079_v62 = vmax.f32 %v7019_v0, %v10674_v37  ;;  %v6900_v21 = vmax.f32 %v6840_v32, %v10674_v37  ;;  %7167 = vst [vmem:[%s10713_s11] sm:$0xff] %v7137_v26 }
 0x759   : > { %v7108_v24 = vld [vmem:[#allocation2 + $0x72] sm:$0x7f]  ;;  %v10722_v47 = vmax.f32 %v6841_v45, %v6871_v52  ;;  %v10745_v22 = vld [vmem:[#allocation2 + $0xca] sm:$0xff]  ;;  %v6537_v17 = vmul.f32 %v10635_v39, %v6419_v48  ;;  %6639 = vst [vmem:[#allocation2 + $0x110] sm:$0xff] %v6607_v44  ;;  %v6540_v38 = vmul.f32 %v8840_v20, %v10635_v39  ;;  %v6605_v54 = vmax.f32 %v6573_v40, 0.0 }
 0x75a   : > { %v6753_v46 = vld [vmem:[#allocation2 + $0x92] sm:$0x7f]  ;;  %v7138_v57 = vmax.f32 %v7078_v59, %v7108_v24  ;;  %v7139_v27 = vmax.f32 %v7079_v62, %v10688_v5  ;;  %v6960_v37 = vmax.f32 %v6900_v21, %v10688_v5  ;;  %v10753_v9 = vmax.f32 %v6726_v3, %v10745_v22  ;;  %v6754_v59 = vld [vmem:[#allocation2 + $0xaa] sm:$0xff] }
 0x75b   : > { %v6990_v50 = vld [vmem:[#allocation2 + $0x90] sm:$0x7f]  ;;  %v6783_v25 = vmax.f32 %v6723_v51, %v6753_v46  ;;  %v10756_v4 = vmax.f32 %v6578_v35, 0.0  ;;  %v6576_v15 = vadd.f32 %v10640_v29, %v6537_v17  ;;  %v6538_v14 = vmul.f32 %v10635_v39, %v6422_v28  ;;  %6637 = vst [vmem:[#allocation2 + $0xf0] sm:$0xff] %v6605_v54 }
 0x75c   : > { %v6931_v61 = vld [vmem:[#allocation2 + $0x92] sm:$0x7f]  ;;  %v7020_v16 = vmax.f32 %v6959_v13, %v6990_v50  ;;  %7168 = vst [vmem:[%s10713_s11 + $0x8] sm:$0x7f] %v7138_v57  ;;  %7169 = vst [vmem:[%s10713_s11 + $0x10] sm:$0xff] %v7139_v27  ;;  %v7021_v5 = vmax.f32 %v6960_v37, %v10677_v60  ;;  %v6724_v31 = vmax.f32 %v10677_v60, %v6694_v11  ;;  %v8843_v50 = vpop.f32.mrb[36].mxu0 }
 0x75d   : > { %v7050_v6 = vld [vmem:[#allocation2 + $0x91] sm:$0x7f]  ;;  %v6961_v34 = vmax.f32 %v10722_v47, %v6931_v61  ;;  %v6902_v53 = vmax.f32 %v6842_v33, %v6694_v11  ;;  %v6846_v24 = vmax.f32 %v10753_v9, %v10725_v18  ;;  %6642 = vst [vmem:[#allocation2 + $0x148] sm:$0xff] %v10756_v4  ;;  %v6579_v26 = vadd.f32 %v10640_v29, %v6540_v38  ;;  %v6435_v61 = vpop.f32.mrb[37].mxu0 }
 0x75e   : > { %v10732_v36 = vld [vmem:[#allocation2 + $0xd0] sm:$0x7f]  ;;  %v7080_v30 = vmax.f32 %v7020_v16, %v7050_v6  ;;  %v7081_v0 = vmax.f32 %v7021_v5, %v6694_v11  ;;  %v6577_v55 = vadd.f32 %v10640_v29, %v6538_v14  ;;  %v6784_v2 = vmax.f32 %v6724_v31, %v6754_v59 }
 0x75f   : > { %v10736_v49 = vld [vmem:[#allocation2 + $0xd1] sm:$0x7f]  ;;  %v6962_v10 = vmax.f32 %v6902_v53, %v6754_v59  ;;  %v10770_v47 = vmax.f32 %v6576_v15, 0.0  ;;  %v6611_v48 = vmax.f32 %v6579_v26, 0.0  ;;  %v6543_v3 = vmul.f32 %v8843_v50, %v10635_v39 }
 0x760   : > { %v7110_v51 = vld [vmem:[#allocation2 + $0x92] sm:$0x7f]  ;;  %v6727_v8 = vmax.f32 %v10732_v36, %v10736_v49  ;;  %v7141_v21 = vmax.f32 %v7081_v0, %v6754_v59  ;;  %v6844_v6 = vmax.f32 %v6784_v2, %v10670_v19  ;;  %v10777_v28 = vld [vmem:[#allocation2 + $0x109] sm:$0xff] }
 0x761   : > { %v7140_v58 = vmax.f32 %v7080_v30, %v7110_v51  ;;  %v6665_v41 = vld [vmem:[#allocation2 + $0xb0] sm:$0x7f]  ;;  %v7023_v1 = vmax.f32 %v6962_v10, %v10670_v19  ;;  %6640 = vst [vmem:[#allocation2 + $0x128] sm:$0xff] %v10770_v47  ;;  %6643 = vst [vmem:[#allocation2 + $0x150] sm:$0xff] %v6611_v48  ;;  %v6609_v30 = vmax.f32 %v6577_v55, 0.0  ;;  %v6730_v35 = vmax.f32 %v10707_v7, %v10777_v28 }
 0x762   : > { %v6695_v42 = vld [vmem:[#allocation2 + $0xb1] sm:$0x7f]  ;;  %7171 = vst [vmem:[%s10713_s11 + $0x20] sm:$0xff] %v7141_v21  ;;  %v6904_v40 = vmax.f32 %v6844_v6, %v10734_v43  ;;  %v6582_v54 = vadd.f32 %v10640_v29, %v6543_v3  ;;  %v6698_v59 = vld [vmem:[#allocation2 + $0xe9] sm:$0xff] }
 0x763   : > { %7170 = vst [vmem:[%s10713_s11 + $0x18] sm:$0x7f] %v7140_v58  ;;  %v6725_v32 = vmax.f32 %v6665_v41, %v6695_v42  ;;  %v6813_v45 = vld [vmem:[#allocation2 + $0xb0] sm:$0x7f]  ;;  %v7083_v51 = vmax.f32 %v7023_v1, %v10734_v43  ;;  %6641 = vst [vmem:[#allocation2 + $0x130] sm:$0xff] %v6609_v30  ;;  %v6728_v26 = vmax.f32 %v10725_v18, %v6698_v59 }
 0x764   : > { %v6755_v12 = vld [vmem:[#allocation2 + $0xb2] sm:$0x7f]  ;;  %v6843_v52 = vmax.f32 %v6783_v25, %v6813_v45  ;;  %v10774_v25 = vpop.f32.mrb[38].mxu0  ;;  %v10788_v11 = vld [vmem:[#allocation2 + $0x10a] sm:$0xff]  ;;  %v6964_v14 = vmax.f32 %v6904_v40, %v10745_v22  ;;  %v6906_v2 = vmax.f32 %v6846_v24, %v6698_v59 }
 0x765   : > { %v6992_v13 = vld [vmem:[#allocation2 + $0xb0] sm:$0x7f]  ;;  %v6785_v46 = vmax.f32 %v6725_v32, %v6755_v12  ;;  %v10786_v17 = vpop.f32.mrb[39].mxu0  ;;  %v7143_v43 = vmax.f32 %v7083_v51, %v10745_v22  ;;  %v10798_v45 = vmax.f32 %v6730_v35, %v10788_v11 }
 0x766   : > { %v6815_v63 = vld [vmem:[#allocation2 + $0xd0] sm:$0x7f]  ;;  %v7022_v33 = vmax.f32 %v6961_v34, %v6992_v13  ;;  %v6541_v34 = vmul.f32 %v10635_v39, %v6435_v61  ;;  %v10800_v13 = vmax.f32 %v6582_v54, 0.0  ;;  %v10803_v49 = vpop.f32.mrb[40].mxu0  ;;  %v7025_v22 = vmax.f32 %v6964_v14, %v10725_v18 }
 0x767   : > { %v6873_v60 = vld [vmem:[#allocation2 + $0xb1] sm:$0x7f]  ;;  %v6845_v16 = vmax.f32 %v6785_v46, %v6815_v63  ;;  %7173 = vst [vmem:[%s10713_s11 + $0x30] sm:$0xff] %v7143_v43  ;;  %v10816_v18 = vpop.f32.mrb[41].mxu0 }
 0x768   : > { %v6903_v62 = vmax.f32 %v6843_v52, %v6873_v60  ;;  %v7052_v57 = vld [vmem:[#allocation2 + $0xb1] sm:$0x7f]  ;;  %v6580_v36 = vadd.f32 %v10640_v29, %v6541_v34  ;;  %6646 = vst [vmem:[#allocation2 + $0x188] sm:$0xff] %v10800_v13 }
 0x769   : > { %v6933_v23 = vld [vmem:[#allocation2 + $0xb2] sm:$0x7f]  ;;  %v7082_v20 = vmax.f32 %v7022_v33, %v7052_v57  ;;  %v6758_v10 = vld [vmem:[#allocation2 + $0xea] sm:$0xff]  ;;  %v6850_v57 = vmax.f32 %v10798_v45, %v10770_v47  ;;  %v10833_v45 = vpop.f32.mrb[42].mxu0 }
 0x76a   : > { %v6757_v27 = vld [vmem:[#allocation2 + $0xd2] sm:$0x7f]  ;;  %v6963_v37 = vmax.f32 %v6903_v62, %v6933_v23  ;;  %v6788_v21 = vmax.f32 %v6728_v26, %v6758_v10  ;;  %v6966_v6 = vmax.f32 %v6906_v2, %v6758_v10  ;;  %v10814_v23 = vld [vmem:[#allocation2 + $0x149] sm:$0xff] }
 0x76b   : > { %v7112_v56 = vld [vmem:[#allocation2 + $0xb2] sm:$0x7f]  ;;  %v6787_v15 = vmax.f32 %v6727_v8, %v6757_v27  ;;  %v6734_v27 = vmax.f32 %v10756_v4, %v10814_v23  ;;  %v10825_v51 = vld [vmem:[#allocation2 + $0x14a] sm:$0xff] }
 0x76c   : > { %v6875_v44 = vld [vmem:[#allocation2 + $0xd1] sm:$0x7f]  ;;  %v7142_v5 = vmax.f32 %v7082_v20, %v7112_v56  ;;  %v7085_v20 = vmax.f32 %v7025_v22, %v6698_v59  ;;  %v6848_v30 = vmax.f32 %v6788_v21, %v10707_v7  ;;  %v6702_v14 = vld [vmem:[#allocation2 + $0x129] sm:$0xff] }
 0x76d   : > { %v6994_v19 = vld [vmem:[#allocation2 + $0xd0] sm:$0x7f]  ;;  %v6905_v42 = vmax.f32 %v6845_v16, %v6875_v44  ;;  %v7027_v44 = vmax.f32 %v6966_v6, %v10707_v7  ;;  %v6910_v2 = vmax.f32 %v6850_v57, %v6702_v14 }
 0x76e   : > { %v6935_v58 = vld [vmem:[#allocation2 + $0xd2] sm:$0x7f]  ;;  %v7024_v38 = vmax.f32 %v6963_v37, %v6994_v19  ;;  %7172 = vst [vmem:[%s10713_s11 + $0x28] sm:$0x7f] %v7142_v5  ;;  %v10821_v37 = vmax.f32 %v6580_v36, 0.0  ;;  %v6908_v7 = vmax.f32 %v6848_v30, %v10777_v28  ;;  %v6454_v36 = vpop.f32.mrb[43].mxu0 }
 0x76f   : > { %v7054_v41 = vld [vmem:[#allocation2 + $0xd1] sm:$0x7f]  ;;  %v6965_v52 = vmax.f32 %v6905_v42, %v6935_v58  ;;  %v10828_v42 = vmax.f32 %v6734_v27, %v10825_v51  ;;  %v7087_v54 = vmax.f32 %v7027_v44, %v10777_v28 }
 0x770   : > { %v6671_v31 = vld [vmem:[#allocation2 + $0x110] sm:$0x7f]  ;;  %v7084_v0 = vmax.f32 %v7024_v38, %v7054_v41  ;;  %v7145_v38 = vmax.f32 %v7085_v20, %v6758_v10  ;;  %6644 = vst [vmem:[#allocation2 + $0x168] sm:$0xff] %v10821_v37  ;;  %v6968_v26 = vmax.f32 %v6908_v7, %v10788_v11 }
 0x771   : > { %v6701_v32 = vld [vmem:[#allocation2 + $0x111] sm:$0x7f]  ;;  %v7147_v22 = vmax.f32 %v7087_v54, %v10788_v11  ;;  %v6854_v11 = vmax.f32 %v10828_v42, %v10821_v37 }
 0x772   : > { %v6669_v53 = vld [vmem:[#allocation2 + $0xf0] sm:$0x7f]  ;;  %v6731_v60 = vmax.f32 %v6671_v31, %v6701_v32  ;;  %7175 = vst [vmem:[%s10713_s11 + $0x40] sm:$0xff] %v7145_v38 }
 0x773   : > { %v6699_v12 = vld [vmem:[#allocation2 + $0xf1] sm:$0x7f]  ;;  %7177 = vst [vmem:[%s10713_s11 + $0x50] sm:$0xff] %v7147_v22 }
 0x774   : > { %v7114_v8 = vld [vmem:[#allocation2 + $0xd2] sm:$0x7f]  ;;  %v6729_v55 = vmax.f32 %v6669_v53, %v6699_v12 }
 0x775   : > { %v6817_v63 = vld [vmem:[#allocation2 + $0xf0] sm:$0x7f]  ;;  %v7144_v46 = vmax.f32 %v7084_v0, %v7114_v8  ;;  %v6732_v0 = vmax.f32 %v10770_v47, %v6702_v14 }
 0x776   : > { %v6759_v33 = vld [vmem:[#allocation2 + $0xf2] sm:$0x7f]  ;;  %v6847_v50 = vmax.f32 %v6787_v15, %v6817_v63 }
 0x777   : > { %v6996_v62 = vld [vmem:[#allocation2 + $0xf0] sm:$0x7f]  ;;  %v6789_v48 = vmax.f32 %v6729_v55, %v6759_v33  ;;  %7174 = vst [vmem:[%s10713_s11 + $0x38] sm:$0x7f] %v7144_v46 }
 0x778   : > { %v6877_v61 = vld [vmem:[#allocation2 + $0xf1] sm:$0x7f]  ;;  %v7026_v16 = vmax.f32 %v6965_v52, %v6996_v62  ;;  %v6544_v52 = vmul.f32 %v10774_v25, %v10635_v39  ;;  %v8851_v62 = vpop.f32.mrb[44].mxu0  ;;  %v7029_v25 = vmax.f32 %v6968_v26, %v10770_v47 }
 0x779   : > { %v6819_v9 = vld [vmem:[#allocation2 + $0x110] sm:$0x7f]  ;;  %v6907_v24 = vmax.f32 %v6847_v50, %v6877_v61 }
 0x77a   : > { %v7056_v1 = vld [vmem:[#allocation2 + $0xf1] sm:$0x7f]  ;;  %v6849_v3 = vmax.f32 %v6789_v48, %v6819_v9 }
 0x77b   : > { %v6761_v56 = vld [vmem:[#allocation2 + $0x112] sm:$0x7f]  ;;  %v7086_v19 = vmax.f32 %v7026_v16, %v7056_v1  ;;  %v6762_v55 = vld [vmem:[#allocation2 + $0x12a] sm:$0xff]  ;;  %v6467_v16 = vpop.f32.mrb[45].mxu0 }
 0x77c   : > { %v6937_v34 = vld [vmem:[#allocation2 + $0xf2] sm:$0x7f]  ;;  %v6791_v5 = vmax.f32 %v6731_v60, %v6761_v56  ;;  %v6792_v10 = vmax.f32 %v6732_v0, %v6762_v55  ;;  %v6970_v61 = vmax.f32 %v6910_v2, %v6762_v55  ;;  %v8852_v27 = vpop.f32.mrb[46].mxu0 }
 0x77d   : > { %v6879_v40 = vld [vmem:[#allocation2 + $0x111] sm:$0x7f]  ;;  %v6967_v58 = vmax.f32 %v6907_v24, %v6937_v34  ;;  %v6583_v34 = vadd.f32 %v10640_v29, %v6544_v52  ;;  %v6470_v44 = vpop.f32.mrb[47].mxu0  ;;  %v6552_v2 = vmul.f32 %v8852_v27, %v10635_v39 }
 0x77e   : > { %v6998_v35 = vld [vmem:[#allocation2 + $0x110] sm:$0x7f]  ;;  %v6909_v32 = vmax.f32 %v6849_v3, %v6879_v40  ;;  %v6852_v24 = vmax.f32 %v6792_v10, %v10756_v4  ;;  %v7031_v30 = vmax.f32 %v6970_v61, %v10756_v4  ;;  %v7089_v3 = vmax.f32 %v7029_v25, %v6702_v14 }
 0x77f   : > { %v7116_v41 = vld [vmem:[#allocation2 + $0xf2] sm:$0x7f]  ;;  %v7028_v53 = vmax.f32 %v6967_v58, %v6998_v35  ;;  %v6542_v35 = vmul.f32 %v10635_v39, %v10786_v17  ;;  %v6547_v17 = vmul.f32 %v10803_v49, %v10635_v39 }
 0x780   : > { %v7146_v15 = vmax.f32 %v7086_v19, %v7116_v41  ;;  %v6673_v43 = vld [vmem:[#allocation2 + $0x130] sm:$0x7f]  ;;  %v6912_v40 = vmax.f32 %v6852_v24, %v10814_v23  ;;  %v7091_v38 = vmax.f32 %v7031_v30, %v10814_v23  ;;  %v7149_v54 = vmax.f32 %v7089_v3, %v6762_v55 }
 0x781   : > { %v6703_v31 = vld [vmem:[#allocation2 + $0x131] sm:$0x7f]  ;;  %v6545_v23 = vmul.f32 %v10635_v39, %v10816_v18  ;;  %v6586_v22 = vadd.f32 %v10640_v29, %v6547_v17  ;;  %v6551_v18 = vmul.f32 %v8851_v62, %v10635_v39 }
 0x782   : > { %v6733_v59 = vmax.f32 %v6673_v43, %v6703_v31  ;;  %v6821_v12 = vld [vmem:[#allocation2 + $0x130] sm:$0x7f]  ;;  %7176 = vst [vmem:[%s10713_s11 + $0x48] sm:$0x7f] %v7146_v15  ;;  %v6615_v15 = vmax.f32 %v6583_v34, 0.0  ;;  %v6972_v31 = vmax.f32 %v6912_v40, %v10825_v51  ;;  %v7151_v0 = vmax.f32 %v7091_v38, %v10825_v51  ;;  %7179 = vst [vmem:[%s10713_s11 + $0x60] sm:$0xff] %v7149_v54 }
 0x783   : > { %v6939_v8 = vld [vmem:[#allocation2 + $0x112] sm:$0x7f]  ;;  %v6851_v63 = vmax.f32 %v6791_v5, %v6821_v12  ;;  %v6546_v51 = vmul.f32 %v10635_v39, %v6454_v36  ;;  %v6584_v49 = vadd.f32 %v10640_v29, %v6545_v23  ;;  %v10878_v36 = vmax.f32 %v6586_v22, 0.0 }
 0x784   : > { %v7058_v28 = vld [vmem:[#allocation2 + $0x111] sm:$0x7f]  ;;  %v6969_v50 = vmax.f32 %v6909_v32, %v6939_v8  ;;  %v6581_v32 = vadd.f32 %v10640_v29, %v6542_v35  ;;  %6647 = vst [vmem:[#allocation2 + $0x190] sm:$0xff] %v6615_v15  ;;  %v10864_v12 = vmax.f32 %v6972_v31, %v10821_v37  ;;  %v6548_v8 = vmul.f32 %v10833_v45, %v10635_v39 }
 0x785   : > { %v7118_v46 = vld [vmem:[#allocation2 + $0x112] sm:$0x7f]  ;;  %v7088_v60 = vmax.f32 %v7028_v53, %v7058_v28  ;;  %7181 = vst [vmem:[%s10713_s11 + $0x70] sm:$0xff] %v7151_v0  ;;  %v6585_v55 = vadd.f32 %v10640_v29, %v6546_v51  ;;  %v6590_v10 = vadd.f32 %v10640_v29, %v6551_v18  ;;  %6650 = vst [vmem:[#allocation2 + $0x1c8] sm:$0xff] %v10878_v36 }
 0x786   : > { %v6881_v33 = vld [vmem:[#allocation2 + $0x131] sm:$0x7f]  ;;  %v6613_v52 = vmax.f32 %v6581_v32, 0.0  ;;  %v6587_v26 = vadd.f32 %v10640_v29, %v6548_v8 }
 0x787   : > { %v6763_v21 = vld [vmem:[#allocation2 + $0x132] sm:$0x7f]  ;;  %v6911_v48 = vmax.f32 %v6851_v63, %v6881_v33  ;;  %v7148_v9 = vmax.f32 %v7088_v60, %v7118_v46  ;;  %v6549_v63 = vmul.f32 %v10635_v39, %v6467_v16  ;;  %v10880_v60 = vmax.f32 %v6584_v49, 0.0 }
 0x788   : > { %v7000_v6 = vld [vmem:[#allocation2 + $0x130] sm:$0x7f]  ;;  %v6793_v57 = vmax.f32 %v6733_v59, %v6763_v21  ;;  %6645 = vst [vmem:[#allocation2 + $0x170] sm:$0xff] %v6613_v52  ;;  %v6550_v33 = vmul.f32 %v10635_v39, %v6470_v44  ;;  %v6619_v62 = vmax.f32 %v6587_v26, 0.0  ;;  %v6617_v25 = vmax.f32 %v6585_v55, 0.0 }
 0x789   : > { %v6941_v1 = vld [vmem:[#allocation2 + $0x132] sm:$0x7f]  ;;  %v7030_v20 = vmax.f32 %v6969_v50, %v7000_v6  ;;  %7178 = vst [vmem:[%s10713_s11 + $0x58] sm:$0x7f] %v7148_v9  ;;  %v6588_v21 = vadd.f32 %v10640_v29, %v6549_v63  ;;  %6648 = vst [vmem:[#allocation2 + $0x1a8] sm:$0xff] %v10880_v60  ;;  %v10888_v6 = vmax.f32 %v6590_v10, 0.0 }
 0x78a   : > { %v6971_v56 = vmax.f32 %v6911_v48, %v6941_v1  ;;  %v7060_v47 = vld [vmem:[#allocation2 + $0x131] sm:$0x7f]  ;;  %v6591_v48 = vadd.f32 %v10640_v29, %v6552_v2  ;;  %6651 = vst [vmem:[#allocation2 + $0x1d0] sm:$0xff] %v6619_v62  ;;  %6649 = vst [vmem:[#allocation2 + $0x1b0] sm:$0xff] %v6617_v25 }
 0x78b   : > { %v7002_v19 = vld [vmem:[#allocation2 + $0x150] sm:$0x7f]  ;;  %v7090_v5 = vmax.f32 %v7030_v20, %v7060_v47  ;;  %v10892_v39 = vmax.f32 %v6588_v21, 0.0  ;;  %6654 = vst [vmem:[#allocation2 + $0x208] sm:$0xff] %v10888_v6 }
 0x78c   : > { %v6823_v58 = vld [vmem:[#allocation2 + $0x150] sm:$0x7f]  ;;  %v7032_v41 = vmax.f32 %v6971_v56, %v7002_v19  ;;  %v6623_v1 = vmax.f32 %v6591_v48, 0.0 }
 0x78d   : > { %v7120_v4 = vld [vmem:[#allocation2 + $0x132] sm:$0x7f]  ;;  %v6853_v43 = vmax.f32 %v6793_v57, %v6823_v58  ;;  %v10890_v9 = vld [vmem:[#allocation2 + $0x189] sm:$0xff]  ;;  %v6589_v57 = vadd.f32 %v10640_v29, %v6550_v33  ;;  %6652 = vst [vmem:[#allocation2 + $0x1e8] sm:$0xff] %v10892_v39 }
 0x78e   : > { %v7062_v7 = vld [vmem:[#allocation2 + $0x151] sm:$0x7f]  ;;  %v7150_v14 = vmax.f32 %v7090_v5, %v7120_v4  ;;  %v6738_v24 = vmax.f32 %v10800_v13, %v10890_v9  ;;  %6655 = vst [vmem:[#allocation2 + $0x210] sm:$0xff] %v6623_v1 }
 0x78f   : > { %v7092_v53 = vmax.f32 %v7032_v41, %v7062_v7  ;;  %v7122_v59 = vld [vmem:[#allocation2 + $0x152] sm:$0x7f]  ;;  %v10898_v56 = vld [vmem:[#allocation2 + $0x18a] sm:$0xff]  ;;  %v6621_v40 = vmax.f32 %v6589_v57, 0.0 }
 0x790   : > { %7180 = vst [vmem:[%s10713_s11 + $0x68] sm:$0x7f] %v7150_v14  ;;  %v6675_v45 = vld [vmem:[#allocation2 + $0x150] sm:$0x7f]  ;;  %v10902_v3 = vmax.f32 %v6738_v24, %v10898_v56 }
 0x791   : > { %v7152_v28 = vmax.f32 %v7092_v53, %v7122_v59  ;;  %v6705_v46 = vld [vmem:[#allocation2 + $0x151] sm:$0x7f]  ;;  %v6706_v19 = vld [vmem:[#allocation2 + $0x169] sm:$0xff]  ;;  %6653 = vst [vmem:[#allocation2 + $0x1f0] sm:$0xff] %v6621_v40 }
 0x792   : > { %v6883_v50 = vld [vmem:[#allocation2 + $0x151] sm:$0x7f]  ;;  %v6735_v16 = vmax.f32 %v6675_v45, %v6705_v46  ;;  %v6736_v35 = vmax.f32 %v10821_v37, %v6706_v19  ;;  %v6914_v38 = vmax.f32 %v6854_v11, %v6706_v19  ;;  %v7093_v4 = vmax.f32 %v10864_v12, %v6706_v19  ;;  %v10911_v52 = vld [vmem:[#allocation2 + $0x1c9] sm:$0xff] }
 0x793   : > { %7182 = vst [vmem:[%s10713_s11 + $0x78] sm:$0x7f] %v7152_v28  ;;  %v6913_v61 = vmax.f32 %v6853_v43, %v6883_v50  ;;  %v6765_v20 = vld [vmem:[#allocation2 + $0x152] sm:$0x7f]  ;;  %v6766_v15 = vld [vmem:[#allocation2 + $0x16a] sm:$0xff]  ;;  %v6858_v31 = vmax.f32 %v10902_v3, %v10880_v60  ;;  %v6742_v51 = vmax.f32 %v10878_v36, %v10911_v52 }
 0x794   : > { %v6943_v27 = vld [vmem:[#allocation2 + $0x152] sm:$0x7f]  ;;  %v6795_v29 = vmax.f32 %v6735_v16, %v6765_v20  ;;  %v6796_v53 = vmax.f32 %v6736_v35, %v6766_v15  ;;  %v6974_v23 = vmax.f32 %v6914_v38, %v6766_v15  ;;  %v7153_v8 = vmax.f32 %v7093_v4, %v6766_v15  ;;  %v10917_v63 = vld [vmem:[#allocation2 + $0x1ca] sm:$0xff] }
 0x795   : > { %v6679_v30 = vld [vmem:[#allocation2 + $0x190] sm:$0x7f]  ;;  %v6973_v44 = vmax.f32 %v6913_v61, %v6943_v27  ;;  %v10921_v50 = vmax.f32 %v6742_v51, %v10917_v63 }
 0x796   : > { %v6709_v47 = vld [vmem:[#allocation2 + $0x191] sm:$0x7f]  ;;  %v6856_v28 = vmax.f32 %v6796_v53, %v10800_v13  ;;  %v7035_v49 = vmax.f32 %v6974_v23, %v10800_v13  ;;  %7183 = vst [vmem:[%s10713_s11 + $0x80] sm:$0xff] %v7153_v8  ;;  %v6710_v48 = vld [vmem:[#allocation2 + $0x1a9] sm:$0xff] }
 0x797   : > { %v6677_v34 = vld [vmem:[#allocation2 + $0x170] sm:$0x7f]  ;;  %v6739_v54 = vmax.f32 %v6679_v30, %v6709_v47  ;;  %v6740_v20 = vmax.f32 %v10880_v60, %v6710_v48  ;;  %v6918_v19 = vmax.f32 %v6858_v31, %v6710_v48 }
 0x798   : > { %v6707_v5 = vld [vmem:[#allocation2 + $0x171] sm:$0x7f]  ;;  %v7095_v62 = vmax.f32 %v7035_v49, %v10890_v9  ;;  %v6916_v13 = vmax.f32 %v6856_v28, %v10890_v9  ;;  %v6714_v8 = vld [vmem:[#allocation2 + $0x1e9] sm:$0xff] }
 0x799   : > { %v6737_v58 = vmax.f32 %v6677_v34, %v6707_v5  ;;  %v6825_v41 = vld [vmem:[#allocation2 + $0x170] sm:$0x7f] }
 0x79a   : > { %v6767_v7 = vld [vmem:[#allocation2 + $0x172] sm:$0x7f]  ;;  %v6855_v43 = vmax.f32 %v6795_v29, %v6825_v41  ;;  %v7155_v3 = vmax.f32 %v7095_v62, %v10898_v56  ;;  %v6976_v34 = vmax.f32 %v6916_v13, %v10898_v56  ;;  %v6862_v56 = vmax.f32 %v10921_v50, %v10892_v39 }
 0x79b   : > { %v7004_v14 = vld [vmem:[#allocation2 + $0x170] sm:$0x7f]  ;;  %v6797_v0 = vmax.f32 %v6737_v58, %v6767_v7 }
 0x79c   : > { %v6769_v32 = vld [vmem:[#allocation2 + $0x192] sm:$0x7f]  ;;  %v7034_v59 = vmax.f32 %v6973_v44, %v7004_v14  ;;  %v6770_v44 = vld [vmem:[#allocation2 + $0x1aa] sm:$0xff]  ;;  %7185 = vst [vmem:[%s10713_s11 + $0x90] sm:$0xff] %v7155_v3  ;;  %v7037_v4 = vmax.f32 %v6976_v34, %v10880_v60 }
 0x79d   : > { %v6885_v17 = vld [vmem:[#allocation2 + $0x171] sm:$0x7f]  ;;  %v6799_v2 = vmax.f32 %v6739_v54, %v6769_v32  ;;  %v6800_v40 = vmax.f32 %v6740_v20, %v6770_v44  ;;  %v6978_v7 = vmax.f32 %v6918_v19, %v6770_v44 }
 0x79e   : > { %v6827_v37 = vld [vmem:[#allocation2 + $0x190] sm:$0x7f]  ;;  %v6915_v42 = vmax.f32 %v6855_v43, %v6885_v17 }
 0x79f   : > { %v6945_v11 = vld [vmem:[#allocation2 + $0x172] sm:$0x7f]  ;;  %v6857_v22 = vmax.f32 %v6797_v0, %v6827_v37  ;;  %v6860_v53 = vmax.f32 %v6800_v40, %v10878_v36  ;;  %v7039_v60 = vmax.f32 %v6978_v7, %v10878_v36 }
 0x7a0   : > { %v7064_v12 = vld [vmem:[#allocation2 + $0x171] sm:$0x7f]  ;;  %v6975_v10 = vmax.f32 %v6915_v42, %v6945_v11  ;;  %v7097_v11 = vmax.f32 %v7037_v4, %v6710_v48 }
 0x7a1   : > { %v7094_v18 = vmax.f32 %v7034_v59, %v7064_v12  ;;  %v6683_v26 = vld [vmem:[#allocation2 + $0x1d0] sm:$0x7f] }
 0x7a2   : > { %v6713_v55 = vld [vmem:[#allocation2 + $0x1d1] sm:$0x7f] }
 0x7a3   : > { %v6887_v45 = vld [vmem:[#allocation2 + $0x191] sm:$0x7f]  ;;  %v6743_v1 = vmax.f32 %v6683_v26, %v6713_v55 }
 0x7a4   : > { %v7006_v46 = vld [vmem:[#allocation2 + $0x190] sm:$0x7f]  ;;  %v6917_v16 = vmax.f32 %v6857_v22, %v6887_v45  ;;  %v6920_v22 = vmax.f32 %v6860_v53, %v10911_v52 }
 0x7a5   : > { %v7124_v33 = vld [vmem:[#allocation2 + $0x172] sm:$0x7f]  ;;  %v7036_v24 = vmax.f32 %v6975_v10, %v7006_v46  ;;  %v7157_v46 = vmax.f32 %v7097_v11, %v6770_v44  ;;  %v6774_v10 = vld [vmem:[#allocation2 + $0x1ea] sm:$0xff] }
 0x7a6   : > { %v7154_v25 = vmax.f32 %v7094_v18, %v7124_v33  ;;  %v6681_v21 = vld [vmem:[#allocation2 + $0x1b0] sm:$0x7f]  ;;  %v6744_v18 = vmax.f32 %v10892_v39, %v6714_v8 }
 0x7a7   : > { %v6711_v61 = vld [vmem:[#allocation2 + $0x1b1] sm:$0x7f]  ;;  %7187 = vst [vmem:[%s10713_s11 + $0xa0] sm:$0xff] %v7157_v46 }
 0x7a8   : > { %v6947_v57 = vld [vmem:[#allocation2 + $0x192] sm:$0x7f]  ;;  %v6741_v27 = vmax.f32 %v6681_v21, %v6711_v61  ;;  %7184 = vst [vmem:[%s10713_s11 + $0x88] sm:$0x7f] %v7154_v25  ;;  %v6980_v25 = vmax.f32 %v6920_v22, %v10917_v63  ;;  %v6804_v21 = vmax.f32 %v6744_v18, %v6774_v10 }
 0x7a9   : > { %v6829_v30 = vld [vmem:[#allocation2 + $0x1b0] sm:$0x7f]  ;;  %v6977_v41 = vmax.f32 %v6917_v16, %v6947_v57 }
 0x7aa   : > { %v7066_v47 = vld [vmem:[#allocation2 + $0x191] sm:$0x7f]  ;;  %v6859_v29 = vmax.f32 %v6799_v2, %v6829_v30  ;;  %v7099_v2 = vmax.f32 %v7039_v60, %v10911_v52  ;;  %v9625_v60 = vld [vmem:[#allocation2] sm:$0xff] }
 0x7ab   : > { %v6771_v9 = vld [vmem:[#allocation2 + $0x1b2] sm:$0x7f]  ;;  %v7096_v5 = vmax.f32 %v7036_v24, %v7066_v47  ;;  %v6864_v47 = vmax.f32 %v6804_v21, %v10888_v6 }
 0x7ac   : > { %v6801_v35 = vmax.f32 %v6741_v27, %v6771_v9  ;;  %v6889_v58 = vld [vmem:[#allocation2 + $0x1b1] sm:$0x7f]  ;;  %v7159_v57 = vmax.f32 %v7099_v2, %v10917_v63  ;;  %v7041_v27 = vmax.f32 %v6980_v25, %v10892_v39  ;;  %v6894_v9 = vld [vmem:[#allocation2 + $0x209] sm:$0xff] }
 0x7ad   : > { %v7126_v38 = vld [vmem:[#allocation2 + $0x192] sm:$0x7f]  ;;  %v6919_v15 = vmax.f32 %v6859_v29, %v6889_v58  ;;  %v6954_v39 = vld [vmem:[#allocation2 + $0x20a] sm:$0xff] }
 0x7ae   : > { %v6831_v54 = vld [vmem:[#allocation2 + $0x1d0] sm:$0x7f]  ;;  %v7156_v14 = vmax.f32 %v7096_v5, %v7126_v38  ;;  %7189 = vst [vmem:[%s10713_s11 + $0xb0] sm:$0xff] %v7159_v57  ;;  %v7101_v38 = vmax.f32 %v7041_v27, %v6714_v8 }
 0x7af   : > { %v7008_v43 = vld [vmem:[#allocation2 + $0x1b0] sm:$0x7f]  ;;  %v6861_v0 = vmax.f32 %v6801_v35, %v6831_v54  ;;  %v6924_v35 = vmax.f32 %v6864_v47, %v6894_v9 }
 0x7b0   : > { %v6773_v32 = vld [vmem:[#allocation2 + $0x1d2] sm:$0x7f]  ;;  %v7038_v23 = vmax.f32 %v6977_v41, %v7008_v43  ;;  %7186 = vst [vmem:[%s10713_s11 + $0x98] sm:$0x7f] %v7156_v14  ;;  %v7161_v53 = vmax.f32 %v7101_v38, %v6774_v10 }
 0x7b1   : > { %v6891_v31 = vld [vmem:[#allocation2 + $0x1d1] sm:$0x7f]  ;;  %v6803_v59 = vmax.f32 %v6743_v1, %v6773_v32  ;;  %v6922_v1 = vmax.f32 %v6862_v56, %v6714_v8  ;;  %v6984_v14 = vmax.f32 %v6924_v35, %v6954_v39 }
 0x7b2   : > { %v6949_v17 = vld [vmem:[#allocation2 + $0x1b2] sm:$0x7f]  ;;  %v6921_v26 = vmax.f32 %v6861_v0, %v6891_v31  ;;  %7191 = vst [vmem:[%s10713_s11 + $0xc0] sm:$0xff] %v7161_v53 }
 0x7b3   : > { %v6979_v37 = vmax.f32 %v6919_v15, %v6949_v17  ;;  %v7068_v42 = vld [vmem:[#allocation2 + $0x1b1] sm:$0x7f]  ;;  %v6982_v63 = vmax.f32 %v6922_v1, %v6774_v10 }
 0x7b4   : > { %v6685_v12 = vld [vmem:[#allocation2 + $0x1f0] sm:$0x7f]  ;;  %v7098_v28 = vmax.f32 %v7038_v23, %v7068_v42  ;;  %v7045_v42 = vmax.f32 %v6984_v14, %v9625_v60 }
 0x7b5   : > { %v7010_v51 = vld [vmem:[#allocation2 + $0x1d0] sm:$0x7f]  ;;  %v7043_v15 = vmax.f32 %v6982_v63, %v10888_v6 }
 0x7b6   : > { %v6715_v49 = vld [vmem:[#allocation2 + $0x1f1] sm:$0x7f]  ;;  %v7040_v55 = vmax.f32 %v6979_v37, %v7010_v51 }
 0x7b7   : > { %v7128_v45 = vld [vmem:[#allocation2 + $0x1b2] sm:$0x7f]  ;;  %v6745_v36 = vmax.f32 %v6685_v12, %v6715_v49  ;;  %v7103_v23 = vmax.f32 %v7043_v15, %v6894_v9  ;;  %v7135_v12 = vld [vmem:[#allocation2 + $0x22a] sm:$0xff] }
 0x7b8   : > { %v6833_v33 = vld [vmem:[#allocation2 + $0x1f0] sm:$0x7f]  ;;  %v7158_v62 = vmax.f32 %v7098_v28, %v7128_v45 }
 0x7b9   : > { %v7070_v50 = vld [vmem:[#allocation2 + $0x1d1] sm:$0x7f]  ;;  %v6863_v48 = vmax.f32 %v6803_v59, %v6833_v33  ;;  %v7163_v28 = vmax.f32 %v7103_v23, %v6954_v39  ;;  %v9626_v49 = vld [vmem:[#allocation2 + $0x229] sm:$0xff] }
 0x7ba   : > { %v6775_v13 = vld [vmem:[#allocation2 + $0x1f2] sm:$0x7f]  ;;  %v7100_v16 = vmax.f32 %v7040_v55, %v7070_v50  ;;  %7188 = vst [vmem:[%s10713_s11 + $0xa8] sm:$0x7f] %v7158_v62  ;;  %v7105_v18 = vmax.f32 %v7045_v42, %v9626_v49 }
 0x7bb   : > { %v6951_v61 = vld [vmem:[#allocation2 + $0x1d2] sm:$0x7f]  ;;  %v6805_v52 = vmax.f32 %v6745_v36, %v6775_v13  ;;  %7193 = vst [vmem:[%s10713_s11 + $0xd0] sm:$0xff] %v7163_v28 }
 0x7bc   : > { %v6893_v24 = vld [vmem:[#allocation2 + $0x1f1] sm:$0x7f]  ;;  %v6981_v34 = vmax.f32 %v6921_v26, %v6951_v61  ;;  %v7165_v2 = vmax.f32 %v7105_v18, %v7135_v12 }
 0x7bd   : > { %v7130_v20 = vld [vmem:[#allocation2 + $0x1d2] sm:$0x7f]  ;;  %v6923_v3 = vmax.f32 %v6863_v48, %v6893_v24 }
 0x7be   : > { %v6835_v30 = vld [vmem:[#allocation2 + $0x210] sm:$0x7f]  ;;  %v7160_v44 = vmax.f32 %v7100_v16, %v7130_v20  ;;  %7195 = vst [vmem:[%s10713_s11 + $0xe0] sm:$0xff] %v7165_v2 }
 0x7bf   : > { %v6865_v29 = vmax.f32 %v6805_v52, %v6835_v30  ;;  %v6953_v19 = vld [vmem:[#allocation2 + $0x1f2] sm:$0x7f] }
 0x7c0   : > { %v7012_v5 = vld [vmem:[#allocation2 + $0x1f0] sm:$0x7f]  ;;  %v6983_v58 = vmax.f32 %v6923_v3, %v6953_v19  ;;  %7190 = vst [vmem:[%s10713_s11 + $0xb8] sm:$0x7f] %v7160_v44 }
 0x7c1   : > { %v6895_v40 = vld [vmem:[#allocation2 + $0x211] sm:$0x7f]  ;;  %v7042_v41 = vmax.f32 %v6981_v34, %v7012_v5 }
 0x7c2   : > { %v7014_v4 = vld [vmem:[#allocation2 + $0x210] sm:$0x7f]  ;;  %v6925_v54 = vmax.f32 %v6865_v29, %v6895_v40 }
 0x7c3   : > { %v7072_v7 = vld [vmem:[#allocation2 + $0x1f1] sm:$0x7f]  ;;  %v7044_v32 = vmax.f32 %v6983_v58, %v7014_v4 }
 0x7c4   : > { %v7016_v43 = vld [vmem:[#allocation2 + $0x230] sm:$0x7f]  ;;  %v7102_v31 = vmax.f32 %v7042_v41, %v7072_v7 }
 0x7c5   : > { %v6955_v56 = vld [vmem:[#allocation2 + $0x212] sm:$0x7f] }
 0x7c6   : > { %v7074_v0 = vld [vmem:[#allocation2 + $0x211] sm:$0x7f]  ;;  %v6985_v17 = vmax.f32 %v6925_v54, %v6955_v56 }
 0x7c7   : > { %v7132_v59 = vld [vmem:[#allocation2 + $0x1f2] sm:$0x7f]  ;;  %v7104_v11 = vmax.f32 %v7044_v32, %v7074_v0 }
 0x7c8   : > { %v7076_v37 = vld [vmem:[#allocation2 + $0x231] sm:$0x7f]  ;;  %v7162_v6 = vmax.f32 %v7102_v31, %v7132_v59  ;;  %v7046_v51 = vmax.f32 %v6985_v17, %v7016_v43 }
 0x7c9   : > { %v7134_v8 = vld [vmem:[#allocation2 + $0x212] sm:$0x7f] }
 0x7ca   : > { %v7136_v22 = vld [vmem:[#allocation2 + $0x232] sm:$0x7f]  ;;  %v7164_v26 = vmax.f32 %v7104_v11, %v7134_v8  ;;  %7192 = vst [vmem:[%s10713_s11 + $0xc8] sm:$0x7f] %v7162_v6  ;;  %v7106_v55 = vmax.f32 %v7046_v51, %v7076_v37 }
 0x7cc   : > { %7194 = vst [vmem:[%s10713_s11 + $0xd8] sm:$0x7f] %v7164_v26  ;;  %v7166_v45 = vmax.f32 %v7106_v55, %v7136_v22 }
 0x7ce   : > { %7196 = vst [vmem:[%s10713_s11 + $0xe8] sm:$0x7f] %v7166_v45 }
 0x7cf PF: > { %p22_p9 = scmp.ge.s32.totalorder %s9978_s12, 4   ;;  %s10996_s13 = smov %s9775_s14 }
 0x7d0   : > { %s10997_s14 = smov %s9779_s15  ;;  %s10998_s15 = smov %s9988_s28 }
 0x7d1   : > { %s10999_s16 = smov %s9978_s12  ;;  %24 = sbr.rel (!%p22_p9) target bundleno = 8 (0x8), region = 131 }
 0x7d8   :  { %7218 = vsyncpa [#allocation4], 1 }
 0x7d9   :  { %7220 = vsyncpa [#allocation4 + $0x1], 1 }
 0x7da   :  { %7221 = vsyncpa [#allocation6], 1 }
 0x7db   :  { %7222 = vsyncpa [#allocation9], 1 }

</bundles_post_ra>
